<compile_context>
chip_gen: v7x
topology: tpu7x:2x2x1
jax: 0.10.0
libtpu: 0.0.40
codegen_flags: <defaults>
</compile_context>

<pallas_src>
import functools
import math

import jax
import jax.numpy as jnp
from jax.experimental import pallas as pl
from jax.experimental.pallas import tpu as pltpu


def _round_up(x, m):
    return ((x + m - 1) // m) * m


def _pick_batch_tile(padded_batch):
    # Megacore (v7x): split the padded batch across the two TensorCores when it
    # is large enough to form two sublane-aligned blocks; otherwise one block.
    if padded_batch >= 16 and (padded_batch // 2) % 8 == 0:
        return padded_batch // 2
    return padded_batch


# ----------------------------------------------------------------------------
# Pallas kernel: multi-layer LSTM recurrence (zero initial state) + final FC.
# ----------------------------------------------------------------------------
def _lstm_fc_kernel(num_layers, seq_len, hidden_pad, x_ref, *refs):
    # refs layout:
    #   per layer l: w_ih[l] (in_l, 4*Hp), w_hh[l] (Hp, 4*Hp), b[l] (1, 4*Hp)
    #   w_fc (Hp, out), b_fc (1, out)
    #   out_ref (Bt, out)
    #   gates_scr (S*Bt, 4*Hp), seq_scr (S*Bt, Hp)    [VMEM scratch]
    Hp = hidden_pad
    S = seq_len
    n_param = 3 * num_layers + 2
    param_refs = refs[:n_param]
    out_ref = refs[n_param]
    gates_scr = refs[n_param + 1]
    seq_scr = refs[n_param + 2]

    Bt = x_ref.shape[0] // S                      # batch rows in this block

    def _sigmoid(v):
        # sigmoid(x) = 0.5*(tanh(0.5*x)+1): one EUP push instead of exp+recip.
        return 0.5 * jnp.tanh(0.5 * v) + 0.5

    h_last = None
    for layer in range(num_layers):
        # ---- per-layer weight/bias loads hoisted out of the time loop -------
        w_ih = param_refs[3 * layer][...]          # (in_l, 4*Hp)
        w_hh = param_refs[3 * layer + 1][...]      # (Hp,   4*Hp)
        b = param_refs[3 * layer + 2][...]         # (1,    4*Hp)

        # ---- hoisted input projection: one (S*Bt)-row MXU matmul ------------
        if layer == 0:
            inp_flat = x_ref[...]                  # (S*Bt, D), time-major
        else:
            inp_flat = seq_scr[...]                # (S*Bt, Hp)
        # (cast inp_flat / w_ih to bf16 here for ~2x MXU throughput on v6e/v7x)
        gates_scr[...] = (
            jnp.dot(inp_flat, w_ih, preferred_element_type=jnp.float32) + b)

        write_seq = layer < num_layers - 1

        # ---- serial recurrence: h/c live in vregs (loop carry), only the ----
        # ---- hidden sequence for the next layer is stored to VMEM.      ----
        def step(t, carry):
            h, c = carry
            row = pl.multiple_of(t * Bt, Bt)       # sublane-tile aligned
            g = gates_scr[pl.ds(row, Bt), :] + jnp.dot(
                h, w_hh, preferred_element_type=jnp.float32)   # (Bt, 4*Hp)
            # 128-lane-aligned gate views (Hp is a multiple of 128).
            i_g = _sigmoid(g[:, 0 * Hp:1 * Hp])
            f_g = _sigmoid(g[:, 1 * Hp:2 * Hp])
            g_g = jnp.tanh(g[:, 2 * Hp:3 * Hp])
            o_g = _sigmoid(g[:, 3 * Hp:4 * Hp])
            c_new = f_g * c + i_g * g_g
            h_new = o_g * jnp.tanh(c_new)
            if write_seq:
                seq_scr[pl.ds(row, Bt), :] = h_new
            return h_new, c_new

        init = (jnp.zeros((Bt, Hp), jnp.float32),
                jnp.zeros((Bt, Hp), jnp.float32))
        h_last, _ = jax.lax.fori_loop(0, S, step, init, unroll=(S <= 16))

    # ---- final FC on h_T of the top layer: fc(lstm_out[:, -1, :]) -----------
    w_fc = param_refs[3 * num_layers][...]         # (Hp, out)  (padded rows 0)
    b_fc = param_refs[3 * num_layers + 1][...]     # (1, out)
    out_ref[...] = (
        jnp.dot(h_last, w_fc, preferred_element_type=jnp.float32) + b_fc)


# ----------------------------------------------------------------------------
# Glue (plain JAX): feature selection, tiny 2->1 linear, concat, permute.
# ----------------------------------------------------------------------------
def _assemble_lstm_input(x, params):
    B, NB, S, F = x.shape
    stage_and_flux = x[:, :, :, 0:2]                                        # (B,NB,S,2)
    linear_out = stage_and_flux @ params["linear_w"].T + params["linear_b"]  # (B,NB,S,1)
    current_stage = x[:, :, :, 0:1]
    precip = x[:, :, :, 2:3]
    temp = x[:, :, :, 3:4]
    humid = x[:, :, :, 4:5]
    heat = x[:, :, :, 5:6]
    lstm_input = jnp.concatenate(
        [current_stage, precip, temp, humid, heat, linear_out], axis=3)      # (B,NB,S,6)
    lstm_input = jnp.transpose(lstm_input, (0, 2, 1, 3)).reshape(B, S, NB * 6)
    return lstm_input


# ----------------------------------------------------------------------------
# Weight padding: gate blocks at 128-lane-aligned offsets, hidden dim -> Hp.
# Padded rows/columns are zero, so padded lanes of h/c stay exactly 0 and the
# numerical result is unchanged.
# ----------------------------------------------------------------------------
def _pad_gate_cols(w, H, Hp):
    if Hp == H:
        return w
    pad_width = [(0, 0)] * (w.ndim - 1) + [(0, Hp - H)]
    parts = [jnp.pad(w[..., g * H:(g + 1) * H], pad_width) for g in range(4)]
    return jnp.concatenate(parts, axis=-1)


def _pad_rows(w, Hp):
    if w.shape[0] == Hp:
        return w
    return jnp.pad(w, ((0, Hp - w.shape[0]),) + ((0, 0),) * (w.ndim - 1))


def _prepare_kernel_params(params, hidden_size, num_layers, Hp):
    H = hidden_size
    kp = {}
    for l in range(num_layers):
        w_ih = _pad_gate_cols(params[f"w_ih_{l}"], H, Hp)
        if l > 0:                                   # input of layer l>0 is h (padded to Hp)
            w_ih = _pad_rows(w_ih, Hp)
        kp[f"w_ih_{l}"] = w_ih
        kp[f"w_hh_{l}"] = _pad_rows(_pad_gate_cols(params[f"w_hh_{l}"], H, Hp), Hp)
        kp[f"b_{l}"] = _pad_gate_cols(params[f"b_{l}"], H, Hp)
    kp["fc_w"] = _pad_rows(params["fc_w"], Hp)
    kp["fc_b"] = params["fc_b"]
    return kp


# ----------------------------------------------------------------------------
# Forward wrapper.
# ----------------------------------------------------------------------------
def river_level_forward(x, params, hidden_size, num_layers, output_size):
    B, NB, S, F = x.shape
    D = 6 * NB

    lstm_input = _assemble_lstm_input(x, params)                 # (B, S, D)

    # Time-major, batch padded to a sublane tile, split into batch blocks,
    # flattened so row = t*Bt + b inside each block (all layout plumbing done
    # once in XLA, outside the kernel).
    Bp = _round_up(B, 8)
    Bt = _pick_batch_tile(Bp)
    n_blk = Bp // Bt

    x_t = jnp.transpose(lstm_input, (1, 0, 2))                   # (S, B, D)
    if Bp != B:
        x_t = jnp.pad(x_t, ((0, 0), (0, Bp - B), (0, 0)))
    x_blocks = (x_t.reshape(S, n_blk, Bt, D)
                .transpose(1, 0, 2, 3)
                .reshape(n_blk, S * Bt, D))                      # (n_blk, S*Bt, D)

    # Lane-aligned gate layout: pad hidden to a multiple of 128.
    Hp = _round_up(hidden_size, 128)
    kp = _prepare_kernel_params(params, hidden_size, num_layers, Hp)

    args = [x_blocks]
    in_specs = [pl.BlockSpec((None, S * Bt, D), lambda i: (i, 0, 0))]
    for l in range(num_layers):
        for name in (f"w_ih_{l}", f"w_hh_{l}", f"b_{l}"):
            w = kp[name]
            args.append(w)
            in_specs.append(pl.BlockSpec(w.shape, lambda i: (0, 0)))
    args += [kp["fc_w"], kp["fc_b"]]
    in_specs += [pl.BlockSpec(kp["fc_w"].shape, lambda i: (0, 0)),
                 pl.BlockSpec(kp["fc_b"].shape, lambda i: (0, 0))]

    kernel = functools.partial(_lstm_fc_kernel, num_layers, S, Hp)

    # TODO(synk): for very long sequences on v7x (64 MiB VMEM), stream the
    # input over S-chunks (grid axis over S marked "arbitrary", h/c kept in
    # scratch) instead of keeping the whole (S*Bt, D) block resident.
    out_padded = pl.pallas_call(
        kernel,
        out_shape=jax.ShapeDtypeStruct((Bp, output_size), jnp.float32),
        grid=(n_blk,),
        in_specs=in_specs,
        out_specs=pl.BlockSpec((Bt, output_size), lambda i: (i, 0)),
        scratch_shapes=[
            pltpu.VMEM((S * Bt, 4 * Hp), jnp.float32),   # hoisted gate projections
            pltpu.VMEM((S * Bt, Hp), jnp.float32),       # per-layer hidden sequence
        ],
        compiler_params=pltpu.CompilerParams(
            dimension_semantics=("parallel",)),
    )(*args)
    return out_padded[:B]


# ----------------------------------------------------------------------------
# Deterministic parameter init (PyTorch-style uniform bounds), synthetic.
# Stored pre-transposed: (in, 4H) / (H, 4H); gate order i, f, g, o.
# ----------------------------------------------------------------------------
def init_params(key, num_basins, input_size, hidden_size, num_layers, output_size):
    params = {}
    D = input_size * num_basins

    def uni(k, shape, bound):
        return jax.random.uniform(k, shape, jnp.float32, -bound, bound)

    keys = jax.random.split(key, 4 + 4 * num_layers)
    ki = iter(keys)

    b_lin = 1.0 / math.sqrt(2.0)
    params["linear_w"] = uni(next(ki), (1, 2), b_lin)
    params["linear_b"] = uni(next(ki), (1,), b_lin)

    b_lstm = 1.0 / math.sqrt(hidden_size)
    for l in range(num_layers):
        in_l = D if l == 0 else hidden_size
        params[f"w_ih_{l}"] = uni(next(ki), (in_l, 4 * hidden_size), b_lstm)
        params[f"w_hh_{l}"] = uni(next(ki), (hidden_size, 4 * hidden_size), b_lstm)
        b_ih = uni(next(ki), (1, 4 * hidden_size), b_lstm)
        b_hh = uni(next(ki), (1, 4 * hidden_size), b_lstm)
        params[f"b_{l}"] = b_ih + b_hh

    b_fc = 1.0 / math.sqrt(hidden_size)
    params["fc_w"] = uni(next(ki), (hidden_size, output_size), b_fc)
    params["fc_b"] = uni(next(ki), (1, output_size), b_fc)
    return params


# ----------------------------------------------------------------------------
# Pure-JAX reference (exact f32 matmuls) for correctness check.
# ----------------------------------------------------------------------------
def reference_forward(x, params, hidden_size, num_layers, output_size):
    hi = jax.lax.Precision.HIGHEST
    lstm_input = _assemble_lstm_input(x, params)
    B, S, _ = lstm_input.shape
    H = hidden_size
    h = [jnp.zeros((B, H), jnp.float32) for _ in range(num_layers)]
    c = [jnp.zeros((B, H), jnp.float32) for _ in range(num_layers)]
    for t in range(S):
        inp = lstm_input[:, t, :]
        for l in range(num_layers):
            gates = (jnp.dot(inp, params[f"w_ih_{l}"], precision=hi)
                     + jnp.dot(h[l], params[f"w_hh_{l}"], precision=hi)
                     + params[f"b_{l}"])
            i_g = jax.nn.sigmoid(gates[:, 0 * H:1 * H])
            f_g = jax.nn.sigmoid(gates[:, 1 * H:2 * H])
            g_g = jnp.tanh(gates[:, 2 * H:3 * H])
            o_g = jax.nn.sigmoid(gates[:, 3 * H:4 * H])
            c[l] = f_g * c[l] + i_g * g_g
            h[l] = o_g * jnp.tanh(c[l])
            inp = h[l]
    return jnp.dot(h[-1], params["fc_w"], precision=hi) + params["fc_b"]


if __name__ == "__main__":
    # Small shapes consistent with the module: input_size must be 6.
    B, NB, S, F = 2, 3, 8, 6
    H, L, OUT = 32, 2, 1

    key = jax.random.PRNGKey(0)
    kx, kparams = jax.random.split(key)
    x = jax.random.normal(kx, (B, NB, S, F), dtype=jnp.float32)
    params = init_params(kparams, NB, F, H, L, OUT)

    out = river_level_forward(x, params, H, L, OUT)
    out = jax.block_until_ready(out)

    assert out.shape == (B, OUT)
    assert bool(jnp.all(jnp.isfinite(out)))

    ref = reference_forward(x, params, H, L, OUT)
    # 10x tighter than before; the remaining margin covers MXU f32 emulation
    # passes and the tanh-form sigmoid vs. the exp-form reference.
    if not jnp.allclose(out, ref, atol=5e-3, rtol=5e-3):
        diff = float(jnp.max(jnp.abs(out - ref)))
        raise AssertionError(f"mismatch (max abs diff {diff}): kernel={out}, ref={ref}")

    print("KERNEL_OK")
</pallas_src>

<mosaic_0001>
module attributes {stable_mosaic.version = 11 : i64} {
  func.func @_lstm_fc_kernel(%arg0: i32, %arg1: memref<1x64x18xf32, #tpu.memory_space<vmem>>, %arg2: memref<18x512xf32, #tpu.memory_space<vmem>>, %arg3: memref<128x512xf32, #tpu.memory_space<vmem>>, %arg4: memref<1x512xf32, #tpu.memory_space<vmem>>, %arg5: memref<128x512xf32, #tpu.memory_space<vmem>>, %arg6: memref<128x512xf32, #tpu.memory_space<vmem>>, %arg7: memref<1x512xf32, #tpu.memory_space<vmem>>, %arg8: memref<128x1xf32, #tpu.memory_space<vmem>>, %arg9: memref<1x1xf32, #tpu.memory_space<vmem>>, %arg10: memref<8x1xf32, #tpu.memory_space<vmem>>, %arg11: memref<64x512xf32, #tpu.memory_space<vmem>>, %arg12: memref<64x128xf32, #tpu.memory_space<vmem>>) attributes {dimension_semantics = [#tpu.dimension_semantics<parallel>], iteration_bounds = array<i64: 1>, scalar_prefetch = 0 : i64, scratch_operands = 2 : i64, tpu.core_type = #tpu.core_type<tc>, window_params = [{transform_indices = @transform_0, window_bounds = array<i64: 1, 64, 18>}, {pipeline_mode = #tpu.pipeline_mode<synchronous>, transform_indices = @transform_1, window_bounds = array<i64: 18, 512>}, {pipeline_mode = #tpu.pipeline_mode<synchronous>, transform_indices = @transform_2, window_bounds = array<i64: 128, 512>}, {pipeline_mode = #tpu.pipeline_mode<synchronous>, transform_indices = @transform_3, window_bounds = array<i64: 1, 512>}, {pipeline_mode = #tpu.pipeline_mode<synchronous>, transform_indices = @transform_4, window_bounds = array<i64: 128, 512>}, {pipeline_mode = #tpu.pipeline_mode<synchronous>, transform_indices = @transform_5, window_bounds = array<i64: 128, 512>}, {pipeline_mode = #tpu.pipeline_mode<synchronous>, transform_indices = @transform_6, window_bounds = array<i64: 1, 512>}, {pipeline_mode = #tpu.pipeline_mode<synchronous>, transform_indices = @transform_7, window_bounds = array<i64: 128, 1>}, {pipeline_mode = #tpu.pipeline_mode<synchronous>, transform_indices = @transform_8, window_bounds = array<i64: 1, 1>}, {transform_indices = @transform_9, window_bounds = array<i64: 8, 1>}]} {
    %c0 = arith.constant 0 : index
    %c0_0 = arith.constant 0 : index
    %0 = vector.load %arg2[%c0, %c0_0] : memref<18x512xf32, #tpu.memory_space<vmem>>, vector<18x512xf32>
    %c0_1 = arith.constant 0 : index
    %c0_2 = arith.constant 0 : index
    %1 = vector.load %arg3[%c0_1, %c0_2] : memref<128x512xf32, #tpu.memory_space<vmem>>, vector<128x512xf32>
    %c0_3 = arith.constant 0 : index
    %c0_4 = arith.constant 0 : index
    %2 = vector.load %arg4[%c0_3, %c0_4] : memref<1x512xf32, #tpu.memory_space<vmem>>, vector<1x512xf32>
    %c0_5 = arith.constant 0 : index
    %c0_6 = arith.constant 0 : index
    %c0_7 = arith.constant 0 : index
    %3 = vector.load %arg1[%c0_5, %c0_6, %c0_7] : memref<1x64x18xf32, #tpu.memory_space<vmem>>, vector<1x64x18xf32>
    %4 = vector.shape_cast %3 : vector<1x64x18xf32> to vector<64x18xf32>
    %cst = arith.constant dense<0.000000e+00> : vector<64x512xf32>
    %5 = tpu.matmul %4, %0, %cst {dimension_numbers = #tpu.dot_dimension_numbers<[1], [0], [0], [1], [0, 0, 1, 1], [], []>} : vector<64x18xf32>, vector<18x512xf32>, vector<64x512xf32> -> vector<64x512xf32>
    %6 = vector.broadcast %2 : vector<1x512xf32> to vector<64x512xf32>
    %7 = arith.addf %5, %6 : vector<64x512xf32>
    %c0_8 = arith.constant 0 : index
    %c0_9 = arith.constant 0 : index
    %8 = vector.load %arg11[%c0_8, %c0_9] : memref<64x512xf32, #tpu.memory_space<vmem>>, vector<64x512xf32>
    tpu.vector_store %arg11[%c0_8, %c0_9], %7 {strides = array<i32>} : memref<64x512xf32, #tpu.memory_space<vmem>>, vector<64x512xf32>,
    %cst_10 = arith.constant 0.000000e+00 : f32
    %9 = vector.broadcast %cst_10 : f32 to vector<8x128xf32>
    %cst_11 = arith.constant 0.000000e+00 : f32
    %10 = vector.broadcast %cst_11 : f32 to vector<8x128xf32>
    %c0_i32 = arith.constant 0 : i32
    %c8_i32 = arith.constant 8 : i32
    %11 = arith.muli %c0_i32, %c8_i32 : i32
    %12 = tpu.assume_multiple %11, 8 : i32
    %13 = arith.index_cast %12 : i32 to index
    %c0_12 = arith.constant 0 : index
    %14 = vector.load %arg11[%13, %c0_12] : memref<64x512xf32, #tpu.memory_space<vmem>>, vector<8x512xf32>
    %cst_13 = arith.constant dense<0.000000e+00> : vector<8x512xf32>
    %15 = tpu.matmul %9, %1, %cst_13 {dimension_numbers = #tpu.dot_dimension_numbers<[1], [0], [0], [1], [0, 0, 1, 1], [], []>} : vector<8x128xf32>, vector<128x512xf32>, vector<8x512xf32> -> vector<8x512xf32>
    %16 = arith.addf %14, %15 : vector<8x512xf32>
    %17 = vector.extract_strided_slice %16 {offsets = [0, 0], sizes = [8, 128], strides = [1, 1]} : vector<8x512xf32> to vector<8x128xf32>
    %cst_14 = arith.constant 5.000000e-01 : f32
    %18 = vector.broadcast %cst_14 : f32 to vector<8x128xf32>
    %19 = arith.mulf %18, %17 : vector<8x128xf32>
    %20 = math.tanh %19 : vector<8x128xf32>
    %cst_15 = arith.constant 5.000000e-01 : f32
    %21 = vector.broadcast %cst_15 : f32 to vector<8x128xf32>
    %22 = arith.mulf %21, %20 : vector<8x128xf32>
    %cst_16 = arith.constant 5.000000e-01 : f32
    %23 = vector.broadcast %cst_16 : f32 to vector<8x128xf32>
    %24 = arith.addf %22, %23 : vector<8x128xf32>
    %25 = vector.extract_strided_slice %16 {offsets = [0, 128], sizes = [8, 128], strides = [1, 1]} : vector<8x512xf32> to vector<8x128xf32>
    %cst_17 = arith.constant 5.000000e-01 : f32
    %26 = vector.broadcast %cst_17 : f32 to vector<8x128xf32>
    %27 = arith.mulf %26, %25 : vector<8x128xf32>
    %28 = math.tanh %27 : vector<8x128xf32>
    %cst_18 = arith.constant 5.000000e-01 : f32
    %29 = vector.broadcast %cst_18 : f32 to vector<8x128xf32>
    %30 = arith.mulf %29, %28 : vector<8x128xf32>
    %cst_19 = arith.constant 5.000000e-01 : f32
    %31 = vector.broadcast %cst_19 : f32 to vector<8x128xf32>
    %32 = arith.addf %30, %31 : vector<8x128xf32>
    %33 = vector.extract_strided_slice %16 {offsets = [0, 256], sizes = [8, 128], strides = [1, 1]} : vector<8x512xf32> to vector<8x128xf32>
    %34 = math.tanh %33 : vector<8x128xf32>
    %35 = vector.extract_strided_slice %16 {offsets = [0, 384], sizes = [8, 128], strides = [1, 1]} : vector<8x512xf32> to vector<8x128xf32>
    %cst_20 = arith.constant 5.000000e-01 : f32
    %36 = vector.broadcast %cst_20 : f32 to vector<8x128xf32>
    %37 = arith.mulf %36, %35 : vector<8x128xf32>
    %38 = math.tanh %37 : vector<8x128xf32>
    %cst_21 = arith.constant 5.000000e-01 : f32
    %39 = vector.broadcast %cst_21 : f32 to vector<8x128xf32>
    %40 = arith.mulf %39, %38 : vector<8x128xf32>
    %cst_22 = arith.constant 5.000000e-01 : f32
    %41 = vector.broadcast %cst_22 : f32 to vector<8x128xf32>
    %42 = arith.addf %40, %41 : vector<8x128xf32>
    %43 = arith.mulf %32, %10 : vector<8x128xf32>
    %44 = arith.mulf %24, %34 : vector<8x128xf32>
    %45 = arith.addf %43, %44 : vector<8x128xf32>
    %46 = math.tanh %45 : vector<8x128xf32>
    %47 = arith.mulf %42, %46 : vector<8x128xf32>
    %48 = arith.index_cast %12 : i32 to index
    %c0_23 = arith.constant 0 : index
    %49 = vector.load %arg12[%48, %c0_23] : memref<64x128xf32, #tpu.memory_space<vmem>>, vector<8x128xf32>
    tpu.vector_store %arg12[%48, %c0_23], %47 {strides = array<i32>} : memref<64x128xf32, #tpu.memory_space<vmem>>, vector<8x128xf32>,
    %c1_i32 = arith.constant 1 : i32
    %c8_i32_24 = arith.constant 8 : i32
    %50 = arith.muli %c1_i32, %c8_i32_24 : i32
    %51 = tpu.assume_multiple %50, 8 : i32
    %52 = arith.index_cast %51 : i32 to index
    %c0_25 = arith.constant 0 : index
    %53 = vector.load %arg11[%52, %c0_25] : memref<64x512xf32, #tpu.memory_space<vmem>>, vector<8x512xf32>
    %cst_26 = arith.constant dense<0.000000e+00> : vector<8x512xf32>
    %54 = tpu.matmul %47, %1, %cst_26 {dimension_numbers = #tpu.dot_dimension_numbers<[1], [0], [0], [1], [0, 0, 1, 1], [], []>} : vector<8x128xf32>, vector<128x512xf32>, vector<8x512xf32> -> vector<8x512xf32>
    %55 = arith.addf %53, %54 : vector<8x512xf32>
    %56 = vector.extract_strided_slice %55 {offsets = [0, 0], sizes = [8, 128], strides = [1, 1]} : vector<8x512xf32> to vector<8x128xf32>
    %cst_27 = arith.constant 5.000000e-01 : f32
    %57 = vector.broadcast %cst_27 : f32 to vector<8x128xf32>
    %58 = arith.mulf %57, %56 : vector<8x128xf32>
    %59 = math.tanh %58 : vector<8x128xf32>
    %cst_28 = arith.constant 5.000000e-01 : f32
    %60 = vector.broadcast %cst_28 : f32 to vector<8x128xf32>
    %61 = arith.mulf %60, %59 : vector<8x128xf32>
    %cst_29 = arith.constant 5.000000e-01 : f32
    %62 = vector.broadcast %cst_29 : f32 to vector<8x128xf32>
    %63 = arith.addf %61, %62 : vector<8x128xf32>
    %64 = vector.extract_strided_slice %55 {offsets = [0, 128], sizes = [8, 128], strides = [1, 1]} : vector<8x512xf32> to vector<8x128xf32>
    %cst_30 = arith.constant 5.000000e-01 : f32
    %65 = vector.broadcast %cst_30 : f32 to vector<8x128xf32>
    %66 = arith.mulf %65, %64 : vector<8x128xf32>
    %67 = math.tanh %66 : vector<8x128xf32>
    %cst_31 = arith.constant 5.000000e-01 : f32
    %68 = vector.broadcast %cst_31 : f32 to vector<8x128xf32>
    %69 = arith.mulf %68, %67 : vector<8x128xf32>
    %cst_32 = arith.constant 5.000000e-01 : f32
    %70 = vector.broadcast %cst_32 : f32 to vector<8x128xf32>
    %71 = arith.addf %69, %70 : vector<8x128xf32>
    %72 = vector.extract_strided_slice %55 {offsets = [0, 256], sizes = [8, 128], strides = [1, 1]} : vector<8x512xf32> to vector<8x128xf32>
    %73 = math.tanh %72 : vector<8x128xf32>
    %74 = vector.extract_strided_slice %55 {offsets = [0, 384], sizes = [8, 128], strides = [1, 1]} : vector<8x512xf32> to vector<8x128xf32>
    %cst_33 = arith.constant 5.000000e-01 : f32
    %75 = vector.broadcast %cst_33 : f32 to vector<8x128xf32>
    %76 = arith.mulf %75, %74 : vector<8x128xf32>
    %77 = math.tanh %76 : vector<8x128xf32>
    %cst_34 = arith.constant 5.000000e-01 : f32
    %78 = vector.broadcast %cst_34 : f32 to vector<8x128xf32>
    %79 = arith.mulf %78, %77 : vector<8x128xf32>
    %cst_35 = arith.constant 5.000000e-01 : f32
    %80 = vector.broadcast %cst_35 : f32 to vector<8x128xf32>
    %81 = arith.addf %79, %80 : vector<8x128xf32>
    %82 = arith.mulf %71, %45 : vector<8x128xf32>
    %83 = arith.mulf %63, %73 : vector<8x128xf32>
    %84 = arith.addf %82, %83 : vector<8x128xf32>
    %85 = math.tanh %84 : vector<8x128xf32>
    %86 = arith.mulf %81, %85 : vector<8x128xf32>
    %87 = arith.index_cast %51 : i32 to index
    %c0_36 = arith.constant 0 : index
    %88 = vector.load %arg12[%87, %c0_36] : memref<64x128xf32, #tpu.memory_space<vmem>>, vector<8x128xf32>
    tpu.vector_store %arg12[%87, %c0_36], %86 {strides = array<i32>} : memref<64x128xf32, #tpu.memory_space<vmem>>, vector<8x128xf32>,
    %c2_i32 = arith.constant 2 : i32
    %c8_i32_37 = arith.constant 8 : i32
    %89 = arith.muli %c2_i32, %c8_i32_37 : i32
    %90 = tpu.assume_multiple %89, 8 : i32
    %91 = arith.index_cast %90 : i32 to index
    %c0_38 = arith.constant 0 : index
    %92 = vector.load %arg11[%91, %c0_38] : memref<64x512xf32, #tpu.memory_space<vmem>>, vector<8x512xf32>
    %cst_39 = arith.constant dense<0.000000e+00> : vector<8x512xf32>
    %93 = tpu.matmul %86, %1, %cst_39 {dimension_numbers = #tpu.dot_dimension_numbers<[1], [0], [0], [1], [0, 0, 1, 1], [], []>} : vector<8x128xf32>, vector<128x512xf32>, vector<8x512xf32> -> vector<8x512xf32>
    %94 = arith.addf %92, %93 : vector<8x512xf32>
    %95 = vector.extract_strided_slice %94 {offsets = [0, 0], sizes = [8, 128], strides = [1, 1]} : vector<8x512xf32> to vector<8x128xf32>
    %cst_40 = arith.constant 5.000000e-01 : f32
    %96 = vector.broadcast %cst_40 : f32 to vector<8x128xf32>
    %97 = arith.mulf %96, %95 : vector<8x128xf32>
    %98 = math.tanh %97 : vector<8x128xf32>
    %cst_41 = arith.constant 5.000000e-01 : f32
    %99 = vector.broadcast %cst_41 : f32 to vector<8x128xf32>
    %100 = arith.mulf %99, %98 : vector<8x128xf32>
    %cst_42 = arith.constant 5.000000e-01 : f32
    %101 = vector.broadcast %cst_42 : f32 to vector<8x128xf32>
    %102 = arith.addf %100, %101 : vector<8x128xf32>
    %103 = vector.extract_strided_slice %94 {offsets = [0, 128], sizes = [8, 128], strides = [1, 1]} : vector<8x512xf32> to vector<8x128xf32>
    %cst_43 = arith.constant 5.000000e-01 : f32
    %104 = vector.broadcast %cst_43 : f32 to vector<8x128xf32>
    %105 = arith.mulf %104, %103 : vector<8x128xf32>
    %106 = math.tanh %105 : vector<8x128xf32>
    %cst_44 = arith.constant 5.000000e-01 : f32
    %107 = vector.broadcast %cst_44 : f32 to vector<8x128xf32>
    %108 = arith.mulf %107, %106 : vector<8x128xf32>
    %cst_45 = arith.constant 5.000000e-01 : f32
    %109 = vector.broadcast %cst_45 : f32 to vector<8x128xf32>
    %110 = arith.addf %108, %109 : vector<8x128xf32>
    %111 = vector.extract_strided_slice %94 {offsets = [0, 256], sizes = [8, 128], strides = [1, 1]} : vector<8x512xf32> to vector<8x128xf32>
    %112 = math.tanh %111 : vector<8x128xf32>
    %113 = vector.extract_strided_slice %94 {offsets = [0, 384], sizes = [8, 128], strides = [1, 1]} : vector<8x512xf32> to vector<8x128xf32>
    %cst_46 = arith.constant 5.000000e-01 : f32
    %114 = vector.broadcast %cst_46 : f32 to vector<8x128xf32>
    %115 = arith.mulf %114, %113 : vector<8x128xf32>
    %116 = math.tanh %115 : vector<8x128xf32>
    %cst_47 = arith.constant 5.000000e-01 : f32
    %117 = vector.broadcast %cst_47 : f32 to vector<8x128xf32>
    %118 = arith.mulf %117, %116 : vector<8x128xf32>
    %cst_48 = arith.constant 5.000000e-01 : f32
    %119 = vector.broadcast %cst_48 : f32 to vector<8x128xf32>
    %120 = arith.addf %118, %119 : vector<8x128xf32>
    %121 = arith.mulf %110, %84 : vector<8x128xf32>
    %122 = arith.mulf %102, %112 : vector<8x128xf32>
    %123 = arith.addf %121, %122 : vector<8x128xf32>
    %124 = math.tanh %123 : vector<8x128xf32>
    %125 = arith.mulf %120, %124 : vector<8x128xf32>
    %126 = arith.index_cast %90 : i32 to index
    %c0_49 = arith.constant 0 : index
    %127 = vector.load %arg12[%126, %c0_49] : memref<64x128xf32, #tpu.memory_space<vmem>>, vector<8x128xf32>
    tpu.vector_store %arg12[%126, %c0_49], %125 {strides = array<i32>} : memref<64x128xf32, #tpu.memory_space<vmem>>, vector<8x128xf32>,
    %c3_i32 = arith.constant 3 : i32
    %c8_i32_50 = arith.constant 8 : i32
    %128 = arith.muli %c3_i32, %c8_i32_50 : i32
    %129 = tpu.assume_multiple %128, 8 : i32
    %130 = arith.index_cast %129 : i32 to index
    %c0_51 = arith.constant 0 : index
    %131 = vector.load %arg11[%130, %c0_51] : memref<64x512xf32, #tpu.memory_space<vmem>>, vector<8x512xf32>
    %cst_52 = arith.constant dense<0.000000e+00> : vector<8x512xf32>
    %132 = tpu.matmul %125, %1, %cst_52 {dimension_numbers = #tpu.dot_dimension_numbers<[1], [0], [0], [1], [0, 0, 1, 1], [], []>} : vector<8x128xf32>, vector<128x512xf32>, vector<8x512xf32> -> vector<8x512xf32>
    %133 = arith.addf %131, %132 : vector<8x512xf32>
    %134 = vector.extract_strided_slice %133 {offsets = [0, 0], sizes = [8, 128], strides = [1, 1]} : vector<8x512xf32> to vector<8x128xf32>
    %cst_53 = arith.constant 5.000000e-01 : f32
    %135 = vector.broadcast %cst_53 : f32 to vector<8x128xf32>
    %136 = arith.mulf %135, %134 : vector<8x128xf32>
    %137 = math.tanh %136 : vector<8x128xf32>
    %cst_54 = arith.constant 5.000000e-01 : f32
    %138 = vector.broadcast %cst_54 : f32 to vector<8x128xf32>
    %139 = arith.mulf %138, %137 : vector<8x128xf32>
    %cst_55 = arith.constant 5.000000e-01 : f32
    %140 = vector.broadcast %cst_55 : f32 to vector<8x128xf32>
    %141 = arith.addf %139, %140 : vector<8x128xf32>
    %142 = vector.extract_strided_slice %133 {offsets = [0, 128], sizes = [8, 128], strides = [1, 1]} : vector<8x512xf32> to vector<8x128xf32>
    %cst_56 = arith.constant 5.000000e-01 : f32
    %143 = vector.broadcast %cst_56 : f32 to vector<8x128xf32>
    %144 = arith.mulf %143, %142 : vector<8x128xf32>
    %145 = math.tanh %144 : vector<8x128xf32>
    %cst_57 = arith.constant 5.000000e-01 : f32
    %146 = vector.broadcast %cst_57 : f32 to vector<8x128xf32>
    %147 = arith.mulf %146, %145 : vector<8x128xf32>
    %cst_58 = arith.constant 5.000000e-01 : f32
    %148 = vector.broadcast %cst_58 : f32 to vector<8x128xf32>
    %149 = arith.addf %147, %148 : vector<8x128xf32>
    %150 = vector.extract_strided_slice %133 {offsets = [0, 256], sizes = [8, 128], strides = [1, 1]} : vector<8x512xf32> to vector<8x128xf32>
    %151 = math.tanh %150 : vector<8x128xf32>
    %152 = vector.extract_strided_slice %133 {offsets = [0, 384], sizes = [8, 128], strides = [1, 1]} : vector<8x512xf32> to vector<8x128xf32>
    %cst_59 = arith.constant 5.000000e-01 : f32
    %153 = vector.broadcast %cst_59 : f32 to vector<8x128xf32>
    %154 = arith.mulf %153, %152 : vector<8x128xf32>
    %155 = math.tanh %154 : vector<8x128xf32>
    %cst_60 = arith.constant 5.000000e-01 : f32
    %156 = vector.broadcast %cst_60 : f32 to vector<8x128xf32>
    %157 = arith.mulf %156, %155 : vector<8x128xf32>
    %cst_61 = arith.constant 5.000000e-01 : f32
    %158 = vector.broadcast %cst_61 : f32 to vector<8x128xf32>
    %159 = arith.addf %157, %158 : vector<8x128xf32>
    %160 = arith.mulf %149, %123 : vector<8x128xf32>
    %161 = arith.mulf %141, %151 : vector<8x128xf32>
    %162 = arith.addf %160, %161 : vector<8x128xf32>
    %163 = math.tanh %162 : vector<8x128xf32>
    %164 = arith.mulf %159, %163 : vector<8x128xf32>
    %165 = arith.index_cast %129 : i32 to index
    %c0_62 = arith.constant 0 : index
    %166 = vector.load %arg12[%165, %c0_62] : memref<64x128xf32, #tpu.memory_space<vmem>>, vector<8x128xf32>
    tpu.vector_store %arg12[%165, %c0_62], %164 {strides = array<i32>} : memref<64x128xf32, #tpu.memory_space<vmem>>, vector<8x128xf32>,
    %c4_i32 = arith.constant 4 : i32
    %c8_i32_63 = arith.constant 8 : i32
    %167 = arith.muli %c4_i32, %c8_i32_63 : i32
    %168 = tpu.assume_multiple %167, 8 : i32
    %169 = arith.index_cast %168 : i32 to index
    %c0_64 = arith.constant 0 : index
    %170 = vector.load %arg11[%169, %c0_64] : memref<64x512xf32, #tpu.memory_space<vmem>>, vector<8x512xf32>
    %cst_65 = arith.constant dense<0.000000e+00> : vector<8x512xf32>
    %171 = tpu.matmul %164, %1, %cst_65 {dimension_numbers = #tpu.dot_dimension_numbers<[1], [0], [0], [1], [0, 0, 1, 1], [], []>} : vector<8x128xf32>, vector<128x512xf32>, vector<8x512xf32> -> vector<8x512xf32>
    %172 = arith.addf %170, %171 : vector<8x512xf32>
    %173 = vector.extract_strided_slice %172 {offsets = [0, 0], sizes = [8, 128], strides = [1, 1]} : vector<8x512xf32> to vector<8x128xf32>
    %cst_66 = arith.constant 5.000000e-01 : f32
    %174 = vector.broadcast %cst_66 : f32 to vector<8x128xf32>
    %175 = arith.mulf %174, %173 : vector<8x128xf32>
    %176 = math.tanh %175 : vector<8x128xf32>
    %cst_67 = arith.constant 5.000000e-01 : f32
    %177 = vector.broadcast %cst_67 : f32 to vector<8x128xf32>
    %178 = arith.mulf %177, %176 : vector<8x128xf32>
    %cst_68 = arith.constant 5.000000e-01 : f32
    %179 = vector.broadcast %cst_68 : f32 to vector<8x128xf32>
    %180 = arith.addf %178, %179 : vector<8x128xf32>
    %181 = vector.extract_strided_slice %172 {offsets = [0, 128], sizes = [8, 128], strides = [1, 1]} : vector<8x512xf32> to vector<8x128xf32>
    %cst_69 = arith.constant 5.000000e-01 : f32
    %182 = vector.broadcast %cst_69 : f32 to vector<8x128xf32>
    %183 = arith.mulf %182, %181 : vector<8x128xf32>
    %184 = math.tanh %183 : vector<8x128xf32>
    %cst_70 = arith.constant 5.000000e-01 : f32
    %185 = vector.broadcast %cst_70 : f32 to vector<8x128xf32>
    %186 = arith.mulf %185, %184 : vector<8x128xf32>
    %cst_71 = arith.constant 5.000000e-01 : f32
    %187 = vector.broadcast %cst_71 : f32 to vector<8x128xf32>
    %188 = arith.addf %186, %187 : vector<8x128xf32>
    %189 = vector.extract_strided_slice %172 {offsets = [0, 256], sizes = [8, 128], strides = [1, 1]} : vector<8x512xf32> to vector<8x128xf32>
    %190 = math.tanh %189 : vector<8x128xf32>
    %191 = vector.extract_strided_slice %172 {offsets = [0, 384], sizes = [8, 128], strides = [1, 1]} : vector<8x512xf32> to vector<8x128xf32>
    %cst_72 = arith.constant 5.000000e-01 : f32
    %192 = vector.broadcast %cst_72 : f32 to vector<8x128xf32>
    %193 = arith.mulf %192, %191 : vector<8x128xf32>
    %194 = math.tanh %193 : vector<8x128xf32>
    %cst_73 = arith.constant 5.000000e-01 : f32
    %195 = vector.broadcast %cst_73 : f32 to vector<8x128xf32>
    %196 = arith.mulf %195, %194 : vector<8x128xf32>
    %cst_74 = arith.constant 5.000000e-01 : f32
    %197 = vector.broadcast %cst_74 : f32 to vector<8x128xf32>
    %198 = arith.addf %196, %197 : vector<8x128xf32>
    %199 = arith.mulf %188, %162 : vector<8x128xf32>
    %200 = arith.mulf %180, %190 : vector<8x128xf32>
    %201 = arith.addf %199, %200 : vector<8x128xf32>
    %202 = math.tanh %201 : vector<8x128xf32>
    %203 = arith.mulf %198, %202 : vector<8x128xf32>
    %204 = arith.index_cast %168 : i32 to index
    %c0_75 = arith.constant 0 : index
    %205 = vector.load %arg12[%204, %c0_75] : memref<64x128xf32, #tpu.memory_space<vmem>>, vector<8x128xf32>
    tpu.vector_store %arg12[%204, %c0_75], %203 {strides = array<i32>} : memref<64x128xf32, #tpu.memory_space<vmem>>, vector<8x128xf32>,
    %c5_i32 = arith.constant 5 : i32
    %c8_i32_76 = arith.constant 8 : i32
    %206 = arith.muli %c5_i32, %c8_i32_76 : i32
    %207 = tpu.assume_multiple %206, 8 : i32
    %208 = arith.index_cast %207 : i32 to index
    %c0_77 = arith.constant 0 : index
    %209 = vector.load %arg11[%208, %c0_77] : memref<64x512xf32, #tpu.memory_space<vmem>>, vector<8x512xf32>
    %cst_78 = arith.constant dense<0.000000e+00> : vector<8x512xf32>
    %210 = tpu.matmul %203, %1, %cst_78 {dimension_numbers = #tpu.dot_dimension_numbers<[1], [0], [0], [1], [0, 0, 1, 1], [], []>} : vector<8x128xf32>, vector<128x512xf32>, vector<8x512xf32> -> vector<8x512xf32>
    %211 = arith.addf %209, %210 : vector<8x512xf32>
    %212 = vector.extract_strided_slice %211 {offsets = [0, 0], sizes = [8, 128], strides = [1, 1]} : vector<8x512xf32> to vector<8x128xf32>
    %cst_79 = arith.constant 5.000000e-01 : f32
    %213 = vector.broadcast %cst_79 : f32 to vector<8x128xf32>
    %214 = arith.mulf %213, %212 : vector<8x128xf32>
    %215 = math.tanh %214 : vector<8x128xf32>
    %cst_80 = arith.constant 5.000000e-01 : f32
    %216 = vector.broadcast %cst_80 : f32 to vector<8x128xf32>
    %217 = arith.mulf %216, %215 : vector<8x128xf32>
    %cst_81 = arith.constant 5.000000e-01 : f32
    %218 = vector.broadcast %cst_81 : f32 to vector<8x128xf32>
    %219 = arith.addf %217, %218 : vector<8x128xf32>
    %220 = vector.extract_strided_slice %211 {offsets = [0, 128], sizes = [8, 128], strides = [1, 1]} : vector<8x512xf32> to vector<8x128xf32>
    %cst_82 = arith.constant 5.000000e-01 : f32
    %221 = vector.broadcast %cst_82 : f32 to vector<8x128xf32>
    %222 = arith.mulf %221, %220 : vector<8x128xf32>
    %223 = math.tanh %222 : vector<8x128xf32>
    %cst_83 = arith.constant 5.000000e-01 : f32
    %224 = vector.broadcast %cst_83 : f32 to vector<8x128xf32>
    %225 = arith.mulf %224, %223 : vector<8x128xf32>
    %cst_84 = arith.constant 5.000000e-01 : f32
    %226 = vector.broadcast %cst_84 : f32 to vector<8x128xf32>
    %227 = arith.addf %225, %226 : vector<8x128xf32>
    %228 = vector.extract_strided_slice %211 {offsets = [0, 256], sizes = [8, 128], strides = [1, 1]} : vector<8x512xf32> to vector<8x128xf32>
    %229 = math.tanh %228 : vector<8x128xf32>
    %230 = vector.extract_strided_slice %211 {offsets = [0, 384], sizes = [8, 128], strides = [1, 1]} : vector<8x512xf32> to vector<8x128xf32>
    %cst_85 = arith.constant 5.000000e-01 : f32
    %231 = vector.broadcast %cst_85 : f32 to vector<8x128xf32>
    %232 = arith.mulf %231, %230 : vector<8x128xf32>
    %233 = math.tanh %232 : vector<8x128xf32>
    %cst_86 = arith.constant 5.000000e-01 : f32
    %234 = vector.broadcast %cst_86 : f32 to vector<8x128xf32>
    %235 = arith.mulf %234, %233 : vector<8x128xf32>
    %cst_87 = arith.constant 5.000000e-01 : f32
    %236 = vector.broadcast %cst_87 : f32 to vector<8x128xf32>
    %237 = arith.addf %235, %236 : vector<8x128xf32>
    %238 = arith.mulf %227, %201 : vector<8x128xf32>
    %239 = arith.mulf %219, %229 : vector<8x128xf32>
    %240 = arith.addf %238, %239 : vector<8x128xf32>
    %241 = math.tanh %240 : vector<8x128xf32>
    %242 = arith.mulf %237, %241 : vector<8x128xf32>
    %243 = arith.index_cast %207 : i32 to index
    %c0_88 = arith.constant 0 : index
    %244 = vector.load %arg12[%243, %c0_88] : memref<64x128xf32, #tpu.memory_space<vmem>>, vector<8x128xf32>
    tpu.vector_store %arg12[%243, %c0_88], %242 {strides = array<i32>} : memref<64x128xf32, #tpu.memory_space<vmem>>, vector<8x128xf32>,
    %c6_i32 = arith.constant 6 : i32
    %c8_i32_89 = arith.constant 8 : i32
    %245 = arith.muli %c6_i32, %c8_i32_89 : i32
    %246 = tpu.assume_multiple %245, 8 : i32
    %247 = arith.index_cast %246 : i32 to index
    %c0_90 = arith.constant 0 : index
    %248 = vector.load %arg11[%247, %c0_90] : memref<64x512xf32, #tpu.memory_space<vmem>>, vector<8x512xf32>
    %cst_91 = arith.constant dense<0.000000e+00> : vector<8x512xf32>
    %249 = tpu.matmul %242, %1, %cst_91 {dimension_numbers = #tpu.dot_dimension_numbers<[1], [0], [0], [1], [0, 0, 1, 1], [], []>} : vector<8x128xf32>, vector<128x512xf32>, vector<8x512xf32> -> vector<8x512xf32>
    %250 = arith.addf %248, %249 : vector<8x512xf32>
    %251 = vector.extract_strided_slice %250 {offsets = [0, 0], sizes = [8, 128], strides = [1, 1]} : vector<8x512xf32> to vector<8x128xf32>
    %cst_92 = arith.constant 5.000000e-01 : f32
    %252 = vector.broadcast %cst_92 : f32 to vector<8x128xf32>
    %253 = arith.mulf %252, %251 : vector<8x128xf32>
    %254 = math.tanh %253 : vector<8x128xf32>
    %cst_93 = arith.constant 5.000000e-01 : f32
    %255 = vector.broadcast %cst_93 : f32 to vector<8x128xf32>
    %256 = arith.mulf %255, %254 : vector<8x128xf32>
    %cst_94 = arith.constant 5.000000e-01 : f32
    %257 = vector.broadcast %cst_94 : f32 to vector<8x128xf32>
    %258 = arith.addf %256, %257 : vector<8x128xf32>
    %259 = vector.extract_strided_slice %250 {offsets = [0, 128], sizes = [8, 128], strides = [1, 1]} : vector<8x512xf32> to vector<8x128xf32>
    %cst_95 = arith.constant 5.000000e-01 : f32
    %260 = vector.broadcast %cst_95 : f32 to vector<8x128xf32>
    %261 = arith.mulf %260, %259 : vector<8x128xf32>
    %262 = math.tanh %261 : vector<8x128xf32>
    %cst_96 = arith.constant 5.000000e-01 : f32
    %263 = vector.broadcast %cst_96 : f32 to vector<8x128xf32>
    %264 = arith.mulf %263, %262 : vector<8x128xf32>
    %cst_97 = arith.constant 5.000000e-01 : f32
    %265 = vector.broadcast %cst_97 : f32 to vector<8x128xf32>
    %266 = arith.addf %264, %265 : vector<8x128xf32>
    %267 = vector.extract_strided_slice %250 {offsets = [0, 256], sizes = [8, 128], strides = [1, 1]} : vector<8x512xf32> to vector<8x128xf32>
    %268 = math.tanh %267 : vector<8x128xf32>
    %269 = vector.extract_strided_slice %250 {offsets = [0, 384], sizes = [8, 128], strides = [1, 1]} : vector<8x512xf32> to vector<8x128xf32>
    %cst_98 = arith.constant 5.000000e-01 : f32
    %270 = vector.broadcast %cst_98 : f32 to vector<8x128xf32>
    %271 = arith.mulf %270, %269 : vector<8x128xf32>
    %272 = math.tanh %271 : vector<8x128xf32>
    %cst_99 = arith.constant 5.000000e-01 : f32
    %273 = vector.broadcast %cst_99 : f32 to vector<8x128xf32>
    %274 = arith.mulf %273, %272 : vector<8x128xf32>
    %cst_100 = arith.constant 5.000000e-01 : f32
    %275 = vector.broadcast %cst_100 : f32 to vector<8x128xf32>
    %276 = arith.addf %274, %275 : vector<8x128xf32>
    %277 = arith.mulf %266, %240 : vector<8x128xf32>
    %278 = arith.mulf %258, %268 : vector<8x128xf32>
    %279 = arith.addf %277, %278 : vector<8x128xf32>
    %280 = math.tanh %279 : vector<8x128xf32>
    %281 = arith.mulf %276, %280 : vector<8x128xf32>
    %282 = arith.index_cast %246 : i32 to index
    %c0_101 = arith.constant 0 : index
    %283 = vector.load %arg12[%282, %c0_101] : memref<64x128xf32, #tpu.memory_space<vmem>>, vector<8x128xf32>
    tpu.vector_store %arg12[%282, %c0_101], %281 {strides = array<i32>} : memref<64x128xf32, #tpu.memory_space<vmem>>, vector<8x128xf32>,
    %c7_i32 = arith.constant 7 : i32
    %c8_i32_102 = arith.constant 8 : i32
    %284 = arith.muli %c7_i32, %c8_i32_102 : i32
    %285 = tpu.assume_multiple %284, 8 : i32
    %286 = arith.index_cast %285 : i32 to index
    %c0_103 = arith.constant 0 : index
    %287 = vector.load %arg11[%286, %c0_103] : memref<64x512xf32, #tpu.memory_space<vmem>>, vector<8x512xf32>
    %cst_104 = arith.constant dense<0.000000e+00> : vector<8x512xf32>
    %288 = tpu.matmul %281, %1, %cst_104 {dimension_numbers = #tpu.dot_dimension_numbers<[1], [0], [0], [1], [0, 0, 1, 1], [], []>} : vector<8x128xf32>, vector<128x512xf32>, vector<8x512xf32> -> vector<8x512xf32>
    %289 = arith.addf %287, %288 : vector<8x512xf32>
    %290 = vector.extract_strided_slice %289 {offsets = [0, 0], sizes = [8, 128], strides = [1, 1]} : vector<8x512xf32> to vector<8x128xf32>
    %cst_105 = arith.constant 5.000000e-01 : f32
    %291 = vector.broadcast %cst_105 : f32 to vector<8x128xf32>
    %292 = arith.mulf %291, %290 : vector<8x128xf32>
    %293 = math.tanh %292 : vector<8x128xf32>
    %cst_106 = arith.constant 5.000000e-01 : f32
    %294 = vector.broadcast %cst_106 : f32 to vector<8x128xf32>
    %295 = arith.mulf %294, %293 : vector<8x128xf32>
    %cst_107 = arith.constant 5.000000e-01 : f32
    %296 = vector.broadcast %cst_107 : f32 to vector<8x128xf32>
    %297 = arith.addf %295, %296 : vector<8x128xf32>
    %298 = vector.extract_strided_slice %289 {offsets = [0, 128], sizes = [8, 128], strides = [1, 1]} : vector<8x512xf32> to vector<8x128xf32>
    %cst_108 = arith.constant 5.000000e-01 : f32
    %299 = vector.broadcast %cst_108 : f32 to vector<8x128xf32>
    %300 = arith.mulf %299, %298 : vector<8x128xf32>
    %301 = math.tanh %300 : vector<8x128xf32>
    %cst_109 = arith.constant 5.000000e-01 : f32
    %302 = vector.broadcast %cst_109 : f32 to vector<8x128xf32>
    %303 = arith.mulf %302, %301 : vector<8x128xf32>
    %cst_110 = arith.constant 5.000000e-01 : f32
    %304 = vector.broadcast %cst_110 : f32 to vector<8x128xf32>
    %305 = arith.addf %303, %304 : vector<8x128xf32>
    %306 = vector.extract_strided_slice %289 {offsets = [0, 256], sizes = [8, 128], strides = [1, 1]} : vector<8x512xf32> to vector<8x128xf32>
    %307 = math.tanh %306 : vector<8x128xf32>
    %308 = vector.extract_strided_slice %289 {offsets = [0, 384], sizes = [8, 128], strides = [1, 1]} : vector<8x512xf32> to vector<8x128xf32>
    %cst_111 = arith.constant 5.000000e-01 : f32
    %309 = vector.broadcast %cst_111 : f32 to vector<8x128xf32>
    %310 = arith.mulf %309, %308 : vector<8x128xf32>
    %311 = math.tanh %310 : vector<8x128xf32>
    %cst_112 = arith.constant 5.000000e-01 : f32
    %312 = vector.broadcast %cst_112 : f32 to vector<8x128xf32>
    %313 = arith.mulf %312, %311 : vector<8x128xf32>
    %cst_113 = arith.constant 5.000000e-01 : f32
    %314 = vector.broadcast %cst_113 : f32 to vector<8x128xf32>
    %315 = arith.addf %313, %314 : vector<8x128xf32>
    %316 = arith.mulf %305, %279 : vector<8x128xf32>
    %317 = arith.mulf %297, %307 : vector<8x128xf32>
    %318 = arith.addf %316, %317 : vector<8x128xf32>
    %319 = math.tanh %318 : vector<8x128xf32>
    %320 = arith.mulf %315, %319 : vector<8x128xf32>
    %321 = arith.index_cast %285 : i32 to index
    %c0_114 = arith.constant 0 : index
    %322 = vector.load %arg12[%321, %c0_114] : memref<64x128xf32, #tpu.memory_space<vmem>>, vector<8x128xf32>
    tpu.vector_store %arg12[%321, %c0_114], %320 {strides = array<i32>} : memref<64x128xf32, #tpu.memory_space<vmem>>, vector<8x128xf32>,
    %c8_i32_115 = arith.constant 8 : i32
    %c0_116 = arith.constant 0 : index
    %c0_117 = arith.constant 0 : index
    %323 = vector.load %arg5[%c0_116, %c0_117] : memref<128x512xf32, #tpu.memory_space<vmem>>, vector<128x512xf32>
    %c0_118 = arith.constant 0 : index
    %c0_119 = arith.constant 0 : index
    %324 = vector.load %arg6[%c0_118, %c0_119] : memref<128x512xf32, #tpu.memory_space<vmem>>, vector<128x512xf32>
    %c0_120 = arith.constant 0 : index
    %c0_121 = arith.constant 0 : index
    %325 = vector.load %arg7[%c0_120, %c0_121] : memref<1x512xf32, #tpu.memory_space<vmem>>, vector<1x512xf32>
    %c0_122 = arith.constant 0 : index
    %c0_123 = arith.constant 0 : index
    %326 = vector.load %arg12[%c0_122, %c0_123] : memref<64x128xf32, #tpu.memory_space<vmem>>, vector<64x128xf32>
    %cst_124 = arith.constant dense<0.000000e+00> : vector<64x512xf32>
    %327 = tpu.matmul %326, %323, %cst_124 {dimension_numbers = #tpu.dot_dimension_numbers<[1], [0], [0], [1], [0, 0, 1, 1], [], []>} : vector<64x128xf32>, vector<128x512xf32>, vector<64x512xf32> -> vector<64x512xf32>
    %328 = vector.broadcast %325 : vector<1x512xf32> to vector<64x512xf32>
    %329 = arith.addf %327, %328 : vector<64x512xf32>
    %c0_125 = arith.constant 0 : index
    %c0_126 = arith.constant 0 : index
    %330 = vector.load %arg11[%c0_125, %c0_126] : memref<64x512xf32, #tpu.memory_space<vmem>>, vector<64x512xf32>
    tpu.vector_store %arg11[%c0_125, %c0_126], %329 {strides = array<i32>} : memref<64x512xf32, #tpu.memory_space<vmem>>, vector<64x512xf32>,
    %cst_127 = arith.constant 0.000000e+00 : f32
    %331 = vector.broadcast %cst_127 : f32 to vector<8x128xf32>
    %cst_128 = arith.constant 0.000000e+00 : f32
    %332 = vector.broadcast %cst_128 : f32 to vector<8x128xf32>
    %c0_i32_129 = arith.constant 0 : i32
    %c8_i32_130 = arith.constant 8 : i32
    %333 = arith.muli %c0_i32_129, %c8_i32_130 : i32
    %334 = tpu.assume_multiple %333, 8 : i32
    %335 = arith.index_cast %334 : i32 to index
    %c0_131 = arith.constant 0 : index
    %336 = vector.load %arg11[%335, %c0_131] : memref<64x512xf32, #tpu.memory_space<vmem>>, vector<8x512xf32>
    %cst_132 = arith.constant dense<0.000000e+00> : vector<8x512xf32>
    %337 = tpu.matmul %331, %324, %cst_132 {dimension_numbers = #tpu.dot_dimension_numbers<[1], [0], [0], [1], [0, 0, 1, 1], [], []>} : vector<8x128xf32>, vector<128x512xf32>, vector<8x512xf32> -> vector<8x512xf32>
    %338 = arith.addf %336, %337 : vector<8x512xf32>
    %339 = vector.extract_strided_slice %338 {offsets = [0, 0], sizes = [8, 128], strides = [1, 1]} : vector<8x512xf32> to vector<8x128xf32>
    %cst_133 = arith.constant 5.000000e-01 : f32
    %340 = vector.broadcast %cst_133 : f32 to vector<8x128xf32>
    %341 = arith.mulf %340, %339 : vector<8x128xf32>
    %342 = math.tanh %341 : vector<8x128xf32>
    %cst_134 = arith.constant 5.000000e-01 : f32
    %343 = vector.broadcast %cst_134 : f32 to vector<8x128xf32>
    %344 = arith.mulf %343, %342 : vector<8x128xf32>
    %cst_135 = arith.constant 5.000000e-01 : f32
    %345 = vector.broadcast %cst_135 : f32 to vector<8x128xf32>
    %346 = arith.addf %344, %345 : vector<8x128xf32>
    %347 = vector.extract_strided_slice %338 {offsets = [0, 128], sizes = [8, 128], strides = [1, 1]} : vector<8x512xf32> to vector<8x128xf32>
    %cst_136 = arith.constant 5.000000e-01 : f32
    %348 = vector.broadcast %cst_136 : f32 to vector<8x128xf32>
    %349 = arith.mulf %348, %347 : vector<8x128xf32>
    %350 = math.tanh %349 : vector<8x128xf32>
    %cst_137 = arith.constant 5.000000e-01 : f32
    %351 = vector.broadcast %cst_137 : f32 to vector<8x128xf32>
    %352 = arith.mulf %351, %350 : vector<8x128xf32>
    %cst_138 = arith.constant 5.000000e-01 : f32
    %353 = vector.broadcast %cst_138 : f32 to vector<8x128xf32>
    %354 = arith.addf %352, %353 : vector<8x128xf32>
    %355 = vector.extract_strided_slice %338 {offsets = [0, 256], sizes = [8, 128], strides = [1, 1]} : vector<8x512xf32> to vector<8x128xf32>
    %356 = math.tanh %355 : vector<8x128xf32>
    %357 = vector.extract_strided_slice %338 {offsets = [0, 384], sizes = [8, 128], strides = [1, 1]} : vector<8x512xf32> to vector<8x128xf32>
    %cst_139 = arith.constant 5.000000e-01 : f32
    %358 = vector.broadcast %cst_139 : f32 to vector<8x128xf32>
    %359 = arith.mulf %358, %357 : vector<8x128xf32>
    %360 = math.tanh %359 : vector<8x128xf32>
    %cst_140 = arith.constant 5.000000e-01 : f32
    %361 = vector.broadcast %cst_140 : f32 to vector<8x128xf32>
    %362 = arith.mulf %361, %360 : vector<8x128xf32>
    %cst_141 = arith.constant 5.000000e-01 : f32
    %363 = vector.broadcast %cst_141 : f32 to vector<8x128xf32>
    %364 = arith.addf %362, %363 : vector<8x128xf32>
    %365 = arith.mulf %354, %332 : vector<8x128xf32>
    %366 = arith.mulf %346, %356 : vector<8x128xf32>
    %367 = arith.addf %365, %366 : vector<8x128xf32>
    %368 = math.tanh %367 : vector<8x128xf32>
    %369 = arith.mulf %364, %368 : vector<8x128xf32>
    %c1_i32_142 = arith.constant 1 : i32
    %c8_i32_143 = arith.constant 8 : i32
    %370 = arith.muli %c1_i32_142, %c8_i32_143 : i32
    %371 = tpu.assume_multiple %370, 8 : i32
    %372 = arith.index_cast %371 : i32 to index
    %c0_144 = arith.constant 0 : index
    %373 = vector.load %arg11[%372, %c0_144] : memref<64x512xf32, #tpu.memory_space<vmem>>, vector<8x512xf32>
    %cst_145 = arith.constant dense<0.000000e+00> : vector<8x512xf32>
    %374 = tpu.matmul %369, %324, %cst_145 {dimension_numbers = #tpu.dot_dimension_numbers<[1], [0], [0], [1], [0, 0, 1, 1], [], []>} : vector<8x128xf32>, vector<128x512xf32>, vector<8x512xf32> -> vector<8x512xf32>
    %375 = arith.addf %373, %374 : vector<8x512xf32>
    %376 = vector.extract_strided_slice %375 {offsets = [0, 0], sizes = [8, 128], strides = [1, 1]} : vector<8x512xf32> to vector<8x128xf32>
    %cst_146 = arith.constant 5.000000e-01 : f32
    %377 = vector.broadcast %cst_146 : f32 to vector<8x128xf32>
    %378 = arith.mulf %377, %376 : vector<8x128xf32>
    %379 = math.tanh %378 : vector<8x128xf32>
    %cst_147 = arith.constant 5.000000e-01 : f32
    %380 = vector.broadcast %cst_147 : f32 to vector<8x128xf32>
    %381 = arith.mulf %380, %379 : vector<8x128xf32>
    %cst_148 = arith.constant 5.000000e-01 : f32
    %382 = vector.broadcast %cst_148 : f32 to vector<8x128xf32>
    %383 = arith.addf %381, %382 : vector<8x128xf32>
    %384 = vector.extract_strided_slice %375 {offsets = [0, 128], sizes = [8, 128], strides = [1, 1]} : vector<8x512xf32> to vector<8x128xf32>
    %cst_149 = arith.constant 5.000000e-01 : f32
    %385 = vector.broadcast %cst_149 : f32 to vector<8x128xf32>
    %386 = arith.mulf %385, %384 : vector<8x128xf32>
    %387 = math.tanh %386 : vector<8x128xf32>
    %cst_150 = arith.constant 5.000000e-01 : f32
    %388 = vector.broadcast %cst_150 : f32 to vector<8x128xf32>
    %389 = arith.mulf %388, %387 : vector<8x128xf32>
    %cst_151 = arith.constant 5.000000e-01 : f32
    %390 = vector.broadcast %cst_151 : f32 to vector<8x128xf32>
    %391 = arith.addf %389, %390 : vector<8x128xf32>
    %392 = vector.extract_strided_slice %375 {offsets = [0, 256], sizes = [8, 128], strides = [1, 1]} : vector<8x512xf32> to vector<8x128xf32>
    %393 = math.tanh %392 : vector<8x128xf32>
    %394 = vector.extract_strided_slice %375 {offsets = [0, 384], sizes = [8, 128], strides = [1, 1]} : vector<8x512xf32> to vector<8x128xf32>
    %cst_152 = arith.constant 5.000000e-01 : f32
    %395 = vector.broadcast %cst_152 : f32 to vector<8x128xf32>
    %396 = arith.mulf %395, %394 : vector<8x128xf32>
    %397 = math.tanh %396 : vector<8x128xf32>
    %cst_153 = arith.constant 5.000000e-01 : f32
    %398 = vector.broadcast %cst_153 : f32 to vector<8x128xf32>
    %399 = arith.mulf %398, %397 : vector<8x128xf32>
    %cst_154 = arith.constant 5.000000e-01 : f32
    %400 = vector.broadcast %cst_154 : f32 to vector<8x128xf32>
    %401 = arith.addf %399, %400 : vector<8x128xf32>
    %402 = arith.mulf %391, %367 : vector<8x128xf32>
    %403 = arith.mulf %383, %393 : vector<8x128xf32>
    %404 = arith.addf %402, %403 : vector<8x128xf32>
    %405 = math.tanh %404 : vector<8x128xf32>
    %406 = arith.mulf %401, %405 : vector<8x128xf32>
    %c2_i32_155 = arith.constant 2 : i32
    %c8_i32_156 = arith.constant 8 : i32
    %407 = arith.muli %c2_i32_155, %c8_i32_156 : i32
    %408 = tpu.assume_multiple %407, 8 : i32
    %409 = arith.index_cast %408 : i32 to index
    %c0_157 = arith.constant 0 : index
    %410 = vector.load %arg11[%409, %c0_157] : memref<64x512xf32, #tpu.memory_space<vmem>>, vector<8x512xf32>
    %cst_158 = arith.constant dense<0.000000e+00> : vector<8x512xf32>
    %411 = tpu.matmul %406, %324, %cst_158 {dimension_numbers = #tpu.dot_dimension_numbers<[1], [0], [0], [1], [0, 0, 1, 1], [], []>} : vector<8x128xf32>, vector<128x512xf32>, vector<8x512xf32> -> vector<8x512xf32>
    %412 = arith.addf %410, %411 : vector<8x512xf32>
    %413 = vector.extract_strided_slice %412 {offsets = [0, 0], sizes = [8, 128], strides = [1, 1]} : vector<8x512xf32> to vector<8x128xf32>
    %cst_159 = arith.constant 5.000000e-01 : f32
    %414 = vector.broadcast %cst_159 : f32 to vector<8x128xf32>
    %415 = arith.mulf %414, %413 : vector<8x128xf32>
    %416 = math.tanh %415 : vector<8x128xf32>
    %cst_160 = arith.constant 5.000000e-01 : f32
    %417 = vector.broadcast %cst_160 : f32 to vector<8x128xf32>
    %418 = arith.mulf %417, %416 : vector<8x128xf32>
    %cst_161 = arith.constant 5.000000e-01 : f32
    %419 = vector.broadcast %cst_161 : f32 to vector<8x128xf32>
    %420 = arith.addf %418, %419 : vector<8x128xf32>
    %421 = vector.extract_strided_slice %412 {offsets = [0, 128], sizes = [8, 128], strides = [1, 1]} : vector<8x512xf32> to vector<8x128xf32>
    %cst_162 = arith.constant 5.000000e-01 : f32
    %422 = vector.broadcast %cst_162 : f32 to vector<8x128xf32>
    %423 = arith.mulf %422, %421 : vector<8x128xf32>
    %424 = math.tanh %423 : vector<8x128xf32>
    %cst_163 = arith.constant 5.000000e-01 : f32
    %425 = vector.broadcast %cst_163 : f32 to vector<8x128xf32>
    %426 = arith.mulf %425, %424 : vector<8x128xf32>
    %cst_164 = arith.constant 5.000000e-01 : f32
    %427 = vector.broadcast %cst_164 : f32 to vector<8x128xf32>
    %428 = arith.addf %426, %427 : vector<8x128xf32>
    %429 = vector.extract_strided_slice %412 {offsets = [0, 256], sizes = [8, 128], strides = [1, 1]} : vector<8x512xf32> to vector<8x128xf32>
    %430 = math.tanh %429 : vector<8x128xf32>
    %431 = vector.extract_strided_slice %412 {offsets = [0, 384], sizes = [8, 128], strides = [1, 1]} : vector<8x512xf32> to vector<8x128xf32>
    %cst_165 = arith.constant 5.000000e-01 : f32
    %432 = vector.broadcast %cst_165 : f32 to vector<8x128xf32>
    %433 = arith.mulf %432, %431 : vector<8x128xf32>
    %434 = math.tanh %433 : vector<8x128xf32>
    %cst_166 = arith.constant 5.000000e-01 : f32
    %435 = vector.broadcast %cst_166 : f32 to vector<8x128xf32>
    %436 = arith.mulf %435, %434 : vector<8x128xf32>
    %cst_167 = arith.constant 5.000000e-01 : f32
    %437 = vector.broadcast %cst_167 : f32 to vector<8x128xf32>
    %438 = arith.addf %436, %437 : vector<8x128xf32>
    %439 = arith.mulf %428, %404 : vector<8x128xf32>
    %440 = arith.mulf %420, %430 : vector<8x128xf32>
    %441 = arith.addf %439, %440 : vector<8x128xf32>
    %442 = math.tanh %441 : vector<8x128xf32>
    %443 = arith.mulf %438, %442 : vector<8x128xf32>
    %c3_i32_168 = arith.constant 3 : i32
    %c8_i32_169 = arith.constant 8 : i32
    %444 = arith.muli %c3_i32_168, %c8_i32_169 : i32
    %445 = tpu.assume_multiple %444, 8 : i32
    %446 = arith.index_cast %445 : i32 to index
    %c0_170 = arith.constant 0 : index
    %447 = vector.load %arg11[%446, %c0_170] : memref<64x512xf32, #tpu.memory_space<vmem>>, vector<8x512xf32>
    %cst_171 = arith.constant dense<0.000000e+00> : vector<8x512xf32>
    %448 = tpu.matmul %443, %324, %cst_171 {dimension_numbers = #tpu.dot_dimension_numbers<[1], [0], [0], [1], [0, 0, 1, 1], [], []>} : vector<8x128xf32>, vector<128x512xf32>, vector<8x512xf32> -> vector<8x512xf32>
    %449 = arith.addf %447, %448 : vector<8x512xf32>
    %450 = vector.extract_strided_slice %449 {offsets = [0, 0], sizes = [8, 128], strides = [1, 1]} : vector<8x512xf32> to vector<8x128xf32>
    %cst_172 = arith.constant 5.000000e-01 : f32
    %451 = vector.broadcast %cst_172 : f32 to vector<8x128xf32>
    %452 = arith.mulf %451, %450 : vector<8x128xf32>
    %453 = math.tanh %452 : vector<8x128xf32>
    %cst_173 = arith.constant 5.000000e-01 : f32
    %454 = vector.broadcast %cst_173 : f32 to vector<8x128xf32>
    %455 = arith.mulf %454, %453 : vector<8x128xf32>
    %cst_174 = arith.constant 5.000000e-01 : f32
    %456 = vector.broadcast %cst_174 : f32 to vector<8x128xf32>
    %457 = arith.addf %455, %456 : vector<8x128xf32>
    %458 = vector.extract_strided_slice %449 {offsets = [0, 128], sizes = [8, 128], strides = [1, 1]} : vector<8x512xf32> to vector<8x128xf32>
    %cst_175 = arith.constant 5.000000e-01 : f32
    %459 = vector.broadcast %cst_175 : f32 to vector<8x128xf32>
    %460 = arith.mulf %459, %458 : vector<8x128xf32>
    %461 = math.tanh %460 : vector<8x128xf32>
    %cst_176 = arith.constant 5.000000e-01 : f32
    %462 = vector.broadcast %cst_176 : f32 to vector<8x128xf32>
    %463 = arith.mulf %462, %461 : vector<8x128xf32>
    %cst_177 = arith.constant 5.000000e-01 : f32
    %464 = vector.broadcast %cst_177 : f32 to vector<8x128xf32>
    %465 = arith.addf %463, %464 : vector<8x128xf32>
    %466 = vector.extract_strided_slice %449 {offsets = [0, 256], sizes = [8, 128], strides = [1, 1]} : vector<8x512xf32> to vector<8x128xf32>
    %467 = math.tanh %466 : vector<8x128xf32>
    %468 = vector.extract_strided_slice %449 {offsets = [0, 384], sizes = [8, 128], strides = [1, 1]} : vector<8x512xf32> to vector<8x128xf32>
    %cst_178 = arith.constant 5.000000e-01 : f32
    %469 = vector.broadcast %cst_178 : f32 to vector<8x128xf32>
    %470 = arith.mulf %469, %468 : vector<8x128xf32>
    %471 = math.tanh %470 : vector<8x128xf32>
    %cst_179 = arith.constant 5.000000e-01 : f32
    %472 = vector.broadcast %cst_179 : f32 to vector<8x128xf32>
    %473 = arith.mulf %472, %471 : vector<8x128xf32>
    %cst_180 = arith.constant 5.000000e-01 : f32
    %474 = vector.broadcast %cst_180 : f32 to vector<8x128xf32>
    %475 = arith.addf %473, %474 : vector<8x128xf32>
    %476 = arith.mulf %465, %441 : vector<8x128xf32>
    %477 = arith.mulf %457, %467 : vector<8x128xf32>
    %478 = arith.addf %476, %477 : vector<8x128xf32>
    %479 = math.tanh %478 : vector<8x128xf32>
    %480 = arith.mulf %475, %479 : vector<8x128xf32>
    %c4_i32_181 = arith.constant 4 : i32
    %c8_i32_182 = arith.constant 8 : i32
    %481 = arith.muli %c4_i32_181, %c8_i32_182 : i32
    %482 = tpu.assume_multiple %481, 8 : i32
    %483 = arith.index_cast %482 : i32 to index
    %c0_183 = arith.constant 0 : index
    %484 = vector.load %arg11[%483, %c0_183] : memref<64x512xf32, #tpu.memory_space<vmem>>, vector<8x512xf32>
    %cst_184 = arith.constant dense<0.000000e+00> : vector<8x512xf32>
    %485 = tpu.matmul %480, %324, %cst_184 {dimension_numbers = #tpu.dot_dimension_numbers<[1], [0], [0], [1], [0, 0, 1, 1], [], []>} : vector<8x128xf32>, vector<128x512xf32>, vector<8x512xf32> -> vector<8x512xf32>
    %486 = arith.addf %484, %485 : vector<8x512xf32>
    %487 = vector.extract_strided_slice %486 {offsets = [0, 0], sizes = [8, 128], strides = [1, 1]} : vector<8x512xf32> to vector<8x128xf32>
    %cst_185 = arith.constant 5.000000e-01 : f32
    %488 = vector.broadcast %cst_185 : f32 to vector<8x128xf32>
    %489 = arith.mulf %488, %487 : vector<8x128xf32>
    %490 = math.tanh %489 : vector<8x128xf32>
    %cst_186 = arith.constant 5.000000e-01 : f32
    %491 = vector.broadcast %cst_186 : f32 to vector<8x128xf32>
    %492 = arith.mulf %491, %490 : vector<8x128xf32>
    %cst_187 = arith.constant 5.000000e-01 : f32
    %493 = vector.broadcast %cst_187 : f32 to vector<8x128xf32>
    %494 = arith.addf %492, %493 : vector<8x128xf32>
    %495 = vector.extract_strided_slice %486 {offsets = [0, 128], sizes = [8, 128], strides = [1, 1]} : vector<8x512xf32> to vector<8x128xf32>
    %cst_188 = arith.constant 5.000000e-01 : f32
    %496 = vector.broadcast %cst_188 : f32 to vector<8x128xf32>
    %497 = arith.mulf %496, %495 : vector<8x128xf32>
    %498 = math.tanh %497 : vector<8x128xf32>
    %cst_189 = arith.constant 5.000000e-01 : f32
    %499 = vector.broadcast %cst_189 : f32 to vector<8x128xf32>
    %500 = arith.mulf %499, %498 : vector<8x128xf32>
    %cst_190 = arith.constant 5.000000e-01 : f32
    %501 = vector.broadcast %cst_190 : f32 to vector<8x128xf32>
    %502 = arith.addf %500, %501 : vector<8x128xf32>
    %503 = vector.extract_strided_slice %486 {offsets = [0, 256], sizes = [8, 128], strides = [1, 1]} : vector<8x512xf32> to vector<8x128xf32>
    %504 = math.tanh %503 : vector<8x128xf32>
    %505 = vector.extract_strided_slice %486 {offsets = [0, 384], sizes = [8, 128], strides = [1, 1]} : vector<8x512xf32> to vector<8x128xf32>
    %cst_191 = arith.constant 5.000000e-01 : f32
    %506 = vector.broadcast %cst_191 : f32 to vector<8x128xf32>
    %507 = arith.mulf %506, %505 : vector<8x128xf32>
    %508 = math.tanh %507 : vector<8x128xf32>
    %cst_192 = arith.constant 5.000000e-01 : f32
    %509 = vector.broadcast %cst_192 : f32 to vector<8x128xf32>
    %510 = arith.mulf %509, %508 : vector<8x128xf32>
    %cst_193 = arith.constant 5.000000e-01 : f32
    %511 = vector.broadcast %cst_193 : f32 to vector<8x128xf32>
    %512 = arith.addf %510, %511 : vector<8x128xf32>
    %513 = arith.mulf %502, %478 : vector<8x128xf32>
    %514 = arith.mulf %494, %504 : vector<8x128xf32>
    %515 = arith.addf %513, %514 : vector<8x128xf32>
    %516 = math.tanh %515 : vector<8x128xf32>
    %517 = arith.mulf %512, %516 : vector<8x128xf32>
    %c5_i32_194 = arith.constant 5 : i32
    %c8_i32_195 = arith.constant 8 : i32
    %518 = arith.muli %c5_i32_194, %c8_i32_195 : i32
    %519 = tpu.assume_multiple %518, 8 : i32
    %520 = arith.index_cast %519 : i32 to index
    %c0_196 = arith.constant 0 : index
    %521 = vector.load %arg11[%520, %c0_196] : memref<64x512xf32, #tpu.memory_space<vmem>>, vector<8x512xf32>
    %cst_197 = arith.constant dense<0.000000e+00> : vector<8x512xf32>
    %522 = tpu.matmul %517, %324, %cst_197 {dimension_numbers = #tpu.dot_dimension_numbers<[1], [0], [0], [1], [0, 0, 1, 1], [], []>} : vector<8x128xf32>, vector<128x512xf32>, vector<8x512xf32> -> vector<8x512xf32>
    %523 = arith.addf %521, %522 : vector<8x512xf32>
    %524 = vector.extract_strided_slice %523 {offsets = [0, 0], sizes = [8, 128], strides = [1, 1]} : vector<8x512xf32> to vector<8x128xf32>
    %cst_198 = arith.constant 5.000000e-01 : f32
    %525 = vector.broadcast %cst_198 : f32 to vector<8x128xf32>
    %526 = arith.mulf %525, %524 : vector<8x128xf32>
    %527 = math.tanh %526 : vector<8x128xf32>
    %cst_199 = arith.constant 5.000000e-01 : f32
    %528 = vector.broadcast %cst_199 : f32 to vector<8x128xf32>
    %529 = arith.mulf %528, %527 : vector<8x128xf32>
    %cst_200 = arith.constant 5.000000e-01 : f32
    %530 = vector.broadcast %cst_200 : f32 to vector<8x128xf32>
    %531 = arith.addf %529, %530 : vector<8x128xf32>
    %532 = vector.extract_strided_slice %523 {offsets = [0, 128], sizes = [8, 128], strides = [1, 1]} : vector<8x512xf32> to vector<8x128xf32>
    %cst_201 = arith.constant 5.000000e-01 : f32
    %533 = vector.broadcast %cst_201 : f32 to vector<8x128xf32>
    %534 = arith.mulf %533, %532 : vector<8x128xf32>
    %535 = math.tanh %534 : vector<8x128xf32>
    %cst_202 = arith.constant 5.000000e-01 : f32
    %536 = vector.broadcast %cst_202 : f32 to vector<8x128xf32>
    %537 = arith.mulf %536, %535 : vector<8x128xf32>
    %cst_203 = arith.constant 5.000000e-01 : f32
    %538 = vector.broadcast %cst_203 : f32 to vector<8x128xf32>
    %539 = arith.addf %537, %538 : vector<8x128xf32>
    %540 = vector.extract_strided_slice %523 {offsets = [0, 256], sizes = [8, 128], strides = [1, 1]} : vector<8x512xf32> to vector<8x128xf32>
    %541 = math.tanh %540 : vector<8x128xf32>
    %542 = vector.extract_strided_slice %523 {offsets = [0, 384], sizes = [8, 128], strides = [1, 1]} : vector<8x512xf32> to vector<8x128xf32>
    %cst_204 = arith.constant 5.000000e-01 : f32
    %543 = vector.broadcast %cst_204 : f32 to vector<8x128xf32>
    %544 = arith.mulf %543, %542 : vector<8x128xf32>
    %545 = math.tanh %544 : vector<8x128xf32>
    %cst_205 = arith.constant 5.000000e-01 : f32
    %546 = vector.broadcast %cst_205 : f32 to vector<8x128xf32>
    %547 = arith.mulf %546, %545 : vector<8x128xf32>
    %cst_206 = arith.constant 5.000000e-01 : f32
    %548 = vector.broadcast %cst_206 : f32 to vector<8x128xf32>
    %549 = arith.addf %547, %548 : vector<8x128xf32>
    %550 = arith.mulf %539, %515 : vector<8x128xf32>
    %551 = arith.mulf %531, %541 : vector<8x128xf32>
    %552 = arith.addf %550, %551 : vector<8x128xf32>
    %553 = math.tanh %552 : vector<8x128xf32>
    %554 = arith.mulf %549, %553 : vector<8x128xf32>
    %c6_i32_207 = arith.constant 6 : i32
    %c8_i32_208 = arith.constant 8 : i32
    %555 = arith.muli %c6_i32_207, %c8_i32_208 : i32
    %556 = tpu.assume_multiple %555, 8 : i32
    %557 = arith.index_cast %556 : i32 to index
    %c0_209 = arith.constant 0 : index
    %558 = vector.load %arg11[%557, %c0_209] : memref<64x512xf32, #tpu.memory_space<vmem>>, vector<8x512xf32>
    %cst_210 = arith.constant dense<0.000000e+00> : vector<8x512xf32>
    %559 = tpu.matmul %554, %324, %cst_210 {dimension_numbers = #tpu.dot_dimension_numbers<[1], [0], [0], [1], [0, 0, 1, 1], [], []>} : vector<8x128xf32>, vector<128x512xf32>, vector<8x512xf32> -> vector<8x512xf32>
    %560 = arith.addf %558, %559 : vector<8x512xf32>
    %561 = vector.extract_strided_slice %560 {offsets = [0, 0], sizes = [8, 128], strides = [1, 1]} : vector<8x512xf32> to vector<8x128xf32>
    %cst_211 = arith.constant 5.000000e-01 : f32
    %562 = vector.broadcast %cst_211 : f32 to vector<8x128xf32>
    %563 = arith.mulf %562, %561 : vector<8x128xf32>
    %564 = math.tanh %563 : vector<8x128xf32>
    %cst_212 = arith.constant 5.000000e-01 : f32
    %565 = vector.broadcast %cst_212 : f32 to vector<8x128xf32>
    %566 = arith.mulf %565, %564 : vector<8x128xf32>
    %cst_213 = arith.constant 5.000000e-01 : f32
    %567 = vector.broadcast %cst_213 : f32 to vector<8x128xf32>
    %568 = arith.addf %566, %567 : vector<8x128xf32>
    %569 = vector.extract_strided_slice %560 {offsets = [0, 128], sizes = [8, 128], strides = [1, 1]} : vector<8x512xf32> to vector<8x128xf32>
    %cst_214 = arith.constant 5.000000e-01 : f32
    %570 = vector.broadcast %cst_214 : f32 to vector<8x128xf32>
    %571 = arith.mulf %570, %569 : vector<8x128xf32>
    %572 = math.tanh %571 : vector<8x128xf32>
    %cst_215 = arith.constant 5.000000e-01 : f32
    %573 = vector.broadcast %cst_215 : f32 to vector<8x128xf32>
    %574 = arith.mulf %573, %572 : vector<8x128xf32>
    %cst_216 = arith.constant 5.000000e-01 : f32
    %575 = vector.broadcast %cst_216 : f32 to vector<8x128xf32>
    %576 = arith.addf %574, %575 : vector<8x128xf32>
    %577 = vector.extract_strided_slice %560 {offsets = [0, 256], sizes = [8, 128], strides = [1, 1]} : vector<8x512xf32> to vector<8x128xf32>
    %578 = math.tanh %577 : vector<8x128xf32>
    %579 = vector.extract_strided_slice %560 {offsets = [0, 384], sizes = [8, 128], strides = [1, 1]} : vector<8x512xf32> to vector<8x128xf32>
    %cst_217 = arith.constant 5.000000e-01 : f32
    %580 = vector.broadcast %cst_217 : f32 to vector<8x128xf32>
    %581 = arith.mulf %580, %579 : vector<8x128xf32>
    %582 = math.tanh %581 : vector<8x128xf32>
    %cst_218 = arith.constant 5.000000e-01 : f32
    %583 = vector.broadcast %cst_218 : f32 to vector<8x128xf32>
    %584 = arith.mulf %583, %582 : vector<8x128xf32>
    %cst_219 = arith.constant 5.000000e-01 : f32
    %585 = vector.broadcast %cst_219 : f32 to vector<8x128xf32>
    %586 = arith.addf %584, %585 : vector<8x128xf32>
    %587 = arith.mulf %576, %552 : vector<8x128xf32>
    %588 = arith.mulf %568, %578 : vector<8x128xf32>
    %589 = arith.addf %587, %588 : vector<8x128xf32>
    %590 = math.tanh %589 : vector<8x128xf32>
    %591 = arith.mulf %586, %590 : vector<8x128xf32>
    %c7_i32_220 = arith.constant 7 : i32
    %c8_i32_221 = arith.constant 8 : i32
    %592 = arith.muli %c7_i32_220, %c8_i32_221 : i32
    %593 = tpu.assume_multiple %592, 8 : i32
    %594 = arith.index_cast %593 : i32 to index
    %c0_222 = arith.constant 0 : index
    %595 = vector.load %arg11[%594, %c0_222] : memref<64x512xf32, #tpu.memory_space<vmem>>, vector<8x512xf32>
    %cst_223 = arith.constant dense<0.000000e+00> : vector<8x512xf32>
    %596 = tpu.matmul %591, %324, %cst_223 {dimension_numbers = #tpu.dot_dimension_numbers<[1], [0], [0], [1], [0, 0, 1, 1], [], []>} : vector<8x128xf32>, vector<128x512xf32>, vector<8x512xf32> -> vector<8x512xf32>
    %597 = arith.addf %595, %596 : vector<8x512xf32>
    %598 = vector.extract_strided_slice %597 {offsets = [0, 0], sizes = [8, 128], strides = [1, 1]} : vector<8x512xf32> to vector<8x128xf32>
    %cst_224 = arith.constant 5.000000e-01 : f32
    %599 = vector.broadcast %cst_224 : f32 to vector<8x128xf32>
    %600 = arith.mulf %599, %598 : vector<8x128xf32>
    %601 = math.tanh %600 : vector<8x128xf32>
    %cst_225 = arith.constant 5.000000e-01 : f32
    %602 = vector.broadcast %cst_225 : f32 to vector<8x128xf32>
    %603 = arith.mulf %602, %601 : vector<8x128xf32>
    %cst_226 = arith.constant 5.000000e-01 : f32
    %604 = vector.broadcast %cst_226 : f32 to vector<8x128xf32>
    %605 = arith.addf %603, %604 : vector<8x128xf32>
    %606 = vector.extract_strided_slice %597 {offsets = [0, 128], sizes = [8, 128], strides = [1, 1]} : vector<8x512xf32> to vector<8x128xf32>
    %cst_227 = arith.constant 5.000000e-01 : f32
    %607 = vector.broadcast %cst_227 : f32 to vector<8x128xf32>
    %608 = arith.mulf %607, %606 : vector<8x128xf32>
    %609 = math.tanh %608 : vector<8x128xf32>
    %cst_228 = arith.constant 5.000000e-01 : f32
    %610 = vector.broadcast %cst_228 : f32 to vector<8x128xf32>
    %611 = arith.mulf %610, %609 : vector<8x128xf32>
    %cst_229 = arith.constant 5.000000e-01 : f32
    %612 = vector.broadcast %cst_229 : f32 to vector<8x128xf32>
    %613 = arith.addf %611, %612 : vector<8x128xf32>
    %614 = vector.extract_strided_slice %597 {offsets = [0, 256], sizes = [8, 128], strides = [1, 1]} : vector<8x512xf32> to vector<8x128xf32>
    %615 = math.tanh %614 : vector<8x128xf32>
    %616 = vector.extract_strided_slice %597 {offsets = [0, 384], sizes = [8, 128], strides = [1, 1]} : vector<8x512xf32> to vector<8x128xf32>
    %cst_230 = arith.constant 5.000000e-01 : f32
    %617 = vector.broadcast %cst_230 : f32 to vector<8x128xf32>
    %618 = arith.mulf %617, %616 : vector<8x128xf32>
    %619 = math.tanh %618 : vector<8x128xf32>
    %cst_231 = arith.constant 5.000000e-01 : f32
    %620 = vector.broadcast %cst_231 : f32 to vector<8x128xf32>
    %621 = arith.mulf %620, %619 : vector<8x128xf32>
    %cst_232 = arith.constant 5.000000e-01 : f32
    %622 = vector.broadcast %cst_232 : f32 to vector<8x128xf32>
    %623 = arith.addf %621, %622 : vector<8x128xf32>
    %624 = arith.mulf %613, %589 : vector<8x128xf32>
    %625 = arith.mulf %605, %615 : vector<8x128xf32>
    %626 = arith.addf %624, %625 : vector<8x128xf32>
    %627 = math.tanh %626 : vector<8x128xf32>
    %628 = arith.mulf %623, %627 : vector<8x128xf32>
    %c8_i32_233 = arith.constant 8 : i32
    %c0_234 = arith.constant 0 : index
    %c0_235 = arith.constant 0 : index
    %629 = vector.load %arg8[%c0_234, %c0_235] : memref<128x1xf32, #tpu.memory_space<vmem>>, vector<128x1xf32>
    %c0_236 = arith.constant 0 : index
    %c0_237 = arith.constant 0 : index
    %630 = vector.load %arg9[%c0_236, %c0_237] : memref<1x1xf32, #tpu.memory_space<vmem>>, vector<1x1xf32>
    %cst_238 = arith.constant dense<0.000000e+00> : vector<8x1xf32>
    %631 = tpu.matmul %628, %629, %cst_238 {dimension_numbers = #tpu.dot_dimension_numbers<[1], [0], [0], [1], [0, 0, 1, 1], [], []>} : vector<8x128xf32>, vector<128x1xf32>, vector<8x1xf32> -> vector<8x1xf32>
    %632 = vector.broadcast %630 : vector<1x1xf32> to vector<8x1xf32>
    %633 = arith.addf %631, %632 : vector<8x1xf32>
    %c0_239 = arith.constant 0 : index
    %c0_240 = arith.constant 0 : index
    %634 = vector.load %arg10[%c0_239, %c0_240] : memref<8x1xf32, #tpu.memory_space<vmem>>, vector<8x1xf32>
    tpu.vector_store %arg10[%c0_239, %c0_240], %633 {strides = array<i32>} : memref<8x1xf32, #tpu.memory_space<vmem>>, vector<8x1xf32>,
    return
  }
  func.func @transform_0(%arg0: i32) -> (i32, i32, i32) {
    %c0_i32 = arith.constant 0 : i32
    %c0_i32_0 = arith.constant 0 : i32
    %c0_i32_1 = arith.constant 0 : i32
    return %arg0, %c0_i32, %c0_i32_0 : i32, i32, i32
  }
  func.func @transform_1(%arg0: i32) -> (i32, i32) {
    %c0_i32 = arith.constant 0 : i32
    %c0_i32_0 = arith.constant 0 : i32
    %c0_i32_1 = arith.constant 0 : i32
    return %c0_i32, %c0_i32_0 : i32, i32
  }
  func.func @transform_2(%arg0: i32) -> (i32, i32) {
    %c0_i32 = arith.constant 0 : i32
    %c0_i32_0 = arith.constant 0 : i32
    %c0_i32_1 = arith.constant 0 : i32
    return %c0_i32, %c0_i32_0 : i32, i32
  }
  func.func @transform_3(%arg0: i32) -> (i32, i32) {
    %c0_i32 = arith.constant 0 : i32
    %c0_i32_0 = arith.constant 0 : i32
    %c0_i32_1 = arith.constant 0 : i32
    return %c0_i32, %c0_i32_0 : i32, i32
  }
  func.func @transform_4(%arg0: i32) -> (i32, i32) {
    %c0_i32 = arith.constant 0 : i32
    %c0_i32_0 = arith.constant 0 : i32
    %c0_i32_1 = arith.constant 0 : i32
    return %c0_i32, %c0_i32_0 : i32, i32
  }
  func.func @transform_5(%arg0: i32) -> (i32, i32) {
    %c0_i32 = arith.constant 0 : i32
    %c0_i32_0 = arith.constant 0 : i32
    %c0_i32_1 = arith.constant 0 : i32
    return %c0_i32, %c0_i32_0 : i32, i32
  }
  func.func @transform_6(%arg0: i32) -> (i32, i32) {
    %c0_i32 = arith.constant 0 : i32
    %c0_i32_0 = arith.constant 0 : i32
    %c0_i32_1 = arith.constant 0 : i32
    return %c0_i32, %c0_i32_0 : i32, i32
  }
  func.func @transform_7(%arg0: i32) -> (i32, i32) {
    %c0_i32 = arith.constant 0 : i32
    %c0_i32_0 = arith.constant 0 : i32
    %c0_i32_1 = arith.constant 0 : i32
    return %c0_i32, %c0_i32_0 : i32, i32
  }
  func.func @transform_8(%arg0: i32) -> (i32, i32) {
    %c0_i32 = arith.constant 0 : i32
    %c0_i32_0 = arith.constant 0 : i32
    %c0_i32_1 = arith.constant 0 : i32
    return %c0_i32, %c0_i32_0 : i32, i32
  }
  func.func @transform_9(%arg0: i32) -> (i32, i32) {
    %c0_i32 = arith.constant 0 : i32
    %c0_i32_0 = arith.constant 0 : i32
    return %arg0, %c0_i32 : i32, i32
  }
}

</mosaic_0001>

<bundles_post_ra>
// kernel: tpu_custom_call.1
= control target key start
LH: loop header
LB: loop body
LE: loop exit
PB: predicated region body
PF: predicated region fallthrough
CT: control target
= control target key end

     0   :  { %s6446_s0 = inlined_call_operand.vmem [shape: f32[1,64,18], index: 0, kind: input, shape index: {}]   ;;  %s6447_s1 = inlined_call_operand.vmem [shape: f32[18,512], index: 1, kind: input, shape index: {}]   ;;  %s6448_s2 = inlined_call_operand.hbm [shape: f32[128,512], index: 2, kind: input, shape index: {}]   ;;  %s6449_s3 = inlined_call_operand.vmem [shape: f32[1,512], index: 3, kind: input, shape index: {}]   ;;  %s6450_s4 = inlined_call_operand.hbm [shape: f32[128,512], index: 4, kind: input, shape index: {}]   ;;  %s6451_s5 = inlined_call_operand.hbm [shape: f32[128,512], index: 5, kind: input, shape index: {}]   ;;  %s6452_s6 = inlined_call_operand.vmem [shape: f32[1,512], index: 6, kind: input, shape index: {}]   ;;  %s6453_s7 = inlined_call_operand.vmem [shape: f32[128,1], index: 7, kind: input, shape index: {}]   ;;  %s6454_s8 = inlined_call_operand.<no memory space> [shape: f32[1,1], index: 8, kind: input, shape index: {}]   ;;  %s6455_s9 = inlined_call_operand.vmem [shape: f32[8,1], index: 9, kind: output, shape index: {}]  }
   0x1   :  { %v14_v0 = vstv %s6454_s8 }
   0x2   :  { %15 = vst [vmem:[#allocation4] sm:$0x1] %v14_v0 }
   0x3   :  { %16 = vsyncpa [#allocation6], 0 }
   0x4   :  { %17 = vsyncpa [#allocation8], 0  ;;  %s5287_s11 = smov [#allocation7]   ;;  %s5288_s13 = smov [#allocation5]  }
   0x5   :  { %s41_s12 = sshll.u32 %s5287_s11, 4  ;;  %s27_s14 = sshll.u32 %s5288_s13, 4  ;;  %s42_s12 = int_to_ptr.vmem [resolvable:$true] %s41_s12  ;;  %s5348_s14 = int_to_ptr.vmem [resolvable:$true] %s27_s14 }
   0x6   :  { %s5217_s17 = scalar_lea.hbm %s6450_s4, 8192 }
   0x7   :  { %p5218_p0 = scmp.ne.s32.totalorder %s6450_s4, %s5217_s17  ;;  %p5221_p1 = scmp.lt.u32.totalorder %s5217_s17, %s6450_s4 }
   0x9   :  { %p5223_p2 = pnand %p5221_p1, %p5218_p0 }
   0xb   :  { %5226 = shalt.err (!%p5223_p2)
}
   0xc   :  { %s5227_s21 = scalar_lea.vmem %s42_s12, 8192  ;;  %p5232_p4 = scmp.lt.s32.totalorder %s42_s12, %s42_s12 }
   0xd   :  { %p5228_p3 = scmp.ne.s32.totalorder %s42_s12, %s5227_s21  ;;  %p5233_p5 = scmp.lt.s32.totalorder %s5227_s21, %s5227_s21 }
   0xf   :  { %p5234_p6 = por %p5233_p5, %p5232_p4 }
  0x11   :  { %p5235_p7 = pnand %p5234_p6, %p5228_p3 }
  0x13   :  { %5238 = shalt.err (!%p5235_p7)
}
  0x14   :  { %s5289_s22 = smov 512   ;;  %s5290_s23 = smov 32  }
  0x15   :  { %47 = dma.hbm_to_vmem [thread:$0]  %s6450_s4, 8192, %s42_s12, [#allocation8], %s5289_s22, %s5289_s22, %s5290_s23  }
  0x16   :  { %s5239_s28 = scalar_lea.hbm %s6448_s2, 8192 }
  0x17   :  { %p5240_p8 = scmp.ne.s32.totalorder %s6448_s2, %s5239_s28  ;;  %p5243_p9 = scmp.lt.u32.totalorder %s5239_s28, %s6448_s2 }
  0x19   :  { %p5245_p10 = pnand %p5243_p9, %p5240_p8 }
  0x1b   :  { %5248 = shalt.err (!%p5245_p10)
}
  0x1c   :  { %s5249_s13 = scalar_lea.vmem %s5348_s14, 8192  ;;  %p5254_p12 = scmp.lt.s32.totalorder %s5348_s14, %s5348_s14 }
  0x1d   :  { %p5250_p11 = scmp.ne.s32.totalorder %s5348_s14, %s5249_s13  ;;  %p5255_p13 = scmp.lt.s32.totalorder %s5249_s13, %s5249_s13 }
  0x1f   :  { %p5256_p0 = por %p5255_p13, %p5254_p12 }
  0x21   :  { %p5257_p1 = pnand %p5256_p0, %p5250_p11 }
  0x23   :  { %5260 = shalt.err (!%p5257_p1)
}
  0x24   :  { %33 = dma.hbm_to_vmem [thread:$0]  %s6448_s2, 8192, %s5348_s14, [#allocation6], %s5289_s22, %s5289_s22, %s5290_s23  }
  0x25   :  { %s5291_s15 = smov [#allocation9]   ;;  %s5261_s19 = scalar_lea.hbm %s6451_s5, 8192 }
  0x26   :  { %s53_s16 = sshll.u32 %s5291_s15, 4  ;;  %p5262_p2 = scmp.ne.s32.totalorder %s6451_s5, %s5261_s19  ;;  %s54_s16 = int_to_ptr.vmem [resolvable:$true] %s53_s16 }
  0x27   :  { %p5265_p3 = scmp.lt.u32.totalorder %s5261_s19, %s6451_s5 }
  0x29   :  { %p5267_p4 = pnand %p5265_p3, %p5262_p2 }
  0x2b   :  { %5270 = shalt.err (!%p5267_p4)
}
  0x2c   :  { %s5271_s25 = scalar_lea.vmem %s54_s16, 8192  ;;  %p5276_p6 = scmp.lt.s32.totalorder %s54_s16, %s54_s16 }
  0x2d   :  { %p5272_p5 = scmp.ne.s32.totalorder %s54_s16, %s5271_s25  ;;  %p5277_p7 = scmp.lt.s32.totalorder %s5271_s25, %s5271_s25 }
  0x2f   :  { %p5278_p8 = por %p5277_p7, %p5276_p6 }
  0x31   :  { %p5279_p9 = pnand %p5278_p8, %p5272_p5 }
  0x33   :  { %5282 = shalt.err (!%p5279_p9)
}
  0x34   :  { %59 = dma.hbm_to_vmem [thread:$0]  %s6451_s5, 8192, %s54_s16, [#allocation8], %s5289_s22, %s5289_s22, %s5290_s23  }
  0x35   :  { %5283 = dma.done.wait [#allocation6], 8192  }
  0x36   :  { %5284 = vsyncadd [#allocation6], 4294959104 }
  0x37   :  { %5285 = dma.done.wait [#allocation8], 16384  }
  0x38   :  { %5286 = vsyncadd [#allocation8], 4294950912  ;;  %v5292_v1 = vmov 0.0   ;;  %v76_v2 = vld [vmem:[%s6447_s1 + $0x8] sm:$0xff]  ;;  %v78_v4 = vld [vmem:[%s6447_s1 + $0x18] sm:$0xff]  ;;  %vm206_vm0 = vcmask 1041408  }
  0x39   :  { %283 = vmatprep.mubr.f32.mxu0 %v5292_v1  ;;  %396 = vmatprep.mubr.f32.mxu1 %v5292_v1  ;;  %v80_v3 = vld [vmem:[%s6447_s1 + $0x28] sm:$0xff]  ;;  %v82_v6 = vld [vmem:[%s6447_s1 + $0x38] sm:$0xff]  ;;  %v75_v7 = vld [vmem:[%s6447_s1] sm:$0xff]  ;;  %vm181_vm1 = vcmask 146432   ;;  %vm5294_vm2 = vmmov 0   ;;  %vm3713_vm3 = vcmask 7168  }
  0x3a   :  { %v3801_v5 = vpack.c.bf16 %v80_v3, %v76_v2  ;;  %v79_v8 = vld [vmem:[%s6447_s1 + $0x20] sm:$0xff]  ;;  %v3805_v9 = vpack.c.bf16 %v82_v6, %v78_v4  ;;  %v77_v11 = vld [vmem:[%s6447_s1 + $0x10] sm:$0xff]  ;;  %v84_v13 = vld [vmem:[%s6447_s1 + $0x48] sm:$0x3] }
  0x3b   :  { %v3803_v10 = vpack.c.bf16 %v79_v8, %v75_v7  ;;  %v81_v12 = vld [vmem:[%s6447_s1 + $0x30] sm:$0xff]  ;;  %v86_v15 = vld [vmem:[%s6447_s1 + $0x58] sm:$0x3]  ;;  %v83_v16 = vld [vmem:[%s6447_s1 + $0x40] sm:$0x3] }
  0x3c   :  { %3802 = vmatprep.subr.bf16.mxu0 %v3801_v5  ;;  %v3807_v14 = vpack.c.bf16 %v81_v12, %v77_v11  ;;  %3806 = vmatprep.subr.bf16.mxu1 %v3805_v9  ;;  %v85_v17 = vld [vmem:[%s6447_s1 + $0x50] sm:$0x3]  ;;  %v152_v18 = vld [vmem:[%s6446_s0] sm:$0xff]  ;;  %v153_v39 = vld [vmem:[%s6446_s0 + $0x8] sm:$0xff] }
  0x3d   :  { %3804 = vmatpush1.bf16.msra.mxu0 %v3803_v10  ;;  %v88_v19 = vld [vmem:[#allocation5 + $0x8] sm:$0xff]  ;;  %v90_v21 = vld [vmem:[#allocation5 + $0x18] sm:$0xff]  ;;  %v87_v23 = vld [vmem:[#allocation5] sm:$0xff] }
  0x3e   :  { %v92_v20 = vld [vmem:[#allocation5 + $0x28] sm:$0xff]  ;;  %3808 = vmatpush1.bf16.msra.mxu1 %v3807_v14  ;;  %3728 = vmatprep.subr.msk.mxu0 %vm206_vm0, %v84_v13  ;;  %v94_v22 = vld [vmem:[#allocation5 + $0x38] sm:$0xff]  ;;  %v91_v25 = vld [vmem:[#allocation5 + $0x20] sm:$0xff] }
  0x3f   :  { %3738 = vmatprep.subr.msk.mxu1 %vm206_vm0, %v86_v15  ;;  %v5443_v24 = vpack.c.bf16 %v92_v20, %v88_v19  ;;  %v89_v26 = vld [vmem:[#allocation5 + $0x10] sm:$0xff]  ;;  %v5445_v28 = vpack.c.bf16 %v94_v22, %v90_v21  ;;  %v5447_v29 = vpack.c.bf16 %v91_v25, %v87_v23  ;;  %v96_v30 = vld [vmem:[#allocation5 + $0x48] sm:$0xff]  ;;  %v98_v33 = vld [vmem:[#allocation5 + $0x58] sm:$0xff] }
  0x40   :  { %v93_v27 = vld [vmem:[#allocation5 + $0x30] sm:$0xff]  ;;  %v100_v31 = vld [vmem:[#allocation5 + $0x68] sm:$0xff]  ;;  %v102_v34 = vld [vmem:[#allocation5 + $0x78] sm:$0xff] }
  0x41   :  { %3729 = vmatpush1.msk.msra.mxu0 %vm206_vm0, %v83_v16  ;;  %v5450_v32 = vpack.c.bf16 %v93_v27, %v89_v26  ;;  %v95_v35 = vld [vmem:[#allocation5 + $0x40] sm:$0xff]  ;;  %v97_v37 = vld [vmem:[#allocation5 + $0x50] sm:$0xff]  ;;  %v5459_v40 = vpack.c.bf16 %v100_v31, %v96_v30  ;;  %v5463_v41 = vpack.c.bf16 %v102_v34, %v98_v33  ;;  %v104_v43 = vld [vmem:[#allocation5 + $0x88] sm:$0xff] }
  0x42   :  { %3739 = vmatpush1.msk.msra.mxu1 %vm206_vm0, %v85_v17  ;;  %3730 = vmatmul.mubr.msk.f32.vlgmr.msra.gmra.mrb[0].mxu0 %vm181_vm1, %v152_v18  ;;  %v99_v36 = vld [vmem:[#allocation5 + $0x60] sm:$0xff]  ;;  %v101_v38 = vld [vmem:[#allocation5 + $0x70] sm:$0xff]  ;;  %v108_v44 = vld [vmem:[#allocation5 + $0xa8] sm:$0xff] }
  0x43   :  { %3740 = vmatmul.mubr.msk.f32.vlgmr.msra.gmra.mrb[0].mxu1 %vm181_vm1, %v152_v18  ;;  %3810 = vmatprep.subr.bf16.mxu0 %v5443_v24  ;;  %v5465_v42 = vpack.c.bf16 %v99_v36, %v95_v35  ;;  %v106_v45 = vld [vmem:[#allocation5 + $0x98] sm:$0xff]  ;;  %v5469_v46 = vpack.c.bf16 %v101_v38, %v97_v37  ;;  %v103_v48 = vld [vmem:[#allocation5 + $0x80] sm:$0xff]  ;;  %v105_v50 = vld [vmem:[#allocation5 + $0x90] sm:$0xff]  ;;  %v5478_v53 = vpack.c.bf16 %v108_v44, %v104_v43 }
  0x44   :  { %3842 = vmatprep.subr.bf16.mxu1 %v5445_v28  ;;  %3812 = vmatpush1.bf16.msra.mxu0 %v5447_v29  ;;  %v110_v47 = vld [vmem:[#allocation5 + $0xb8] sm:$0xff]  ;;  %v107_v49 = vld [vmem:[#allocation5 + $0xa0] sm:$0xff]  ;;  %v109_v51 = vld [vmem:[#allocation5 + $0xb0] sm:$0xff] }
  0x45   :  { %3844 = vmatpush1.bf16.msra.mxu1 %v5450_v32  ;;  %289 = vmatprep.mubr.f32.mxu0 %v5292_v1  ;;  %v154_v52 = vld [vmem:[%s6446_s0 + $0x10] sm:$0xff]  ;;  %v5482_v54 = vpack.c.bf16 %v110_v47, %v106_v45  ;;  %v5484_v55 = vpack.c.bf16 %v107_v49, %v103_v48  ;;  %v114_v58 = vld [vmem:[#allocation5 + $0xd8] sm:$0xff]  ;;  %v5488_v59 = vpack.c.bf16 %v109_v51, %v105_v50  ;;  %v111_v61 = vld [vmem:[#allocation5 + $0xc0] sm:$0xff] }
  0x46   :  { %402 = vmatprep.mubr.f32.mxu1 %v5292_v1  ;;  %3731 = vmatmul.mubr.msk.f32.gmra.mrb[2].mxu0 %vm181_vm1, %v153_v39  ;;  %v112_v56 = vld [vmem:[#allocation5 + $0xc8] sm:$0xff]  ;;  %v118_v60 = vld [vmem:[#allocation5 + $0xf8] sm:$0xff]  ;;  %v115_v62 = vld [vmem:[#allocation5 + $0xe0] sm:$0xff] }
  0x47   :  { %3741 = vmatmul.mubr.msk.f32.gmra.mrb[2].mxu1 %vm181_vm1, %v153_v39  ;;  %3814 = vmatprep.subr.bf16.mxu0 %v5459_v40  ;;  %v116_v57 = vld [vmem:[#allocation5 + $0xe8] sm:$0xff]  ;;  %v113_v63 = vld [vmem:[#allocation5 + $0xd0] sm:$0xff]  ;;  %v5501_v4 = vpack.c.bf16 %v118_v60, %v114_v58  ;;  %v5503_v5 = vpack.c.bf16 %v115_v62, %v111_v61  ;;  %v122_v8 = vld [vmem:[#allocation5 + $0x118] sm:$0xff] }
  0x48   :  { %3846 = vmatprep.subr.bf16.mxu1 %v5463_v41  ;;  %3816 = vmatpush1.bf16.msra.mxu0 %v5465_v42  ;;  %v117_v0 = vld [vmem:[#allocation5 + $0xf0] sm:$0xff]  ;;  %v5497_v3 = vpack.c.bf16 %v116_v57, %v112_v56  ;;  %v120_v6 = vld [vmem:[#allocation5 + $0x108] sm:$0xff]  ;;  %v126_v10 = vld [vmem:[#allocation5 + $0x138] sm:$0xff] }
  0x49   :  { %3848 = vmatpush1.bf16.msra.mxu1 %v5469_v46  ;;  %295 = vmatprep.mubr.f32.mxu0 %v5292_v1  ;;  %v155_v2 = vld [vmem:[%s6446_s0 + $0x18] sm:$0xff]  ;;  %v124_v7 = vld [vmem:[#allocation5 + $0x128] sm:$0xff]  ;;  %v5507_v9 = vpack.c.bf16 %v117_v0, %v113_v63  ;;  %v119_v11 = vld [vmem:[#allocation5 + $0x100] sm:$0xff]  ;;  %v5520_v17 = vpack.c.bf16 %v126_v10, %v122_v8 }
  0x4a   :  { %408 = vmatprep.mubr.f32.mxu1 %v5292_v1  ;;  %3732 = vmatmul.mubr.msk.f32.gmra.mrb[4].mxu0 %vm181_vm1, %v154_v52  ;;  %v123_v12 = vld [vmem:[#allocation5 + $0x120] sm:$0xff]  ;;  %v121_v13 = vld [vmem:[#allocation5 + $0x110] sm:$0xff]  ;;  %v5516_v16 = vpack.c.bf16 %v124_v7, %v120_v6  ;;  %v128_v19 = vld [vmem:[#allocation5 + $0x148] sm:$0xff] }
  0x4b   :  { %3742 = vmatmul.mubr.msk.f32.gmra.mrb[4].mxu1 %vm181_vm1, %v154_v52  ;;  %3818 = vmatprep.subr.bf16.mxu0 %v5478_v53  ;;  %v125_v14 = vld [vmem:[#allocation5 + $0x130] sm:$0xff]  ;;  %v156_v15 = vld [vmem:[%s6446_s0 + $0x20] sm:$0xff]  ;;  %v5522_v18 = vpack.c.bf16 %v123_v12, %v119_v11  ;;  %v132_v20 = vld [vmem:[#allocation5 + $0x168] sm:$0xff]  ;;  %v161_v12 = vlaneseq }
  0x4c   :  { %3850 = vmatprep.subr.bf16.mxu1 %v5482_v54  ;;  %3820 = vmatpush1.bf16.msra.mxu0 %v5484_v55  ;;  %v130_v21 = vld [vmem:[#allocation5 + $0x158] sm:$0xff]  ;;  %v5526_v22 = vpack.c.bf16 %v125_v14, %v121_v13  ;;  %v127_v25 = vld [vmem:[#allocation5 + $0x140] sm:$0xff]  ;;  %v129_v27 = vld [vmem:[#allocation5 + $0x150] sm:$0xff]  ;;  %v5535_v33 = vpack.c.bf16 %v132_v20, %v128_v19 }
  0x4d   :  { %3852 = vmatpush1.bf16.msra.mxu1 %v5488_v59  ;;  %301 = vmatprep.mubr.f32.mxu0 %v5292_v1  ;;  %v134_v23 = vld [vmem:[#allocation5 + $0x178] sm:$0xff]  ;;  %v131_v26 = vld [vmem:[#allocation5 + $0x160] sm:$0xff]  ;;  %v133_v30 = vld [vmem:[#allocation5 + $0x170] sm:$0xff]  ;;  %v5632_v13 = vshrl.u32 %v161_v12, 7 }
  0x4e   :  { %414 = vmatprep.mubr.f32.mxu1 %v5292_v1  ;;  %3733 = vmatmul.mubr.msk.f32.gmra.mrb[6].mxu0 %vm181_vm1, %v155_v2  ;;  %v157_v31 = vld [vmem:[%s6446_s0 + $0x28] sm:$0xff]  ;;  %v5539_v34 = vpack.c.bf16 %v134_v23, %v130_v21  ;;  %v5541_v35 = vpack.c.bf16 %v131_v26, %v127_v25  ;;  %v138_v38 = vld [vmem:[#allocation5 + $0x198] sm:$0xff]  ;;  %v5545_v39 = vpack.c.bf16 %v133_v30, %v129_v27  ;;  %v137_v47 = vld [vmem:[#allocation5 + $0x190] sm:$0xff] }
  0x4f   :  { %3743 = vmatmul.mubr.msk.f32.gmra.mrb[6].mxu1 %vm181_vm1, %v155_v2  ;;  %3822 = vmatprep.subr.bf16.mxu0 %v5497_v3  ;;  %v136_v36 = vld [vmem:[#allocation5 + $0x188] sm:$0xff]  ;;  %v142_v43 = vld [vmem:[#allocation5 + $0x1b8] sm:$0xff]  ;;  %v135_v44 = vld [vmem:[#allocation5 + $0x180] sm:$0xff]  ;;  %v163_v14 = vsub.s32 0, %v5632_v13  ;;  %v167_v19 = vsub.s32 1, %v5632_v13  ;;  %v171_v21 = vsub.s32 2, %v5632_v13 }
  0x50   :  { %3854 = vmatprep.subr.bf16.mxu1 %v5501_v4  ;;  %3824 = vmatpush1.bf16.msra.mxu0 %v5503_v5  ;;  %v140_v37 = vld [vmem:[#allocation5 + $0x1a8] sm:$0xff]  ;;  %v139_v45 = vld [vmem:[#allocation5 + $0x1a0] sm:$0xff]  ;;  %v141_v48 = vld [vmem:[#allocation5 + $0x1b0] sm:$0xff]  ;;  %v5558_v51 = vpack.c.bf16 %v142_v43, %v138_v38 }
  0x51   :  { %3856 = vmatpush1.bf16.msra.mxu1 %v5507_v9  ;;  %307 = vmatprep.mubr.f32.mxu0 %v5292_v1  ;;  %v158_v49 = vld [vmem:[%s6446_s0 + $0x30] sm:$0xff]  ;;  %v5554_v50 = vpack.c.bf16 %v140_v37, %v136_v36  ;;  %v5560_v52 = vpack.c.bf16 %v139_v45, %v135_v44  ;;  %v146_v58 = vld [vmem:[#allocation5 + $0x1d8] sm:$0xff]  ;;  %v5564_v60 = vpack.c.bf16 %v141_v48, %v137_v47  ;;  %v143_v62 = vld [vmem:[#allocation5 + $0x1c0] sm:$0xff]  ;;  %v6456_v36 = vsub.s32 3, %v5632_v13 }
  0x52   :  { %420 = vmatprep.mubr.f32.mxu1 %v5292_v1  ;;  %3734 = vmatmul.mubr.msk.f32.gmra.mrb[8].mxu0 %vm181_vm1, %v156_v15  ;;  %v144_v56 = vld [vmem:[#allocation5 + $0x1c8] sm:$0xff]  ;;  %v150_v61 = vld [vmem:[#allocation5 + $0x1f8] sm:$0xff]  ;;  %v147_v63 = vld [vmem:[#allocation5 + $0x1e0] sm:$0xff] }
  0x53   :  { %3744 = vmatmul.mubr.msk.f32.gmra.mrb[8].mxu1 %vm181_vm1, %v156_v15  ;;  %3826 = vmatprep.subr.bf16.mxu0 %v5516_v16  ;;  %v148_v57 = vld [vmem:[#allocation5 + $0x1e8] sm:$0xff]  ;;  %v145_v0 = vld [vmem:[#allocation5 + $0x1d0] sm:$0xff]  ;;  %v5577_v8 = vpack.c.bf16 %v150_v61, %v146_v58  ;;  %v5579_v10 = vpack.c.bf16 %v147_v63, %v143_v62  ;;  %v151_v15 = vld [vmem:[%s6449_s3] sm:$0xf] }
  0x54   :  { %3858 = vmatprep.subr.bf16.mxu1 %v5520_v17  ;;  %3828 = vmatpush1.bf16.msra.mxu0 %v5522_v18  ;;  %v149_v2 = vld [vmem:[#allocation5 + $0x1f0] sm:$0xff]  ;;  %v5573_v7 = vpack.c.bf16 %v148_v57, %v144_v56  ;;  %v5641_v20 = vrot.slane %v151_v15, %v163_v14  ;;  %v5646_v23 = vrot.slane %v151_v15, %v167_v19 }
  0x55   :  { %3860 = vmatpush1.bf16.msra.mxu1 %v5526_v22  ;;  %313 = vmatprep.mubr.f32.mxu0 %v5292_v1  ;;  %v159_v6 = vld [vmem:[%s6446_s0 + $0x38] sm:$0xff]  ;;  %v5583_v11 = vpack.c.bf16 %v149_v2, %v145_v0  ;;  %v5651_v27 = vrot.slane %v151_v15, %v171_v21  ;;  %v5658_v47 = vrot.slane %v151_v15, %v6456_v36 }
  0x56   :  { %426 = vmatprep.mubr.f32.mxu1 %v5292_v1  ;;  %3735 = vmatmul.mubr.msk.f32.gmra.mrb[10].mxu0 %vm181_vm1, %v157_v31 }
  0x57   :  { %3745 = vmatmul.mubr.msk.f32.gmra.mrb[10].mxu1 %vm181_vm1, %v157_v31  ;;  %3830 = vmatprep.subr.bf16.mxu0 %v5535_v33 }
  0x58   :  { %3862 = vmatprep.subr.bf16.mxu1 %v5539_v34  ;;  %3832 = vmatpush1.bf16.msra.mxu0 %v5541_v35 }
  0x59   :  { %3864 = vmatpush1.bf16.msra.mxu1 %v5545_v39  ;;  %319 = vmatprep.mubr.f32.mxu0 %v5292_v1 }
  0x5a   :  { %432 = vmatprep.mubr.f32.mxu1 %v5292_v1  ;;  %3736 = vmatmul.mubr.msk.f32.gmra.mrb[12].mxu0 %vm181_vm1, %v158_v49 }
  0x5b   :  { %3746 = vmatmul.mubr.msk.f32.gmra.mrb[12].mxu1 %vm181_vm1, %v158_v49  ;;  %3834 = vmatprep.subr.bf16.mxu0 %v5554_v50 }
  0x5c   :  { %3866 = vmatprep.subr.bf16.mxu1 %v5558_v51  ;;  %3836 = vmatpush1.bf16.msra.mxu0 %v5560_v52 }
  0x5d   :  { %3868 = vmatpush1.bf16.msra.mxu1 %v5564_v60  ;;  %325 = vmatprep.mubr.f32.mxu0 %v5292_v1 }
  0x5e   :  { %438 = vmatprep.mubr.f32.mxu1 %v5292_v1  ;;  %3737 = vmatmul.mubr.msk.f32.gmra.mrb[14].mxu0 %vm181_vm1, %v159_v6 }
  0x5f   :  { %3747 = vmatmul.mubr.msk.f32.gmra.mrb[14].mxu1 %vm181_vm1, %v159_v6  ;;  %3838 = vmatprep.subr.bf16.mxu0 %v5573_v7 }
  0x60   :  { %3870 = vmatprep.subr.bf16.mxu1 %v5577_v8  ;;  %3840 = vmatpush1.bf16.msra.mxu0 %v5579_v10 }
  0x61   :  { %3872 = vmatpush1.bf16.msra.mxu1 %v5583_v11  ;;  %548 = vmatprep.mubr.f32.mxu0 %v5292_v1 }
  0x62   :  { %619 = vmatprep.mubr.f32.mxu1 %v5292_v1  ;;  %3874 = vmatprep.subr.bf16.mxu0 %v5443_v24 }
  0x63   :  { %549 = vmatmul.mubr.f32.vlgmr.msra.gmra.mrb[0].mxu0 %v5292_v1  ;;  %3906 = vmatprep.subr.bf16.mxu1 %v5445_v28 }
  0x64   :  { %620 = vmatmul.mubr.f32.vlgmr.msra.gmra.mrb[0].mxu1 %v5292_v1  ;;  %3876 = vmatpush1.bf16.msra.mxu0 %v5447_v29 }
  0x65   :  { %3908 = vmatpush1.bf16.msra.mxu1 %v5450_v32  ;;  %3878 = vmatprep.subr.bf16.mxu0 %v5459_v40 }
  0x66   :  { %3910 = vmatprep.subr.bf16.mxu1 %v5463_v41  ;;  %720 = vmatprep.mubr.f32.mxu0 %v5292_v1 }
  0x67   :  { %791 = vmatprep.mubr.f32.mxu1 %v5292_v1 }
  0x68   :  { %3880 = vmatpush1.bf16.msra.mxu0 %v5465_v42 }
  0x69   :  { %3912 = vmatpush1.bf16.msra.mxu1 %v5469_v46  ;;  %3882 = vmatprep.subr.bf16.mxu0 %v5478_v53 }
  0x6a   :  { %3914 = vmatprep.subr.bf16.mxu1 %v5482_v54 }
  0x6c   :  { %3884 = vmatpush1.bf16.msra.mxu0 %v5484_v55 }
  0x6d   :  { %3916 = vmatpush1.bf16.msra.mxu1 %v5488_v59  ;;  %3886 = vmatprep.subr.bf16.mxu0 %v5497_v3 }
  0x6e   :  { %3918 = vmatprep.subr.bf16.mxu1 %v5501_v4 }
  0x70   :  { %3888 = vmatpush1.bf16.msra.mxu0 %v5503_v5 }
  0x71   :  { %3920 = vmatpush1.bf16.msra.mxu1 %v5507_v9  ;;  %3890 = vmatprep.subr.bf16.mxu0 %v5516_v16 }
  0x72   :  { %3922 = vmatprep.subr.bf16.mxu1 %v5520_v17 }
  0x74   :  { %3892 = vmatpush1.bf16.msra.mxu0 %v5522_v18 }
  0x75   :  { %3924 = vmatpush1.bf16.msra.mxu1 %v5526_v22  ;;  %3894 = vmatprep.subr.bf16.mxu0 %v5535_v33 }
  0x76   :  { %3926 = vmatprep.subr.bf16.mxu1 %v5539_v34 }
  0x78   :  { %3896 = vmatpush1.bf16.msra.mxu0 %v5541_v35 }
  0x79   :  { %3928 = vmatpush1.bf16.msra.mxu1 %v5545_v39  ;;  %3898 = vmatprep.subr.bf16.mxu0 %v5554_v50 }
  0x7a   :  { %3930 = vmatprep.subr.bf16.mxu1 %v5558_v51 }
  0x7c   :  { %3900 = vmatpush1.bf16.msra.mxu0 %v5560_v52 }
  0x7d   :  { %3932 = vmatpush1.bf16.msra.mxu1 %v5564_v60  ;;  %3902 = vmatprep.subr.bf16.mxu0 %v5573_v7 }
  0x7e   :  { %3934 = vmatprep.subr.bf16.mxu1 %v5577_v8 }
  0x80   :  { %3904 = vmatpush1.bf16.msra.mxu0 %v5579_v10 }
  0x81   :  { %3936 = vmatpush1.bf16.msra.mxu1 %v5583_v11  ;;  %3938 = vmatprep.subr.bf16.mxu0 %v5443_v24 }
  0x82   :  { %3970 = vmatprep.subr.bf16.mxu1 %v5445_v28 }
 0x136   :  { %v550_v25 = vpop.f32.mrb[0].mxu0 }
 0x137   :  { %v4921_v26 = vadd.f32 %v550_v25, %v5641_v20  ;;  %v621_v30 = vpop.f32.mrb[0].mxu1  ;;  %v552_v31 = vpop.f32.mrb[1].mxu0 }
 0x138   :  { %v4922_v37 = vadd.f32 %v552_v31, %v5646_v23  ;;  %v623_v38 = vpop.f32.mrb[1].mxu1  ;;  %v4937_v45 = vadd.f32 %v621_v30, %v5651_v27 }
 0x139   :  { %v630_v43 = vmul.f32 0.5, %v4921_v26  ;;  %v4938_v48 = vadd.f32 %v623_v38, %v5658_v47 }
 0x13a   :  { %v634_v44 = vmul.f32 0.5, %v4922_v37 }
 0x13b   :  { %5057 = vtanh.f32 %v630_v43  ;;  %v639_v49 = vmul.f32 0.5, %v4938_v48 }
 0x13c   :  { %5059 = vtanh.f32 %v634_v44 }
 0x13d   :  { %5061 = vtanh.f32 %v4937_v45 }
 0x13e   :  { %5063 = vtanh.f32 %v639_v49 }
 0x145   :  { %v5058_v56 = vpop.eup %5057 }
 0x146   :  { %v5060_v57 = vpop.eup %5059  ;;  %v632_v58 = vmul.f32 0.5, %v5058_v56 }
 0x147   :  { %v636_v61 = vmul.f32 0.5, %v5060_v57  ;;  %v5062_v63 = vpop.eup %5061 }
 0x148   :  { %v633_v62 = vadd.f32 0.5, %v632_v58  ;;  %v5064_v15 = vpop.eup %5063 }
 0x149   :  { %v637_v0 = vadd.f32 0.5, %v636_v61  ;;  %v641_v25 = vmul.f32 0.5, %v5064_v15 }
 0x14a   :  { %v644_v2 = vmul.f32 %v5062_v63, %v633_v62 }
 0x14b   :  { %v643_v6 = vmul.f32 0.0, %v637_v0  ;;  %v642_v26 = vadd.f32 0.5, %v641_v25 }
 0x14d   :  { %v5661_v12 = vadd.f32 %v644_v2, %v643_v6 }
 0x14f   :  { %5065 = vtanh.f32 %v5661_v12 }
 0x159   :  { %v5066_v30 = vpop.eup %5065 }
 0x15a   :  { %v5664_v31 = vmul.f32 %v5066_v30, %v642_v26 }
 0x15c   :  { %721 = vmatmul.mubr.f32.vlgmr.msra.gmra.mrb[2].mxu0 %v5664_v31  ;;  %792 = vmatmul.mubr.f32.vlgmr.msra.gmra.mrb[2].mxu1 %v5664_v31 }
 0x15d   :  { %3940 = vmatpush1.bf16.msra.mxu0 %v5447_v29  ;;  %3972 = vmatpush1.bf16.msra.mxu1 %v5450_v32 }
 0x15e   :  { %3942 = vmatprep.subr.bf16.mxu0 %v5459_v40  ;;  %3974 = vmatprep.subr.bf16.mxu1 %v5463_v41 }
 0x15f   :  { %893 = vmatprep.mubr.f32.mxu0 %v5292_v1  ;;  %964 = vmatprep.mubr.f32.mxu1 %v5292_v1 }
 0x161   :  { %3944 = vmatpush1.bf16.msra.mxu0 %v5465_v42  ;;  %3976 = vmatpush1.bf16.msra.mxu1 %v5469_v46 }
 0x162   :  { %3946 = vmatprep.subr.bf16.mxu0 %v5478_v53  ;;  %3978 = vmatprep.subr.bf16.mxu1 %v5482_v54 }
 0x165   :  { %3948 = vmatpush1.bf16.msra.mxu0 %v5484_v55  ;;  %3980 = vmatpush1.bf16.msra.mxu1 %v5488_v59 }
 0x166   :  { %3950 = vmatprep.subr.bf16.mxu0 %v5497_v3  ;;  %3982 = vmatprep.subr.bf16.mxu1 %v5501_v4 }
 0x169   :  { %3952 = vmatpush1.bf16.msra.mxu0 %v5503_v5  ;;  %3984 = vmatpush1.bf16.msra.mxu1 %v5507_v9 }
 0x16a   :  { %3954 = vmatprep.subr.bf16.mxu0 %v5516_v16  ;;  %3986 = vmatprep.subr.bf16.mxu1 %v5520_v17 }
 0x16d   :  { %3956 = vmatpush1.bf16.msra.mxu0 %v5522_v18  ;;  %3988 = vmatpush1.bf16.msra.mxu1 %v5526_v22 }
 0x16e   :  { %3958 = vmatprep.subr.bf16.mxu0 %v5535_v33  ;;  %3990 = vmatprep.subr.bf16.mxu1 %v5539_v34 }
 0x171   :  { %3960 = vmatpush1.bf16.msra.mxu0 %v5541_v35  ;;  %3992 = vmatpush1.bf16.msra.mxu1 %v5545_v39 }
 0x172   :  { %3962 = vmatprep.subr.bf16.mxu0 %v5554_v50  ;;  %3994 = vmatprep.subr.bf16.mxu1 %v5558_v51 }
 0x175   :  { %3964 = vmatpush1.bf16.msra.mxu0 %v5560_v52  ;;  %3996 = vmatpush1.bf16.msra.mxu1 %v5564_v60 }
 0x176   :  { %3966 = vmatprep.subr.bf16.mxu0 %v5573_v7  ;;  %3998 = vmatprep.subr.bf16.mxu1 %v5577_v8 }
 0x179   :  { %3968 = vmatpush1.bf16.msra.mxu0 %v5579_v10  ;;  %4000 = vmatpush1.bf16.msra.mxu1 %v5583_v11 }
 0x17a   :  { %4002 = vmatprep.subr.bf16.mxu0 %v5443_v24  ;;  %4034 = vmatprep.subr.bf16.mxu1 %v5445_v28 }
 0x22f   :  { %v722_v37 = vpop.f32.mrb[2].mxu0  ;;  %v793_v38 = vpop.f32.mrb[2].mxu1 }
 0x230   :  { %v4923_v43 = vadd.f32 %v722_v37, %v5641_v20  ;;  %v724_v44 = vpop.f32.mrb[3].mxu0  ;;  %v795_v45 = vpop.f32.mrb[3].mxu1  ;;  %v4939_v57 = vadd.f32 %v793_v38, %v5651_v27 }
 0x231   :  { %v4924_v48 = vadd.f32 %v724_v44, %v5646_v23  ;;  %v4940_v58 = vadd.f32 %v795_v45, %v5658_v47 }
 0x232   :  { %v802_v49 = vmul.f32 0.5, %v4923_v43 }
 0x233   :  { %v806_v56 = vmul.f32 0.5, %v4924_v48  ;;  %v811_v61 = vmul.f32 0.5, %v4940_v58 }
 0x234   :  { %5067 = vtanh.f32 %v802_v49 }
 0x235   :  { %5069 = vtanh.f32 %v806_v56 }
 0x236   :  { %5071 = vtanh.f32 %v4939_v57 }
 0x237   :  { %5073 = vtanh.f32 %v811_v61 }
 0x23e   :  { %v5068_v62 = vpop.eup %5067 }
 0x23f   :  { %v5070_v63 = vpop.eup %5069  ;;  %v804_v0 = vmul.f32 0.5, %v5068_v62 }
 0x240   :  { %v808_v2 = vmul.f32 0.5, %v5070_v63  ;;  %v5072_v15 = vpop.eup %5071 }
 0x241   :  { %v805_v6 = vadd.f32 0.5, %v804_v0  ;;  %v5074_v38 = vpop.eup %5073 }
 0x242   :  { %v809_v25 = vadd.f32 0.5, %v808_v2  ;;  %v813_v43 = vmul.f32 0.5, %v5074_v38 }
 0x243   :  { %v816_v26 = vmul.f32 %v5072_v15, %v805_v6 }
 0x244   :  { %v815_v30 = vmul.f32 %v809_v25, %v5661_v12  ;;  %v814_v44 = vadd.f32 0.5, %v813_v43 }
 0x246   :  { %v5707_v37 = vadd.f32 %v816_v26, %v815_v30 }
 0x248   :  { %5075 = vtanh.f32 %v5707_v37 }
 0x252   :  { %v5076_v45 = vpop.eup %5075 }
 0x253   :  { %v5710_v48 = vmul.f32 %v5076_v45, %v814_v44 }
 0x255   :  { %894 = vmatmul.mubr.f32.vlgmr.msra.gmra.mrb[4].mxu0 %v5710_v48  ;;  %965 = vmatmul.mubr.f32.vlgmr.msra.gmra.mrb[4].mxu1 %v5710_v48 }
 0x256   :  { %4004 = vmatpush1.bf16.msra.mxu0 %v5447_v29  ;;  %4036 = vmatpush1.bf16.msra.mxu1 %v5450_v32 }
 0x257   :  { %4006 = vmatprep.subr.bf16.mxu0 %v5459_v40  ;;  %4038 = vmatprep.subr.bf16.mxu1 %v5463_v41 }
 0x258   :  { %1066 = vmatprep.mubr.f32.mxu0 %v5292_v1  ;;  %1137 = vmatprep.mubr.f32.mxu1 %v5292_v1 }
 0x25a   :  { %4008 = vmatpush1.bf16.msra.mxu0 %v5465_v42  ;;  %4040 = vmatpush1.bf16.msra.mxu1 %v5469_v46 }
 0x25b   :  { %4010 = vmatprep.subr.bf16.mxu0 %v5478_v53  ;;  %4042 = vmatprep.subr.bf16.mxu1 %v5482_v54 }
 0x25e   :  { %4012 = vmatpush1.bf16.msra.mxu0 %v5484_v55  ;;  %4044 = vmatpush1.bf16.msra.mxu1 %v5488_v59 }
 0x25f   :  { %4014 = vmatprep.subr.bf16.mxu0 %v5497_v3  ;;  %4046 = vmatprep.subr.bf16.mxu1 %v5501_v4 }
 0x262   :  { %4016 = vmatpush1.bf16.msra.mxu0 %v5503_v5  ;;  %4048 = vmatpush1.bf16.msra.mxu1 %v5507_v9 }
 0x263   :  { %4018 = vmatprep.subr.bf16.mxu0 %v5516_v16  ;;  %4050 = vmatprep.subr.bf16.mxu1 %v5520_v17 }
 0x266   :  { %4020 = vmatpush1.bf16.msra.mxu0 %v5522_v18  ;;  %4052 = vmatpush1.bf16.msra.mxu1 %v5526_v22 }
 0x267   :  { %4022 = vmatprep.subr.bf16.mxu0 %v5535_v33  ;;  %4054 = vmatprep.subr.bf16.mxu1 %v5539_v34 }
 0x26a   :  { %4024 = vmatpush1.bf16.msra.mxu0 %v5541_v35  ;;  %4056 = vmatpush1.bf16.msra.mxu1 %v5545_v39 }
 0x26b   :  { %4026 = vmatprep.subr.bf16.mxu0 %v5554_v50  ;;  %4058 = vmatprep.subr.bf16.mxu1 %v5558_v51 }
 0x26e   :  { %4028 = vmatpush1.bf16.msra.mxu0 %v5560_v52  ;;  %4060 = vmatpush1.bf16.msra.mxu1 %v5564_v60 }
 0x26f   :  { %4030 = vmatprep.subr.bf16.mxu0 %v5573_v7  ;;  %4062 = vmatprep.subr.bf16.mxu1 %v5577_v8 }
 0x272   :  { %4032 = vmatpush1.bf16.msra.mxu0 %v5579_v10  ;;  %4064 = vmatpush1.bf16.msra.mxu1 %v5583_v11 }
 0x273   :  { %4066 = vmatprep.subr.bf16.mxu0 %v5443_v24  ;;  %4098 = vmatprep.subr.bf16.mxu1 %v5445_v28 }
 0x328   :  { %v895_v12 = vpop.f32.mrb[4].mxu0  ;;  %v966_v49 = vpop.f32.mrb[4].mxu1 }
 0x329   :  { %v4925_v56 = vadd.f32 %v895_v12, %v5641_v20  ;;  %v897_v57 = vpop.f32.mrb[5].mxu0  ;;  %v968_v58 = vpop.f32.mrb[5].mxu1  ;;  %v4941_v0 = vadd.f32 %v966_v49, %v5651_v27 }
 0x32a   :  { %v4926_v61 = vadd.f32 %v897_v57, %v5646_v23  ;;  %v4942_v2 = vadd.f32 %v968_v58, %v5658_v47 }
 0x32b   :  { %v975_v62 = vmul.f32 0.5, %v4925_v56 }
 0x32c   :  { %v979_v63 = vmul.f32 0.5, %v4926_v61  ;;  %v984_v6 = vmul.f32 0.5, %v4942_v2 }
 0x32d   :  { %5077 = vtanh.f32 %v975_v62 }
 0x32e   :  { %5079 = vtanh.f32 %v979_v63 }
 0x32f   :  { %5081 = vtanh.f32 %v4941_v0 }
 0x330   :  { %5083 = vtanh.f32 %v984_v6 }
 0x337   :  { %v5078_v15 = vpop.eup %5077 }
 0x338   :  { %v5080_v25 = vpop.eup %5079  ;;  %v977_v26 = vmul.f32 0.5, %v5078_v15 }
 0x339   :  { %v981_v30 = vmul.f32 0.5, %v5080_v25  ;;  %v5082_v43 = vpop.eup %5081 }
 0x33a   :  { %v978_v38 = vadd.f32 0.5, %v977_v26  ;;  %v5084_v49 = vpop.eup %5083 }
 0x33b   :  { %v982_v44 = vadd.f32 0.5, %v981_v30  ;;  %v986_v57 = vmul.f32 0.5, %v5084_v49 }
 0x33c   :  { %v989_v45 = vmul.f32 %v5082_v43, %v978_v38 }
 0x33d   :  { %v988_v12 = vmul.f32 %v982_v44, %v5707_v37  ;;  %v987_v61 = vadd.f32 0.5, %v986_v57 }
 0x33f   :  { %v5753_v56 = vadd.f32 %v989_v45, %v988_v12 }
 0x341   :  { %5085 = vtanh.f32 %v5753_v56 }
 0x34b   :  { %v5086_v58 = vpop.eup %5085 }
 0x34c   :  { %v5756_v62 = vmul.f32 %v5086_v58, %v987_v61 }
 0x34e   :  { %1067 = vmatmul.mubr.f32.vlgmr.msra.gmra.mrb[6].mxu0 %v5756_v62  ;;  %1138 = vmatmul.mubr.f32.vlgmr.msra.gmra.mrb[6].mxu1 %v5756_v62 }
 0x34f   :  { %4068 = vmatpush1.bf16.msra.mxu0 %v5447_v29  ;;  %4100 = vmatpush1.bf16.msra.mxu1 %v5450_v32 }
 0x350   :  { %4070 = vmatprep.subr.bf16.mxu0 %v5459_v40  ;;  %4102 = vmatprep.subr.bf16.mxu1 %v5463_v41 }
 0x351   :  { %1239 = vmatprep.mubr.f32.mxu0 %v5292_v1  ;;  %1310 = vmatprep.mubr.f32.mxu1 %v5292_v1 }
 0x353   :  { %4072 = vmatpush1.bf16.msra.mxu0 %v5465_v42  ;;  %4104 = vmatpush1.bf16.msra.mxu1 %v5469_v46 }
 0x354   :  { %4074 = vmatprep.subr.bf16.mxu0 %v5478_v53  ;;  %4106 = vmatprep.subr.bf16.mxu1 %v5482_v54 }
 0x357   :  { %4076 = vmatpush1.bf16.msra.mxu0 %v5484_v55  ;;  %4108 = vmatpush1.bf16.msra.mxu1 %v5488_v59 }
 0x358   :  { %4078 = vmatprep.subr.bf16.mxu0 %v5497_v3  ;;  %4110 = vmatprep.subr.bf16.mxu1 %v5501_v4 }
 0x35b   :  { %4080 = vmatpush1.bf16.msra.mxu0 %v5503_v5  ;;  %4112 = vmatpush1.bf16.msra.mxu1 %v5507_v9 }
 0x35c   :  { %4082 = vmatprep.subr.bf16.mxu0 %v5516_v16  ;;  %4114 = vmatprep.subr.bf16.mxu1 %v5520_v17 }
 0x35f   :  { %4084 = vmatpush1.bf16.msra.mxu0 %v5522_v18  ;;  %4116 = vmatpush1.bf16.msra.mxu1 %v5526_v22 }
 0x360   :  { %4086 = vmatprep.subr.bf16.mxu0 %v5535_v33  ;;  %4118 = vmatprep.subr.bf16.mxu1 %v5539_v34 }
 0x363   :  { %4088 = vmatpush1.bf16.msra.mxu0 %v5541_v35  ;;  %4120 = vmatpush1.bf16.msra.mxu1 %v5545_v39 }
 0x364   :  { %4090 = vmatprep.subr.bf16.mxu0 %v5554_v50  ;;  %4122 = vmatprep.subr.bf16.mxu1 %v5558_v51 }
 0x367   :  { %4092 = vmatpush1.bf16.msra.mxu0 %v5560_v52  ;;  %4124 = vmatpush1.bf16.msra.mxu1 %v5564_v60 }
 0x368   :  { %4094 = vmatprep.subr.bf16.mxu0 %v5573_v7  ;;  %4126 = vmatprep.subr.bf16.mxu1 %v5577_v8 }
 0x36b   :  { %4096 = vmatpush1.bf16.msra.mxu0 %v5579_v10  ;;  %4128 = vmatpush1.bf16.msra.mxu1 %v5583_v11 }
 0x36c   :  { %4130 = vmatprep.subr.bf16.mxu0 %v5443_v24  ;;  %4162 = vmatprep.subr.bf16.mxu1 %v5445_v28 }
 0x421   :  { %v1068_v37 = vpop.f32.mrb[6].mxu0  ;;  %v1139_v63 = vpop.f32.mrb[6].mxu1 }
 0x422   :  { %v4927_v0 = vadd.f32 %v1068_v37, %v5641_v20  ;;  %v1070_v2 = vpop.f32.mrb[7].mxu0  ;;  %v1141_v6 = vpop.f32.mrb[7].mxu1  ;;  %v4943_v30 = vadd.f32 %v1139_v63, %v5651_v27 }
 0x423   :  { %v4928_v15 = vadd.f32 %v1070_v2, %v5646_v23  ;;  %v4944_v38 = vadd.f32 %v1141_v6, %v5658_v47 }
 0x424   :  { %v1148_v25 = vmul.f32 0.5, %v4927_v0 }
 0x425   :  { %v1152_v26 = vmul.f32 0.5, %v4928_v15  ;;  %v1157_v43 = vmul.f32 0.5, %v4944_v38 }
 0x426   :  { %5087 = vtanh.f32 %v1148_v25 }
 0x427   :  { %5089 = vtanh.f32 %v1152_v26 }
 0x428   :  { %5091 = vtanh.f32 %v4943_v30 }
 0x429   :  { %5093 = vtanh.f32 %v1157_v43 }
 0x430   :  { %v5088_v44 = vpop.eup %5087 }
 0x431   :  { %v5090_v45 = vpop.eup %5089  ;;  %v1150_v12 = vmul.f32 0.5, %v5088_v44 }
 0x432   :  { %v1154_v49 = vmul.f32 0.5, %v5090_v45  ;;  %v5092_v61 = vpop.eup %5091 }
 0x433   :  { %v1151_v57 = vadd.f32 0.5, %v1150_v12  ;;  %v5094_v63 = vpop.eup %5093 }
 0x434   :  { %v1155_v58 = vadd.f32 0.5, %v1154_v49  ;;  %v1159_v15 = vmul.f32 0.5, %v5094_v63 }
 0x435   :  { %v1162_v37 = vmul.f32 %v5092_v61, %v1151_v57 }
 0x436   :  { %v1161_v0 = vmul.f32 %v1155_v58, %v5753_v56  ;;  %v1160_v25 = vadd.f32 0.5, %v1159_v15 }
 0x438   :  { %v5799_v2 = vadd.f32 %v1162_v37, %v1161_v0 }
 0x43a   :  { %5095 = vtanh.f32 %v5799_v2 }
 0x444   :  { %v5096_v6 = vpop.eup %5095 }
 0x445   :  { %v5802_v26 = vmul.f32 %v5096_v6, %v1160_v25 }
 0x447   :  { %1240 = vmatmul.mubr.f32.vlgmr.msra.gmra.mrb[8].mxu0 %v5802_v26  ;;  %1311 = vmatmul.mubr.f32.vlgmr.msra.gmra.mrb[8].mxu1 %v5802_v26 }
 0x448   :  { %4132 = vmatpush1.bf16.msra.mxu0 %v5447_v29  ;;  %4164 = vmatpush1.bf16.msra.mxu1 %v5450_v32 }
 0x449   :  { %4134 = vmatprep.subr.bf16.mxu0 %v5459_v40  ;;  %4166 = vmatprep.subr.bf16.mxu1 %v5463_v41 }
 0x44a   :  { %1412 = vmatprep.mubr.f32.mxu0 %v5292_v1  ;;  %1483 = vmatprep.mubr.f32.mxu1 %v5292_v1 }
 0x44c   :  { %4136 = vmatpush1.bf16.msra.mxu0 %v5465_v42  ;;  %4168 = vmatpush1.bf16.msra.mxu1 %v5469_v46 }
 0x44d   :  { %4138 = vmatprep.subr.bf16.mxu0 %v5478_v53  ;;  %4170 = vmatprep.subr.bf16.mxu1 %v5482_v54 }
 0x450   :  { %4140 = vmatpush1.bf16.msra.mxu0 %v5484_v55  ;;  %4172 = vmatpush1.bf16.msra.mxu1 %v5488_v59 }
 0x451   :  { %4142 = vmatprep.subr.bf16.mxu0 %v5497_v3  ;;  %4174 = vmatprep.subr.bf16.mxu1 %v5501_v4 }
 0x454   :  { %4144 = vmatpush1.bf16.msra.mxu0 %v5503_v5  ;;  %4176 = vmatpush1.bf16.msra.mxu1 %v5507_v9 }
 0x455   :  { %4146 = vmatprep.subr.bf16.mxu0 %v5516_v16  ;;  %4178 = vmatprep.subr.bf16.mxu1 %v5520_v17 }
 0x458   :  { %4148 = vmatpush1.bf16.msra.mxu0 %v5522_v18  ;;  %4180 = vmatpush1.bf16.msra.mxu1 %v5526_v22 }
 0x459   :  { %4150 = vmatprep.subr.bf16.mxu0 %v5535_v33  ;;  %4182 = vmatprep.subr.bf16.mxu1 %v5539_v34 }
 0x45c   :  { %4152 = vmatpush1.bf16.msra.mxu0 %v5541_v35  ;;  %4184 = vmatpush1.bf16.msra.mxu1 %v5545_v39 }
 0x45d   :  { %4154 = vmatprep.subr.bf16.mxu0 %v5554_v50  ;;  %4186 = vmatprep.subr.bf16.mxu1 %v5558_v51 }
 0x460   :  { %4156 = vmatpush1.bf16.msra.mxu0 %v5560_v52  ;;  %4188 = vmatpush1.bf16.msra.mxu1 %v5564_v60 }
 0x461   :  { %4158 = vmatprep.subr.bf16.mxu0 %v5573_v7  ;;  %4190 = vmatprep.subr.bf16.mxu1 %v5577_v8 }
 0x464   :  { %4160 = vmatpush1.bf16.msra.mxu0 %v5579_v10  ;;  %4192 = vmatpush1.bf16.msra.mxu1 %v5583_v11 }
 0x465   :  { %4194 = vmatprep.subr.bf16.mxu0 %v5443_v24  ;;  %4226 = vmatprep.subr.bf16.mxu1 %v5445_v28 }
 0x51a   :  { %v1241_v56 = vpop.f32.mrb[8].mxu0  ;;  %v1312_v30 = vpop.f32.mrb[8].mxu1 }
 0x51b   :  { %v4929_v38 = vadd.f32 %v1241_v56, %v5641_v20  ;;  %v1243_v43 = vpop.f32.mrb[9].mxu0  ;;  %v1314_v44 = vpop.f32.mrb[9].mxu1  ;;  %v4945_v57 = vadd.f32 %v1312_v30, %v5651_v27 }
 0x51c   :  { %v4930_v45 = vadd.f32 %v1243_v43, %v5646_v23  ;;  %v4946_v61 = vadd.f32 %v1314_v44, %v5658_v47 }
 0x51d   :  { %v1321_v12 = vmul.f32 0.5, %v4929_v38 }
 0x51e   :  { %v1325_v49 = vmul.f32 0.5, %v4930_v45  ;;  %v1330_v58 = vmul.f32 0.5, %v4946_v61 }
 0x51f   :  { %5097 = vtanh.f32 %v1321_v12 }
 0x520   :  { %5099 = vtanh.f32 %v1325_v49 }
 0x521   :  { %5101 = vtanh.f32 %v4945_v57 }
 0x522   :  { %5103 = vtanh.f32 %v1330_v58 }
 0x529   :  { %v5098_v37 = vpop.eup %5097 }
 0x52a   :  { %v5100_v0 = vpop.eup %5099  ;;  %v1323_v63 = vmul.f32 0.5, %v5098_v37 }
 0x52b   :  { %v1327_v15 = vmul.f32 0.5, %v5100_v0  ;;  %v5102_v6 = vpop.eup %5101 }
 0x52c   :  { %v1324_v25 = vadd.f32 0.5, %v1323_v63  ;;  %v5104_v30 = vpop.eup %5103 }
 0x52d   :  { %v1328_v56 = vadd.f32 0.5, %v1327_v15  ;;  %v1332_v45 = vmul.f32 0.5, %v5104_v30 }
 0x52e   :  { %v1335_v36 = vmul.f32 %v5102_v6, %v1324_v25 }
 0x52f   :  { %v1334_v38 = vmul.f32 %v1328_v56, %v5799_v2  ;;  %v1333_v12 = vadd.f32 0.5, %v1332_v45 }
 0x531   :  { %v5845_v43 = vadd.f32 %v1335_v36, %v1334_v38 }
 0x533   :  { %5105 = vtanh.f32 %v5845_v43 }
 0x53d   :  { %v5106_v44 = vpop.eup %5105 }
 0x53e   :  { %v5848_v49 = vmul.f32 %v5106_v44, %v1333_v12 }
 0x540   :  { %1413 = vmatmul.mubr.f32.vlgmr.msra.gmra.mrb[10].mxu0 %v5848_v49  ;;  %1484 = vmatmul.mubr.f32.vlgmr.msra.gmra.mrb[10].mxu1 %v5848_v49 }
 0x541   :  { %4196 = vmatpush1.bf16.msra.mxu0 %v5447_v29  ;;  %4228 = vmatpush1.bf16.msra.mxu1 %v5450_v32 }
 0x542   :  { %4198 = vmatprep.subr.bf16.mxu0 %v5459_v40  ;;  %4230 = vmatprep.subr.bf16.mxu1 %v5463_v41 }
 0x543   :  { %1585 = vmatprep.mubr.f32.mxu0 %v5292_v1  ;;  %1656 = vmatprep.mubr.f32.mxu1 %v5292_v1 }
 0x545   :  { %4200 = vmatpush1.bf16.msra.mxu0 %v5465_v42  ;;  %4232 = vmatpush1.bf16.msra.mxu1 %v5469_v46 }
 0x546   :  { %4202 = vmatprep.subr.bf16.mxu0 %v5478_v53  ;;  %4234 = vmatprep.subr.bf16.mxu1 %v5482_v54 }
 0x549   :  { %4204 = vmatpush1.bf16.msra.mxu0 %v5484_v55  ;;  %4236 = vmatpush1.bf16.msra.mxu1 %v5488_v59 }
 0x54a   :  { %4206 = vmatprep.subr.bf16.mxu0 %v5497_v3  ;;  %4238 = vmatprep.subr.bf16.mxu1 %v5501_v4 }
 0x54d   :  { %4208 = vmatpush1.bf16.msra.mxu0 %v5503_v5  ;;  %4240 = vmatpush1.bf16.msra.mxu1 %v5507_v9 }
 0x54e   :  { %4210 = vmatprep.subr.bf16.mxu0 %v5516_v16  ;;  %4242 = vmatprep.subr.bf16.mxu1 %v5520_v17 }
 0x551   :  { %4212 = vmatpush1.bf16.msra.mxu0 %v5522_v18  ;;  %4244 = vmatpush1.bf16.msra.mxu1 %v5526_v22 }
 0x552   :  { %4214 = vmatprep.subr.bf16.mxu0 %v5535_v33  ;;  %4246 = vmatprep.subr.bf16.mxu1 %v5539_v34 }
 0x555   :  { %4216 = vmatpush1.bf16.msra.mxu0 %v5541_v35  ;;  %4248 = vmatpush1.bf16.msra.mxu1 %v5545_v39 }
 0x556   :  { %4218 = vmatprep.subr.bf16.mxu0 %v5554_v50  ;;  %4250 = vmatprep.subr.bf16.mxu1 %v5558_v51 }
 0x559   :  { %4220 = vmatpush1.bf16.msra.mxu0 %v5560_v52  ;;  %4252 = vmatpush1.bf16.msra.mxu1 %v5564_v60 }
 0x55a   :  { %4222 = vmatprep.subr.bf16.mxu0 %v5573_v7  ;;  %4254 = vmatprep.subr.bf16.mxu1 %v5577_v8 }
 0x55d   :  { %4224 = vmatpush1.bf16.msra.mxu0 %v5579_v10  ;;  %4256 = vmatpush1.bf16.msra.mxu1 %v5583_v11 }
 0x55e   :  { %4258 = vmatprep.subr.bf16.mxu0 %v5443_v24  ;;  %4290 = vmatprep.subr.bf16.mxu1 %v5445_v28 }
 0x613   :  { %v1414_v36 = vpop.f32.mrb[10].mxu0  ;;  %v1485_v2 = vpop.f32.mrb[10].mxu1 }
 0x614   :  { %v4931_v57 = vadd.f32 %v1414_v36, %v5641_v20  ;;  %v1416_v61 = vpop.f32.mrb[11].mxu0  ;;  %v1487_v58 = vpop.f32.mrb[11].mxu1  ;;  %v4947_v15 = vadd.f32 %v1485_v2, %v5651_v27 }
 0x615   :  { %v4932_v37 = vadd.f32 %v1416_v61, %v5646_v23  ;;  %v4948_v25 = vadd.f32 %v1487_v58, %v5658_v47 }
 0x616   :  { %v1494_v0 = vmul.f32 0.5, %v4931_v57 }
 0x617   :  { %v1498_v63 = vmul.f32 0.5, %v4932_v37  ;;  %v1503_v24 = vmul.f32 0.5, %v4948_v25  ;;  %v1869_v25 = vld [vmem:[#allocation7 + $0x48] sm:$0xff] }
 0x618   :  { %5107 = vtanh.f32 %v1494_v0 }
 0x619   :  { %5109 = vtanh.f32 %v1498_v63  ;;  %v1862_v63 = vld [vmem:[#allocation7 + $0x10] sm:$0xff] }
 0x61a   :  { %5111 = vtanh.f32 %v4947_v15  ;;  %v1866_v15 = vld [vmem:[#allocation7 + $0x30] sm:$0xff] }
 0x61b   :  { %5113 = vtanh.f32 %v1503_v24  ;;  %v1873_v24 = vld [vmem:[#allocation7 + $0x68] sm:$0xff] }
 0x622   :  { %v5108_v6 = vpop.eup %5107 }
 0x623   :  { %v5110_v28 = vpop.eup %5109  ;;  %v1496_v56 = vmul.f32 0.5, %v5108_v6  ;;  %v1871_v6 = vld [vmem:[#allocation7 + $0x58] sm:$0xff] }
 0x624   :  { %v1500_v38 = vmul.f32 0.5, %v5110_v28  ;;  %v5112_v45 = vpop.eup %5111  ;;  %v1875_v28 = vld [vmem:[#allocation7 + $0x78] sm:$0xff] }
 0x625   :  { %v1497_v30 = vadd.f32 0.5, %v1496_v56  ;;  %v5114_v2 = vpop.eup %5113 }
 0x626   :  { %v1501_v12 = vadd.f32 0.5, %v1500_v38  ;;  %v1505_v61 = vmul.f32 0.5, %v5114_v2  ;;  %v4357_v2 = vpack.c.bf16 %v1875_v28, %v1871_v6  ;;  %v1898_v6 = vld [vmem:[#allocation7 + $0x130] sm:$0xff]  ;;  %v1901_v28 = vld [vmem:[#allocation7 + $0x148] sm:$0xff] }
 0x627   :  { %v1508_v44 = vmul.f32 %v5112_v45, %v1497_v30  ;;  %v4355_v45 = vpack.c.bf16 %v1866_v15, %v1862_v63  ;;  %v1896_v63 = vld [vmem:[#allocation7 + $0x120] sm:$0xff] }
 0x628   :  { %v1507_v36 = vmul.f32 %v1501_v12, %v5845_v43  ;;  %v1506_v37 = vadd.f32 0.5, %v1505_v61  ;;  %v1864_v43 = vld [vmem:[#allocation7 + $0x20] sm:$0xff]  ;;  %v1870_v61 = vld [vmem:[#allocation7 + $0x50] sm:$0xff] }
 0x629   :  { %v1868_v12 = vld [vmem:[#allocation7 + $0x40] sm:$0xff] }
 0x62a   :  { %v5891_v57 = vadd.f32 %v1508_v44, %v1507_v36  ;;  %v1872_v44 = vld [vmem:[#allocation7 + $0x60] sm:$0xff] }
 0x62c   :  { %5115 = vtanh.f32 %v5891_v57 }
 0x636   :  { %v5116_v58 = vpop.eup %5115 }
 0x637   :  { %v5894_v0 = vmul.f32 %v5116_v58, %v1506_v37  ;;  %v1874_v37 = vld [vmem:[#allocation7 + $0x70] sm:$0xff]  ;;  %v1877_v58 = vld [vmem:[#allocation7 + $0x88] sm:$0xff] }
 0x639   :  { %1586 = vmatmul.mubr.f32.vlgmr.msra.gmra.mrb[12].mxu0 %v5894_v0  ;;  %1657 = vmatmul.mubr.f32.vlgmr.msra.gmra.mrb[12].mxu1 %v5894_v0 }
 0x63a   :  { %4260 = vmatpush1.bf16.msra.mxu0 %v5447_v29  ;;  %4292 = vmatpush1.bf16.msra.mxu1 %v5450_v32  ;;  %v1861_v29 = vld [vmem:[#allocation7 + $0x8] sm:$0xff] }
 0x63b   :  { %4262 = vmatprep.subr.bf16.mxu0 %v5459_v40  ;;  %4294 = vmatprep.subr.bf16.mxu1 %v5463_v41  ;;  %v1865_v32 = vld [vmem:[#allocation7 + $0x28] sm:$0xff]  ;;  %v1863_v40 = vld [vmem:[#allocation7 + $0x18] sm:$0xff] }
 0x63c   :  { %1758 = vmatprep.mubr.f32.mxu0 %v5292_v1  ;;  %1829 = vmatprep.mubr.f32.mxu1 %v5292_v1  ;;  %v4321_v41 = vpack.c.bf16 %v1865_v32, %v1861_v29  ;;  %v1881_v29 = vld [vmem:[#allocation7 + $0xa8] sm:$0xff]  ;;  %v1879_v32 = vld [vmem:[#allocation7 + $0x98] sm:$0xff] }
 0x63e   :  { %4264 = vmatpush1.bf16.msra.mxu0 %v5465_v42  ;;  %4296 = vmatpush1.bf16.msra.mxu1 %v5469_v46  ;;  %v1867_v42 = vld [vmem:[#allocation7 + $0x38] sm:$0xff] }
 0x63f   :  { %4266 = vmatprep.subr.bf16.mxu0 %v5478_v53  ;;  %4298 = vmatprep.subr.bf16.mxu1 %v5482_v54  ;;  %v4353_v46 = vpack.c.bf16 %v1867_v42, %v1863_v40  ;;  %v1883_v40 = vld [vmem:[#allocation7 + $0xb8] sm:$0xff]  ;;  %v4359_v42 = vpack.c.bf16 %v1874_v37, %v1870_v61  ;;  %v1902_v37 = vld [vmem:[#allocation7 + $0x150] sm:$0xff] }
 0x642   :  { %4268 = vmatpush1.bf16.msra.mxu0 %v5484_v55  ;;  %4300 = vmatpush1.bf16.msra.mxu1 %v5488_v59 }
 0x643   :  { %4270 = vmatprep.subr.bf16.mxu0 %v5497_v3  ;;  %4302 = vmatprep.subr.bf16.mxu1 %v5501_v4 }
 0x646   :  { %4272 = vmatpush1.bf16.msra.mxu0 %v5503_v5  ;;  %4304 = vmatpush1.bf16.msra.mxu1 %v5507_v9 }
 0x647   :  { %4274 = vmatprep.subr.bf16.mxu0 %v5516_v16  ;;  %4306 = vmatprep.subr.bf16.mxu1 %v5520_v17 }
 0x64a   :  { %4276 = vmatpush1.bf16.msra.mxu0 %v5522_v18  ;;  %4308 = vmatpush1.bf16.msra.mxu1 %v5526_v22 }
 0x64b   :  { %4278 = vmatprep.subr.bf16.mxu0 %v5535_v33  ;;  %4310 = vmatprep.subr.bf16.mxu1 %v5539_v34 }
 0x64e   :  { %4280 = vmatpush1.bf16.msra.mxu0 %v5541_v35  ;;  %4312 = vmatpush1.bf16.msra.mxu1 %v5545_v39 }
 0x64f   :  { %4282 = vmatprep.subr.bf16.mxu0 %v5554_v50  ;;  %4314 = vmatprep.subr.bf16.mxu1 %v5558_v51 }
 0x652   :  { %4284 = vmatpush1.bf16.msra.mxu0 %v5560_v52  ;;  %4316 = vmatpush1.bf16.msra.mxu1 %v5564_v60 }
 0x653   :  { %4286 = vmatprep.subr.bf16.mxu0 %v5573_v7  ;;  %4318 = vmatprep.subr.bf16.mxu1 %v5577_v8 }
 0x656   :  { %4288 = vmatpush1.bf16.msra.mxu0 %v5579_v10  ;;  %4320 = vmatpush1.bf16.msra.mxu1 %v5583_v11  ;;  %v1860_v11 = vld [vmem:[#allocation7] sm:$0xff] }
 0x657   :  { %4322 = vmatprep.subr.bf16.mxu0 %v4321_v41  ;;  %4354 = vmatprep.subr.bf16.mxu1 %v4353_v46  ;;  %v4323_v30 = vpack.c.bf16 %v1864_v43, %v1860_v11  ;;  %v4327_v41 = vpack.c.bf16 %v1872_v44, %v1868_v12  ;;  %v1876_v46 = vld [vmem:[#allocation7 + $0x80] sm:$0xff] }
 0x658   :  { %v1892_v43 = vld [vmem:[#allocation7 + $0x100] sm:$0xff] }
 0x659   :  { %v1900_v44 = vld [vmem:[#allocation7 + $0x140] sm:$0xff] }
 0x70c   :  { %v1587_v53 = vpop.f32.mrb[12].mxu0  ;;  %v1658_v54 = vpop.f32.mrb[12].mxu1 }
 0x70d   :  { %v4933_v55 = vadd.f32 %v1587_v53, %v5641_v20  ;;  %v1589_v59 = vpop.f32.mrb[13].mxu0  ;;  %v1660_v3 = vpop.f32.mrb[13].mxu1  ;;  %v4949_v16 = vadd.f32 %v1658_v54, %v5651_v27  ;;  %v1880_v53 = vld [vmem:[#allocation7 + $0xa0] sm:$0xff]  ;;  %v4329_v54 = vpack.c.bf16 %v1881_v29, %v1877_v58  ;;  %v1906_v58 = vld [vmem:[#allocation7 + $0x170] sm:$0xff]  ;;  %v1909_v29 = vld [vmem:[#allocation7 + $0x188] sm:$0xff] }
 0x70e   :  { %v4934_v4 = vadd.f32 %v1589_v59, %v5646_v23  ;;  %v4950_v17 = vadd.f32 %v1660_v3, %v5658_v47  ;;  %v1878_v59 = vld [vmem:[#allocation7 + $0x90] sm:$0xff] }
 0x70f   :  { %v1667_v5 = vmul.f32 0.5, %v4933_v55  ;;  %v4361_v55 = vpack.c.bf16 %v1883_v40, %v1879_v32  ;;  %v1882_v3 = vld [vmem:[#allocation7 + $0xb0] sm:$0xff]  ;;  %v1913_v32 = vld [vmem:[#allocation7 + $0x1a8] sm:$0xff]  ;;  %v1911_v40 = vld [vmem:[#allocation7 + $0x198] sm:$0xff] }
 0x710   :  { %v1671_v9 = vmul.f32 0.5, %v4934_v4  ;;  %v1676_v18 = vmul.f32 0.5, %v4950_v17  ;;  %v1885_v4 = vld [vmem:[#allocation7 + $0xc8] sm:$0xff]  ;;  %v4331_v17 = vpack.c.bf16 %v1880_v53, %v1876_v46  ;;  %v4375_v46 = vpack.c.bf16 %v1906_v58, %v1902_v37  ;;  %v1908_v53 = vld [vmem:[#allocation7 + $0x180] sm:$0xff]  ;;  %v1943_v37 = vld [vmem:[#allocation9 + $0x98] sm:$0xff] }
 0x711   :  { %5117 = vtanh.f32 %v1667_v5  ;;  %v1889_v5 = vld [vmem:[#allocation7 + $0xe8] sm:$0xff] }
 0x712   :  { %5119 = vtanh.f32 %v1671_v9  ;;  %v1887_v9 = vld [vmem:[#allocation7 + $0xd8] sm:$0xff] }
 0x713   :  { %5121 = vtanh.f32 %v4949_v16  ;;  %v1891_v16 = vld [vmem:[#allocation7 + $0xf8] sm:$0xff] }
 0x714   :  { %5123 = vtanh.f32 %v1676_v18  ;;  %v4363_v18 = vpack.c.bf16 %v1882_v3, %v1878_v59  ;;  %v1910_v3 = vld [vmem:[#allocation7 + $0x190] sm:$0xff] }
 0x71b   :  { %v5118_v22 = vpop.eup %5117 }
 0x71c   :  { %v5120_v33 = vpop.eup %5119  ;;  %v1669_v34 = vmul.f32 0.5, %v5118_v22  ;;  %v1884_v22 = vld [vmem:[#allocation7 + $0xc0] sm:$0xff] }
 0x71d   :  { %v1673_v35 = vmul.f32 0.5, %v5120_v33  ;;  %v5122_v50 = vpop.eup %5121  ;;  %v1888_v33 = vld [vmem:[#allocation7 + $0xe0] sm:$0xff] }
 0x71e   :  { %v1670_v39 = vadd.f32 0.5, %v1669_v34  ;;  %v5124_v8 = vpop.eup %5123  ;;  %v4333_v34 = vpack.c.bf16 %v1889_v5, %v1885_v4  ;;  %v1914_v4 = vld [vmem:[#allocation7 + $0x1b0] sm:$0xff]  ;;  %v1917_v5 = vld [vmem:[#allocation7 + $0x1c8] sm:$0xff] }
 0x71f   :  { %v1674_v51 = vadd.f32 0.5, %v1673_v35  ;;  %v1678_v10 = vmul.f32 0.5, %v5124_v8  ;;  %v4365_v35 = vpack.c.bf16 %v1891_v16, %v1887_v9  ;;  %v1899_v8 = vld [vmem:[#allocation7 + $0x138] sm:$0xff]  ;;  %v1921_v9 = vld [vmem:[#allocation7 + $0x1e8] sm:$0xff] }
 0x720   :  { %v1681_v52 = vmul.f32 %v5122_v50, %v1670_v39  ;;  %v1886_v39 = vld [vmem:[#allocation7 + $0xd0] sm:$0xff]  ;;  %v1919_v16 = vld [vmem:[#allocation7 + $0x1d8] sm:$0xff] }
 0x721   :  { %v1680_v60 = vmul.f32 %v1674_v51, %v5891_v57  ;;  %v1679_v56 = vadd.f32 0.5, %v1678_v10  ;;  %v4325_v57 = vpack.c.bf16 %v1873_v24, %v1869_v25  ;;  %v1890_v50 = vld [vmem:[#allocation7 + $0xf0] sm:$0xff]  ;;  %v1893_v51 = vld [vmem:[#allocation7 + $0x108] sm:$0xff]  ;;  %v4335_v10 = vpack.c.bf16 %v1888_v33, %v1884_v22  ;;  %v1916_v33 = vld [vmem:[#allocation7 + $0x1c0] sm:$0xff] }
 0x722   :  { %v4367_v11 = vpack.c.bf16 %v1890_v50, %v1886_v39  ;;  %v1894_v24 = vld [vmem:[#allocation7 + $0x110] sm:$0xff]  ;;  %v4379_v22 = vpack.c.bf16 %v1914_v4, %v1910_v3  ;;  %v1920_v39 = vld [vmem:[#allocation7 + $0x1e0] sm:$0xff]  ;;  %v1951_v3 = vld [vmem:[#allocation9 + $0xd8] sm:$0xff] }
 0x723   :  { %v5935_v7 = vadd.f32 %v1681_v52, %v1680_v60  ;;  %v1897_v52 = vld [vmem:[#allocation7 + $0x128] sm:$0xff]  ;;  %v1895_v60 = vld [vmem:[#allocation7 + $0x118] sm:$0xff]  ;;  %v4371_v12 = vpack.c.bf16 %v1898_v6, %v1894_v24  ;;  %v1918_v50 = vld [vmem:[#allocation7 + $0x1d0] sm:$0xff] }
 0x724   :  { %v4337_v15 = vpack.c.bf16 %v1897_v52, %v1893_v51  ;;  %v4369_v25 = vpack.c.bf16 %v1899_v8, %v1895_v60  ;;  %v1922_v51 = vld [vmem:[#allocation7 + $0x1f0] sm:$0xff]  ;;  %v4351_v52 = vpack.c.bf16 %v1920_v39, %v1916_v33  ;;  %v1924_v8 = vld [vmem:[#allocation9] sm:$0xff]  ;;  %v1935_v24 = vld [vmem:[#allocation9 + $0x58] sm:$0xff] }
 0x725   :  { %5125 = vtanh.f32 %v5935_v7  ;;  %v4383_v60 = vpack.c.bf16 %v1922_v51, %v1918_v50  ;;  %v1954_v33 = vld [vmem:[#allocation9 + $0xf0] sm:$0xff]  ;;  %v1961_v39 = vld [vmem:[#allocation9 + $0x128] sm:$0xff]  ;;  %v1959_v50 = vld [vmem:[#allocation9 + $0x118] sm:$0xff] }
 0x72f   :  { %v5126_v38 = vpop.eup %5125 }
 0x730   :  { %v5938_v36 = vmul.f32 %v5126_v38, %v1679_v56  ;;  %v1905_v56 = vld [vmem:[#allocation7 + $0x168] sm:$0xff]  ;;  %v1903_v38 = vld [vmem:[#allocation7 + $0x158] sm:$0xff] }
 0x732   :  { %1759 = vmatmul.mubr.f32.vlgmr.msra.gmra.mrb[14].mxu0 %v5938_v36  ;;  %1830 = vmatmul.mubr.f32.vlgmr.msra.gmra.mrb[14].mxu1 %v5938_v36 }
 0x733   :  { %4324 = vmatpush1.bf16.msra.mxu0 %v4323_v30  ;;  %4356 = vmatpush1.bf16.msra.mxu1 %v4355_v45  ;;  %v1907_v30 = vld [vmem:[#allocation7 + $0x178] sm:$0xff]  ;;  %v4339_v45 = vpack.c.bf16 %v1896_v63, %v1892_v43  ;;  %v1926_v43 = vld [vmem:[#allocation9 + $0x10] sm:$0xff] }
 0x734   :  { %4326 = vmatprep.subr.bf16.mxu0 %v4325_v57  ;;  %4358 = vmatprep.subr.bf16.mxu1 %v4357_v2  ;;  %v1904_v57 = vld [vmem:[#allocation7 + $0x160] sm:$0xff]  ;;  %v4341_v2 = vpack.c.bf16 %v1905_v56, %v1901_v28  ;;  %v4373_v61 = vpack.c.bf16 %v1907_v30, %v1903_v38  ;;  %v1930_v63 = vld [vmem:[#allocation9 + $0x30] sm:$0xff]  ;;  %v1939_v28 = vld [vmem:[#allocation9 + $0x78] sm:$0xff] }
 0x735   :  { %2082 = vmatprep.mubr.f32.mxu0 %v5292_v1  ;;  %2195 = vmatprep.mubr.f32.mxu1 %v5292_v1  ;;  %v1932_v56 = vld [vmem:[#allocation9 + $0x40] sm:$0xff]  ;;  %v5986_v30 = vpack.c.bf16 %v1939_v28, %v1935_v24 }
 0x736   :  { %v1936_v38 = vld [vmem:[#allocation9 + $0x60] sm:$0xff] }
 0x737   :  { %4328 = vmatpush1.bf16.msra.mxu0 %v4327_v41  ;;  %4360 = vmatpush1.bf16.msra.mxu1 %v4359_v42  ;;  %v1915_v41 = vld [vmem:[#allocation7 + $0x1b8] sm:$0xff]  ;;  %v4343_v42 = vpack.c.bf16 %v1904_v57, %v1900_v44  ;;  %v1938_v44 = vld [vmem:[#allocation9 + $0x70] sm:$0xff] }
 0x738   :  { %4330 = vmatprep.subr.bf16.mxu0 %v4329_v54  ;;  %4362 = vmatprep.subr.bf16.mxu1 %v4361_v55  ;;  %v1912_v54 = vld [vmem:[#allocation7 + $0x1a0] sm:$0xff]  ;;  %v4345_v55 = vpack.c.bf16 %v1913_v32, %v1909_v29  ;;  %v4377_v59 = vpack.c.bf16 %v1915_v41, %v1911_v40  ;;  %v1947_v29 = vld [vmem:[#allocation9 + $0xb8] sm:$0xff] }
 0x739   :  { %v1940_v32 = vld [vmem:[#allocation9 + $0x80] sm:$0xff]  ;;  %v5998_v41 = vpack.c.bf16 %v1947_v29, %v1943_v37  ;;  %v1977_v37 = vld [vmem:[#allocation9 + $0x1a8] sm:$0xff] }
 0x73a   :  { %v1944_v40 = vld [vmem:[#allocation9 + $0xa0] sm:$0xff] }
 0x73b   :  { %4332 = vmatpush1.bf16.msra.mxu0 %v4331_v17  ;;  %4364 = vmatpush1.bf16.msra.mxu1 %v4363_v18  ;;  %v1923_v17 = vld [vmem:[#allocation7 + $0x1f8] sm:$0xff]  ;;  %v4347_v18 = vpack.c.bf16 %v1912_v54, %v1908_v53  ;;  %v1946_v53 = vld [vmem:[#allocation9 + $0xb0] sm:$0xff] }
 0x73c   :  { %4334 = vmatprep.subr.bf16.mxu0 %v4333_v34  ;;  %4366 = vmatprep.subr.bf16.mxu1 %v4365_v35  ;;  %v4349_v34 = vpack.c.bf16 %v1921_v9, %v1917_v5  ;;  %v4381_v35 = vpack.c.bf16 %v1923_v17, %v1919_v16  ;;  %v1955_v5 = vld [vmem:[#allocation9 + $0xf8] sm:$0xff]  ;;  %v1948_v9 = vld [vmem:[#allocation9 + $0xc0] sm:$0xff] }
 0x73d   :  { %v1952_v16 = vld [vmem:[#allocation9 + $0xe0] sm:$0xff]  ;;  %v6010_v17 = vpack.c.bf16 %v1955_v5, %v1951_v3  ;;  %v1974_v3 = vld [vmem:[#allocation9 + $0x190] sm:$0xff] }
 0x73e   :  { %v1978_v5 = vld [vmem:[#allocation9 + $0x1b0] sm:$0xff] }
 0x73f   :  { %4336 = vmatpush1.bf16.msra.mxu0 %v4335_v10  ;;  %4368 = vmatpush1.bf16.msra.mxu1 %v4367_v11 }
 0x740   :  { %4338 = vmatprep.subr.bf16.mxu0 %v4337_v15  ;;  %4370 = vmatprep.subr.bf16.mxu1 %v4369_v25  ;;  %v1933_v15 = vld [vmem:[#allocation9 + $0x48] sm:$0xff] }
 0x741   :  { %v1937_v25 = vld [vmem:[#allocation9 + $0x68] sm:$0xff] }
 0x742   :  { %v5984_v6 = vpack.c.bf16 %v1937_v25, %v1933_v15  ;;  %v1967_v15 = vld [vmem:[#allocation9 + $0x158] sm:$0xff] }
 0x743   :  { %4340 = vmatpush1.bf16.msra.mxu0 %v4339_v45  ;;  %4372 = vmatpush1.bf16.msra.mxu1 %v4371_v12  ;;  %v5988_v45 = vpack.c.bf16 %v1936_v38, %v1932_v56  ;;  %v1934_v12 = vld [vmem:[#allocation9 + $0x50] sm:$0xff]  ;;  %v1971_v25 = vld [vmem:[#allocation9 + $0x178] sm:$0xff]  ;;  %v1964_v56 = vld [vmem:[#allocation9 + $0x140] sm:$0xff] }
 0x744   :  { %4342 = vmatprep.subr.bf16.mxu0 %v4341_v2  ;;  %4374 = vmatprep.subr.bf16.mxu1 %v4373_v61  ;;  %v5991_v57 = vpack.c.bf16 %v1938_v44, %v1934_v12  ;;  %v1941_v2 = vld [vmem:[#allocation9 + $0x88] sm:$0xff]  ;;  %v6033_v28 = vpack.c.bf16 %v1971_v25, %v1967_v15  ;;  %v1968_v38 = vld [vmem:[#allocation9 + $0x160] sm:$0xff]  ;;  %v1966_v12 = vld [vmem:[#allocation9 + $0x150] sm:$0xff] }
 0x745   :  { %v1945_v61 = vld [vmem:[#allocation9 + $0xa8] sm:$0xff]  ;;  %v6036_v44 = vpack.c.bf16 %v1968_v38, %v1964_v56 }
 0x746   :  { %v5996_v58 = vpack.c.bf16 %v1945_v61, %v1941_v2  ;;  %v1970_v2 = vld [vmem:[#allocation9 + $0x170] sm:$0xff]  ;;  %v1973_v61 = vld [vmem:[#allocation9 + $0x188] sm:$0xff] }
 0x747   :  { %4344 = vmatpush1.bf16.msra.mxu0 %v4343_v42  ;;  %4376 = vmatpush1.bf16.msra.mxu1 %v4375_v46  ;;  %v6000_v42 = vpack.c.bf16 %v1944_v40, %v1940_v32  ;;  %v1942_v46 = vld [vmem:[#allocation9 + $0x90] sm:$0xff]  ;;  %v6040_v29 = vpack.c.bf16 %v1970_v2, %v1966_v12  ;;  %v6042_v32 = vpack.c.bf16 %v1977_v37, %v1973_v61  ;;  %v1975_v40 = vld [vmem:[#allocation9 + $0x198] sm:$0xff] }
 0x748   :  { %4346 = vmatprep.subr.bf16.mxu0 %v4345_v55  ;;  %4378 = vmatprep.subr.bf16.mxu1 %v4377_v59  ;;  %v6003_v54 = vpack.c.bf16 %v1946_v53, %v1942_v46  ;;  %v1949_v55 = vld [vmem:[#allocation9 + $0xc8] sm:$0xff]  ;;  %v1979_v46 = vld [vmem:[#allocation9 + $0x1b8] sm:$0xff]  ;;  %v1972_v53 = vld [vmem:[#allocation9 + $0x180] sm:$0xff] }
 0x749   :  { %v1953_v59 = vld [vmem:[#allocation9 + $0xe8] sm:$0xff] }
 0x74a   :  { %v6008_v4 = vpack.c.bf16 %v1953_v59, %v1949_v55  ;;  %v6044_v55 = vpack.c.bf16 %v1979_v46, %v1975_v40  ;;  %v1976_v59 = vld [vmem:[#allocation9 + $0x1a0] sm:$0xff] }
 0x74b   :  { %4348 = vmatpush1.bf16.msra.mxu0 %v4347_v18  ;;  %4380 = vmatpush1.bf16.msra.mxu1 %v4379_v22  ;;  %v6012_v18 = vpack.c.bf16 %v1952_v16, %v1948_v9  ;;  %v1950_v22 = vld [vmem:[#allocation9 + $0xd0] sm:$0xff]  ;;  %v6047_v9 = vpack.c.bf16 %v1976_v59, %v1972_v53  ;;  %v6051_v16 = vpack.c.bf16 %v1978_v5, %v1974_v3 }
 0x74c   :  { %4350 = vmatprep.subr.bf16.mxu0 %v4349_v34  ;;  %4382 = vmatprep.subr.bf16.mxu1 %v4381_v35  ;;  %v6015_v34 = vpack.c.bf16 %v1954_v33, %v1950_v22  ;;  %v1957_v35 = vld [vmem:[#allocation9 + $0x108] sm:$0xff] }
 0x74d   :  { %v6020_v51 = vpack.c.bf16 %v1961_v39, %v1957_v35  ;;  %v1981_v22 = vld [vmem:[#allocation9 + $0x1c8] sm:$0xff]  ;;  %v1983_v35 = vld [vmem:[#allocation9 + $0x1d8] sm:$0xff] }
 0x74e   :  { %v1985_v33 = vld [vmem:[#allocation9 + $0x1e8] sm:$0xff] }
 0x74f   :  { %4352 = vmatpush1.bf16.msra.mxu0 %v4351_v52  ;;  %4384 = vmatpush1.bf16.msra.mxu1 %v4383_v60  ;;  %v1963_v52 = vld [vmem:[#allocation9 + $0x138] sm:$0xff]  ;;  %v1956_v60 = vld [vmem:[#allocation9 + $0x100] sm:$0xff]  ;;  %v6056_v39 = vpack.c.bf16 %v1985_v33, %v1981_v22 }
 0x752   :  { %2083 = vmatmul.mubr.f32.vlgmr.msra.gmra.mrb[16].mxu0 %v5664_v31  ;;  %2196 = vmatmul.mubr.f32.vlgmr.msra.gmra.mrb[16].mxu1 %v5664_v31  ;;  %v1925_v31 = vld [vmem:[#allocation9 + $0x8] sm:$0xff] }
 0x753   :  { %2088 = vmatprep.mubr.f32.mxu0 %v5292_v1  ;;  %2201 = vmatprep.mubr.f32.mxu1 %v5292_v1 }
 0x756   :  { %2089 = vmatmul.mubr.f32.gmra.mrb[18].mxu0 %v5710_v48  ;;  %2202 = vmatmul.mubr.f32.gmra.mrb[18].mxu1 %v5710_v48  ;;  %v1929_v48 = vld [vmem:[#allocation9 + $0x28] sm:$0xff] }
 0x757   :  { %2094 = vmatprep.mubr.f32.mxu0 %v5292_v1  ;;  %2207 = vmatprep.mubr.f32.mxu1 %v5292_v1 }
 0x75a   :  { %2095 = vmatmul.mubr.f32.gmra.mrb[20].mxu0 %v5756_v62  ;;  %2208 = vmatmul.mubr.f32.gmra.mrb[20].mxu1 %v5756_v62  ;;  %v1927_v62 = vld [vmem:[#allocation9 + $0x18] sm:$0xff] }
 0x75b   :  { %2100 = vmatprep.mubr.f32.mxu0 %v5292_v1  ;;  %2213 = vmatprep.mubr.f32.mxu1 %v5292_v1 }
 0x75e   :  { %2101 = vmatmul.mubr.f32.gmra.mrb[22].mxu0 %v5802_v26  ;;  %2214 = vmatmul.mubr.f32.gmra.mrb[22].mxu1 %v5802_v26  ;;  %v5972_v26 = vpack.c.bf16 %v1929_v48, %v1925_v31  ;;  %v1960_v31 = vld [vmem:[#allocation9 + $0x120] sm:$0xff]  ;;  %v6022_v48 = vpack.c.bf16 %v1963_v52, %v1959_v50  ;;  %v1987_v50 = vld [vmem:[#allocation9 + $0x1f8] sm:$0xff] }
 0x75f   :  { %2106 = vmatprep.mubr.f32.mxu0 %v5292_v1  ;;  %2219 = vmatprep.mubr.f32.mxu1 %v5292_v1  ;;  %v1980_v52 = vld [vmem:[#allocation9 + $0x1c0] sm:$0xff] }
 0x760   :  { %4386 = vmatprep.subr.bf16.mxu0 %v5972_v26 }
 0x762   :  { %2107 = vmatmul.mubr.f32.gmra.mrb[24].mxu0 %v5848_v49  ;;  %2220 = vmatmul.mubr.f32.gmra.mrb[24].mxu1 %v5848_v49  ;;  %v1931_v49 = vld [vmem:[#allocation9 + $0x38] sm:$0xff] }
 0x763   :  { %2112 = vmatprep.mubr.f32.mxu0 %v5292_v1  ;;  %2225 = vmatprep.mubr.f32.mxu1 %v5292_v1  ;;  %v5974_v10 = vpack.c.bf16 %v1931_v49, %v1927_v62  ;;  %v6024_v62 = vpack.c.bf16 %v1960_v31, %v1956_v60  ;;  %v1958_v49 = vld [vmem:[#allocation9 + $0x110] sm:$0xff]  ;;  %v1984_v60 = vld [vmem:[#allocation9 + $0x1e0] sm:$0xff]  ;;  %v6058_v31 = vpack.c.bf16 %v1987_v50, %v1983_v35 }
 0x765   :  { %4418 = vmatprep.subr.bf16.mxu1 %v5974_v10 }
 0x766   :  { %2113 = vmatmul.mubr.f32.gmra.mrb[26].mxu0 %v5894_v0  ;;  %2226 = vmatmul.mubr.f32.gmra.mrb[26].mxu1 %v5894_v0  ;;  %v1928_v0 = vld [vmem:[#allocation9 + $0x20] sm:$0xff] }
 0x767   :  { %2118 = vmatprep.mubr.f32.mxu0 %v5292_v1  ;;  %2231 = vmatprep.mubr.f32.mxu1 %v5292_v1  ;;  %v5976_v11 = vpack.c.bf16 %v1928_v0, %v1924_v8  ;;  %v1962_v8 = vld [vmem:[#allocation9 + $0x130] sm:$0xff]  ;;  %v1965_v0 = vld [vmem:[#allocation9 + $0x148] sm:$0xff] }
 0x769   :  { %4388 = vmatpush1.bf16.msra.mxu0 %v5976_v11 }
 0x76a   :  { %2119 = vmatmul.mubr.f32.gmra.mrb[28].mxu0 %v5938_v36  ;;  %2232 = vmatmul.mubr.f32.gmra.mrb[28].mxu1 %v5938_v36  ;;  %v5979_v36 = vpack.c.bf16 %v1930_v63, %v1926_v43  ;;  %v6027_v43 = vpack.c.bf16 %v1962_v8, %v1958_v49  ;;  %v1969_v63 = vld [vmem:[#allocation9 + $0x168] sm:$0xff]  ;;  %v6060_v49 = vpack.c.bf16 %v1984_v60, %v1980_v52  ;;  %v1982_v8 = vld [vmem:[#allocation9 + $0x1d0] sm:$0xff] }
 0x76b   :  { %2124 = vmatprep.mubr.f32.mxu0 %v5292_v1  ;;  %2237 = vmatprep.mubr.f32.mxu1 %v5292_v1  ;;  %v6031_v24 = vpack.c.bf16 %v1969_v63, %v1965_v0  ;;  %v1986_v0 = vld [vmem:[#allocation9 + $0x1f0] sm:$0xff] }
 0x76c   :  { %4420 = vmatpush1.bf16.msra.mxu1 %v5979_v36  ;;  %4390 = vmatprep.subr.bf16.mxu0 %v5984_v6  ;;  %v6063_v63 = vpack.c.bf16 %v1986_v0, %v1982_v8 }
 0x76d   :  { %4422 = vmatprep.subr.bf16.mxu1 %v5986_v30  ;;  %4392 = vmatpush1.bf16.msra.mxu0 %v5988_v45 }
 0x76e   :  { %4394 = vmatprep.subr.bf16.mxu0 %v5996_v58 }
 0x770   :  { %4424 = vmatpush1.bf16.msra.mxu1 %v5991_v57 }
 0x771   :  { %4426 = vmatprep.subr.bf16.mxu1 %v5998_v41  ;;  %4396 = vmatpush1.bf16.msra.mxu0 %v6000_v42 }
 0x772   :  { %4398 = vmatprep.subr.bf16.mxu0 %v6008_v4 }
 0x774   :  { %4428 = vmatpush1.bf16.msra.mxu1 %v6003_v54 }
 0x775   :  { %4430 = vmatprep.subr.bf16.mxu1 %v6010_v17  ;;  %4400 = vmatpush1.bf16.msra.mxu0 %v6012_v18 }
 0x776   :  { %4402 = vmatprep.subr.bf16.mxu0 %v6020_v51 }
 0x778   :  { %4432 = vmatpush1.bf16.msra.mxu1 %v6015_v34 }
 0x779   :  { %4434 = vmatprep.subr.bf16.mxu1 %v6022_v48  ;;  %4404 = vmatpush1.bf16.msra.mxu0 %v6024_v62 }
 0x77a   :  { %4406 = vmatprep.subr.bf16.mxu0 %v6031_v24 }
 0x77c   :  { %4436 = vmatpush1.bf16.msra.mxu1 %v6027_v43 }
 0x77d   :  { %4438 = vmatprep.subr.bf16.mxu1 %v6033_v28  ;;  %4408 = vmatpush1.bf16.msra.mxu0 %v6036_v44 }
 0x77e   :  { %4410 = vmatprep.subr.bf16.mxu0 %v6042_v32 }
 0x780   :  { %4440 = vmatpush1.bf16.msra.mxu1 %v6040_v29 }
 0x781   :  { %4442 = vmatprep.subr.bf16.mxu1 %v6044_v55  ;;  %4412 = vmatpush1.bf16.msra.mxu0 %v6047_v9 }
 0x782   :  { %4414 = vmatprep.subr.bf16.mxu0 %v6056_v39 }
 0x784   :  { %4444 = vmatpush1.bf16.msra.mxu1 %v6051_v16 }
 0x785   :  { %4446 = vmatprep.subr.bf16.mxu1 %v6058_v31  ;;  %4416 = vmatpush1.bf16.msra.mxu0 %v6060_v49 }
 0x786   :  { %4450 = vmatprep.subr.bf16.mxu0 %v5972_v26 }
 0x788   :  { %4448 = vmatpush1.bf16.msra.mxu1 %v6063_v63 }
 0x789   :  { %4482 = vmatprep.subr.bf16.mxu1 %v5974_v10 }
 0x805   :  { %v1760_v15 = vpop.f32.mrb[14].mxu0  ;;  %v1831_v25 = vpop.f32.mrb[14].mxu1 }
 0x806   :  { %v4935_v56 = vadd.f32 %v1760_v15, %v5641_v20  ;;  %v1762_v38 = vpop.f32.mrb[15].mxu0  ;;  %v1833_v12 = vpop.f32.mrb[15].mxu1  ;;  %v4951_v40 = vadd.f32 %v1831_v25, %v5651_v27 }
 0x807   :  { %v4936_v2 = vadd.f32 %v1762_v38, %v5646_v23  ;;  %v4952_v46 = vadd.f32 %v1833_v12, %v5658_v47  ;;  %v1988_v47 = vld [vmem:[%s6452_s6] sm:$0xf] }
 0x808   :  { %v1840_v61 = vmul.f32 0.5, %v4935_v56  ;;  %v6122_v25 = vrot.slane %v1988_v47, %v167_v19  ;;  %v6457_v19 = vsub.s32 3, %v5632_v13 }
 0x809   :  { %v1844_v37 = vmul.f32 0.5, %v4936_v2  ;;  %v1849_v53 = vmul.f32 0.5, %v4952_v46  ;;  %v6127_v2 = vrot.slane %v1988_v47, %v171_v21 }
 0x80a   :  { %5127 = vtanh.f32 %v1840_v61 }
 0x80b   :  { %5129 = vtanh.f32 %v1844_v37 }
 0x80c   :  { %5131 = vtanh.f32 %v4951_v40 }
 0x80d   :  { %5133 = vtanh.f32 %v1849_v53 }
 0x814   :  { %v5128_v59 = vpop.eup %5127 }
 0x815   :  { %v5130_v3 = vpop.eup %5129  ;;  %v1842_v5 = vmul.f32 0.5, %v5128_v59  ;;  %v6133_v59 = vrot.slane %v1988_v47, %v6457_v19 }
 0x816   :  { %v1846_v22 = vmul.f32 0.5, %v5130_v3  ;;  %v5132_v33 = vpop.eup %5131 }
 0x817   :  { %v1843_v20 = vadd.f32 0.5, %v1842_v5  ;;  %v5134_v60 = vpop.eup %5133 }
 0x818   :  { %v1847_v35 = vadd.f32 0.5, %v1846_v22  ;;  %v1851_v27 = vmul.f32 0.5, %v5134_v60 }
 0x819   :  { %v1854_v50 = vmul.f32 %v5132_v33, %v1843_v20 }
 0x81a   :  { %v1853_v23 = vmul.f32 %v1847_v35, %v5935_v7  ;;  %v1852_v8 = vadd.f32 0.5, %v1851_v27  ;;  %v6118_v7 = vrot.slane %v1988_v47, %v163_v14 }
 0x81c   :  { %v1855_v52 = vadd.f32 %v1854_v50, %v1853_v23 }
 0x81e   :  { %5135 = vtanh.f32 %v1855_v52 }
 0x828   :  { %v5136_v0 = vpop.eup %5135 }
 0x829   :  { %v1857_v15 = vmul.f32 %v5136_v0, %v1852_v8 }
 0x82b   :  { %2125 = vmatmul.mubr.f32.gmra.mrb[30].mxu0 %v1857_v15  ;;  %2238 = vmatmul.mubr.f32.gmra.mrb[30].mxu1 %v1857_v15 }
 0x82c   :  { %2344 = vmatprep.mubr.f32.mxu0 %v5292_v1  ;;  %2415 = vmatprep.mubr.f32.mxu1 %v5292_v1 }
 0x82f   :  { %2345 = vmatmul.mubr.f32.vlgmr.msra.gmra.mrb[16].mxu0 %v5292_v1  ;;  %2416 = vmatmul.mubr.f32.vlgmr.msra.gmra.mrb[16].mxu1 %v5292_v1 }
 0x830   :  { %4452 = vmatpush1.bf16.msra.mxu0 %v5976_v11  ;;  %4484 = vmatpush1.bf16.msra.mxu1 %v5979_v36 }
 0x831   :  { %4454 = vmatprep.subr.bf16.mxu0 %v5984_v6  ;;  %4486 = vmatprep.subr.bf16.mxu1 %v5986_v30 }
 0x832   :  { %2512 = vmatprep.mubr.f32.mxu0 %v5292_v1  ;;  %2583 = vmatprep.mubr.f32.mxu1 %v5292_v1 }
 0x834   :  { %4456 = vmatpush1.bf16.msra.mxu0 %v5988_v45  ;;  %4488 = vmatpush1.bf16.msra.mxu1 %v5991_v57 }
 0x835   :  { %4458 = vmatprep.subr.bf16.mxu0 %v5996_v58  ;;  %4490 = vmatprep.subr.bf16.mxu1 %v5998_v41 }
 0x838   :  { %4460 = vmatpush1.bf16.msra.mxu0 %v6000_v42  ;;  %4492 = vmatpush1.bf16.msra.mxu1 %v6003_v54 }
 0x839   :  { %4462 = vmatprep.subr.bf16.mxu0 %v6008_v4  ;;  %4494 = vmatprep.subr.bf16.mxu1 %v6010_v17 }
 0x83c   :  { %4464 = vmatpush1.bf16.msra.mxu0 %v6012_v18  ;;  %4496 = vmatpush1.bf16.msra.mxu1 %v6015_v34 }
 0x83d   :  { %4466 = vmatprep.subr.bf16.mxu0 %v6020_v51  ;;  %4498 = vmatprep.subr.bf16.mxu1 %v6022_v48 }
 0x840   :  { %4468 = vmatpush1.bf16.msra.mxu0 %v6024_v62  ;;  %4500 = vmatpush1.bf16.msra.mxu1 %v6027_v43 }
 0x841   :  { %4470 = vmatprep.subr.bf16.mxu0 %v6031_v24  ;;  %4502 = vmatprep.subr.bf16.mxu1 %v6033_v28 }
 0x844   :  { %4472 = vmatpush1.bf16.msra.mxu0 %v6036_v44  ;;  %4504 = vmatpush1.bf16.msra.mxu1 %v6040_v29 }
 0x845   :  { %4474 = vmatprep.subr.bf16.mxu0 %v6042_v32  ;;  %4506 = vmatprep.subr.bf16.mxu1 %v6044_v55 }
 0x848   :  { %4476 = vmatpush1.bf16.msra.mxu0 %v6047_v9  ;;  %4508 = vmatpush1.bf16.msra.mxu1 %v6051_v16 }
 0x849   :  { %4478 = vmatprep.subr.bf16.mxu0 %v6056_v39  ;;  %4510 = vmatprep.subr.bf16.mxu1 %v6058_v31 }
 0x84c   :  { %4480 = vmatpush1.bf16.msra.mxu0 %v6060_v49  ;;  %4512 = vmatpush1.bf16.msra.mxu1 %v6063_v63 }
 0x84d   :  { %4514 = vmatprep.subr.bf16.mxu0 %v5972_v26  ;;  %4546 = vmatprep.subr.bf16.mxu1 %v5974_v10 }
 0x902   :  { %v2346_v56 = vpop.f32.mrb[16].mxu0  ;;  %v2417_v38 = vpop.f32.mrb[16].mxu1 }
 0x903   :  { %v4953_v12 = vadd.f32 %v2346_v56, %v6118_v7  ;;  %v2348_v61 = vpop.f32.mrb[17].mxu0  ;;  %v2419_v37 = vpop.f32.mrb[17].mxu1  ;;  %v4969_v14 = vadd.f32 %v2417_v38, %v6127_v2 }
 0x904   :  { %v4954_v40 = vadd.f32 %v2348_v61, %v6122_v25  ;;  %v4970_v3 = vadd.f32 %v2419_v37, %v6133_v59 }
 0x905   :  { %v2426_v46 = vmul.f32 0.5, %v4953_v12 }
 0x906   :  { %v2430_v53 = vmul.f32 0.5, %v4954_v40  ;;  %v2435_v5 = vmul.f32 0.5, %v4970_v3 }
 0x907   :  { %5137 = vtanh.f32 %v2426_v46 }
 0x908   :  { %5139 = vtanh.f32 %v2430_v53 }
 0x909   :  { %5141 = vtanh.f32 %v4969_v14 }
 0x90a   :  { %5143 = vtanh.f32 %v2435_v5 }
 0x911   :  { %v5138_v21 = vpop.eup %5137 }
 0x912   :  { %v5140_v22 = vpop.eup %5139  ;;  %v2428_v20 = vmul.f32 0.5, %v5138_v21 }
 0x913   :  { %v2432_v33 = vmul.f32 0.5, %v5140_v22  ;;  %v5142_v50 = vpop.eup %5141 }
 0x914   :  { %v2429_v35 = vadd.f32 0.5, %v2428_v20  ;;  %v5144_v13 = vpop.eup %5143 }
 0x915   :  { %v2433_v23 = vadd.f32 0.5, %v2432_v33  ;;  %v2437_v8 = vmul.f32 0.5, %v5144_v13 }
 0x916   :  { %v2440_v52 = vmul.f32 %v5142_v50, %v2429_v35 }
 0x917   :  { %v2439_v60 = vmul.f32 0.0, %v2433_v23  ;;  %v2438_v0 = vadd.f32 0.5, %v2437_v8 }
 0x919   :  { %v6136_v27 = vadd.f32 %v2440_v52, %v2439_v60 }
 0x91b   :  { %5145 = vtanh.f32 %v6136_v27 }
 0x925   :  { %v5146_v15 = vpop.eup %5145 }
 0x926   :  { %v2443_v47 = vmul.f32 %v5146_v15, %v2438_v0 }
 0x928   :  { %2513 = vmatmul.mubr.f32.vlgmr.msra.gmra.mrb[18].mxu0 %v2443_v47  ;;  %2584 = vmatmul.mubr.f32.vlgmr.msra.gmra.mrb[18].mxu1 %v2443_v47 }
 0x929   :  { %4516 = vmatpush1.bf16.msra.mxu0 %v5976_v11  ;;  %4548 = vmatpush1.bf16.msra.mxu1 %v5979_v36 }
 0x92a   :  { %4518 = vmatprep.subr.bf16.mxu0 %v5984_v6  ;;  %4550 = vmatprep.subr.bf16.mxu1 %v5986_v30 }
 0x92b   :  { %2680 = vmatprep.mubr.f32.mxu0 %v5292_v1  ;;  %2751 = vmatprep.mubr.f32.mxu1 %v5292_v1 }
 0x92d   :  { %4520 = vmatpush1.bf16.msra.mxu0 %v5988_v45  ;;  %4552 = vmatpush1.bf16.msra.mxu1 %v5991_v57 }
 0x92e   :  { %4522 = vmatprep.subr.bf16.mxu0 %v5996_v58  ;;  %4554 = vmatprep.subr.bf16.mxu1 %v5998_v41 }
 0x931   :  { %4524 = vmatpush1.bf16.msra.mxu0 %v6000_v42  ;;  %4556 = vmatpush1.bf16.msra.mxu1 %v6003_v54 }
 0x932   :  { %4526 = vmatprep.subr.bf16.mxu0 %v6008_v4  ;;  %4558 = vmatprep.subr.bf16.mxu1 %v6010_v17 }
 0x935   :  { %4528 = vmatpush1.bf16.msra.mxu0 %v6012_v18  ;;  %4560 = vmatpush1.bf16.msra.mxu1 %v6015_v34 }
 0x936   :  { %4530 = vmatprep.subr.bf16.mxu0 %v6020_v51  ;;  %4562 = vmatprep.subr.bf16.mxu1 %v6022_v48 }
 0x939   :  { %4532 = vmatpush1.bf16.msra.mxu0 %v6024_v62  ;;  %4564 = vmatpush1.bf16.msra.mxu1 %v6027_v43 }
 0x93a   :  { %4534 = vmatprep.subr.bf16.mxu0 %v6031_v24  ;;  %4566 = vmatprep.subr.bf16.mxu1 %v6033_v28 }
 0x93d   :  { %4536 = vmatpush1.bf16.msra.mxu0 %v6036_v44  ;;  %4568 = vmatpush1.bf16.msra.mxu1 %v6040_v29 }
 0x93e   :  { %4538 = vmatprep.subr.bf16.mxu0 %v6042_v32  ;;  %4570 = vmatprep.subr.bf16.mxu1 %v6044_v55 }
 0x941   :  { %4540 = vmatpush1.bf16.msra.mxu0 %v6047_v9  ;;  %4572 = vmatpush1.bf16.msra.mxu1 %v6051_v16 }
 0x942   :  { %4542 = vmatprep.subr.bf16.mxu0 %v6056_v39  ;;  %4574 = vmatprep.subr.bf16.mxu1 %v6058_v31 }
 0x945   :  { %4544 = vmatpush1.bf16.msra.mxu0 %v6060_v49  ;;  %4576 = vmatpush1.bf16.msra.mxu1 %v6063_v63 }
 0x946   :  { %4578 = vmatprep.subr.bf16.mxu0 %v5972_v26  ;;  %4610 = vmatprep.subr.bf16.mxu1 %v5974_v10 }
 0x9fb   :  { %v2514_v56 = vpop.f32.mrb[18].mxu0  ;;  %v2585_v38 = vpop.f32.mrb[18].mxu1 }
 0x9fc   :  { %v4955_v12 = vadd.f32 %v2514_v56, %v6118_v7  ;;  %v2516_v61 = vpop.f32.mrb[19].mxu0  ;;  %v2587_v37 = vpop.f32.mrb[19].mxu1  ;;  %v4971_v14 = vadd.f32 %v2585_v38, %v6127_v2 }
 0x9fd   :  { %v4956_v40 = vadd.f32 %v2516_v61, %v6122_v25  ;;  %v4972_v19 = vadd.f32 %v2587_v37, %v6133_v59 }
 0x9fe   :  { %v2594_v46 = vmul.f32 0.5, %v4955_v12 }
 0x9ff   :  { %v2598_v53 = vmul.f32 0.5, %v4956_v40  ;;  %v2603_v3 = vmul.f32 0.5, %v4972_v19 }
 0xa00   :  { %5147 = vtanh.f32 %v2594_v46 }
 0xa01   :  { %5149 = vtanh.f32 %v2598_v53 }
 0xa02   :  { %5151 = vtanh.f32 %v4971_v14 }
 0xa03   :  { %5153 = vtanh.f32 %v2603_v3 }
 0xa0a   :  { %v5148_v5 = vpop.eup %5147 }
 0xa0b   :  { %v5150_v21 = vpop.eup %5149  ;;  %v2596_v22 = vmul.f32 0.5, %v5148_v5 }
 0xa0c   :  { %v2600_v20 = vmul.f32 0.5, %v5150_v21  ;;  %v5152_v35 = vpop.eup %5151 }
 0xa0d   :  { %v2597_v33 = vadd.f32 0.5, %v2596_v22  ;;  %v5154_v13 = vpop.eup %5153 }
 0xa0e   :  { %v2601_v50 = vadd.f32 0.5, %v2600_v20  ;;  %v2605_v8 = vmul.f32 0.5, %v5154_v13 }
 0xa0f   :  { %v2608_v23 = vmul.f32 %v5152_v35, %v2597_v33 }
 0xa10   :  { %v2607_v52 = vmul.f32 %v2601_v50, %v6136_v27  ;;  %v2606_v0 = vadd.f32 0.5, %v2605_v8 }
 0xa12   :  { %v6178_v60 = vadd.f32 %v2608_v23, %v2607_v52 }
 0xa14   :  { %5155 = vtanh.f32 %v6178_v60 }
 0xa1e   :  { %v5156_v15 = vpop.eup %5155 }
 0xa1f   :  { %v2611_v47 = vmul.f32 %v5156_v15, %v2606_v0 }
 0xa21   :  { %2681 = vmatmul.mubr.f32.vlgmr.msra.gmra.mrb[20].mxu0 %v2611_v47  ;;  %2752 = vmatmul.mubr.f32.vlgmr.msra.gmra.mrb[20].mxu1 %v2611_v47 }
 0xa22   :  { %4580 = vmatpush1.bf16.msra.mxu0 %v5976_v11  ;;  %4612 = vmatpush1.bf16.msra.mxu1 %v5979_v36 }
 0xa23   :  { %4582 = vmatprep.subr.bf16.mxu0 %v5984_v6  ;;  %4614 = vmatprep.subr.bf16.mxu1 %v5986_v30 }
 0xa24   :  { %2848 = vmatprep.mubr.f32.mxu0 %v5292_v1  ;;  %2919 = vmatprep.mubr.f32.mxu1 %v5292_v1 }
 0xa26   :  { %4584 = vmatpush1.bf16.msra.mxu0 %v5988_v45  ;;  %4616 = vmatpush1.bf16.msra.mxu1 %v5991_v57 }
 0xa27   :  { %4586 = vmatprep.subr.bf16.mxu0 %v5996_v58  ;;  %4618 = vmatprep.subr.bf16.mxu1 %v5998_v41 }
 0xa2a   :  { %4588 = vmatpush1.bf16.msra.mxu0 %v6000_v42  ;;  %4620 = vmatpush1.bf16.msra.mxu1 %v6003_v54 }
 0xa2b   :  { %4590 = vmatprep.subr.bf16.mxu0 %v6008_v4  ;;  %4622 = vmatprep.subr.bf16.mxu1 %v6010_v17 }
 0xa2e   :  { %4592 = vmatpush1.bf16.msra.mxu0 %v6012_v18  ;;  %4624 = vmatpush1.bf16.msra.mxu1 %v6015_v34 }
 0xa2f   :  { %4594 = vmatprep.subr.bf16.mxu0 %v6020_v51  ;;  %4626 = vmatprep.subr.bf16.mxu1 %v6022_v48 }
 0xa32   :  { %4596 = vmatpush1.bf16.msra.mxu0 %v6024_v62  ;;  %4628 = vmatpush1.bf16.msra.mxu1 %v6027_v43 }
 0xa33   :  { %4598 = vmatprep.subr.bf16.mxu0 %v6031_v24  ;;  %4630 = vmatprep.subr.bf16.mxu1 %v6033_v28 }
 0xa36   :  { %4600 = vmatpush1.bf16.msra.mxu0 %v6036_v44  ;;  %4632 = vmatpush1.bf16.msra.mxu1 %v6040_v29 }
 0xa37   :  { %4602 = vmatprep.subr.bf16.mxu0 %v6042_v32  ;;  %4634 = vmatprep.subr.bf16.mxu1 %v6044_v55 }
 0xa3a   :  { %4604 = vmatpush1.bf16.msra.mxu0 %v6047_v9  ;;  %4636 = vmatpush1.bf16.msra.mxu1 %v6051_v16 }
 0xa3b   :  { %4606 = vmatprep.subr.bf16.mxu0 %v6056_v39  ;;  %4638 = vmatprep.subr.bf16.mxu1 %v6058_v31 }
 0xa3e   :  { %4608 = vmatpush1.bf16.msra.mxu0 %v6060_v49  ;;  %4640 = vmatpush1.bf16.msra.mxu1 %v6063_v63 }
 0xa3f   :  { %4642 = vmatprep.subr.bf16.mxu0 %v5972_v26  ;;  %4674 = vmatprep.subr.bf16.mxu1 %v5974_v10 }
 0xaf4   :  { %v2682_v27 = vpop.f32.mrb[20].mxu0  ;;  %v2753_v56 = vpop.f32.mrb[20].mxu1 }
 0xaf5   :  { %v4957_v38 = vadd.f32 %v2682_v27, %v6118_v7  ;;  %v2684_v12 = vpop.f32.mrb[21].mxu0  ;;  %v2755_v61 = vpop.f32.mrb[21].mxu1  ;;  %v4973_v53 = vadd.f32 %v2753_v56, %v6127_v2 }
 0xaf6   :  { %v4958_v37 = vadd.f32 %v2684_v12, %v6122_v25  ;;  %v4974_v14 = vadd.f32 %v2755_v61, %v6133_v59 }
 0xaf7   :  { %v2762_v40 = vmul.f32 0.5, %v4957_v38 }
 0xaf8   :  { %v2766_v46 = vmul.f32 0.5, %v4958_v37  ;;  %v2771_v19 = vmul.f32 0.5, %v4974_v14 }
 0xaf9   :  { %5157 = vtanh.f32 %v2762_v40 }
 0xafa   :  { %5159 = vtanh.f32 %v2766_v46 }
 0xafb   :  { %5161 = vtanh.f32 %v4973_v53 }
 0xafc   :  { %5163 = vtanh.f32 %v2771_v19 }
 0xb03   :  { %v5158_v3 = vpop.eup %5157 }
 0xb04   :  { %v5160_v5 = vpop.eup %5159  ;;  %v2764_v21 = vmul.f32 0.5, %v5158_v3 }
 0xb05   :  { %v2768_v22 = vmul.f32 0.5, %v5160_v5  ;;  %v5162_v33 = vpop.eup %5161 }
 0xb06   :  { %v2765_v20 = vadd.f32 0.5, %v2764_v21  ;;  %v5164_v13 = vpop.eup %5163 }
 0xb07   :  { %v2769_v35 = vadd.f32 0.5, %v2768_v22  ;;  %v2773_v8 = vmul.f32 0.5, %v5164_v13 }
 0xb08   :  { %v2776_v50 = vmul.f32 %v5162_v33, %v2765_v20 }
 0xb09   :  { %v2775_v23 = vmul.f32 %v2769_v35, %v6178_v60  ;;  %v2774_v0 = vadd.f32 0.5, %v2773_v8 }
 0xb0b   :  { %v6220_v52 = vadd.f32 %v2776_v50, %v2775_v23 }
 0xb0d   :  { %5165 = vtanh.f32 %v6220_v52 }
 0xb17   :  { %v5166_v15 = vpop.eup %5165 }
 0xb18   :  { %v2779_v47 = vmul.f32 %v5166_v15, %v2774_v0 }
 0xb1a   :  { %2849 = vmatmul.mubr.f32.vlgmr.msra.gmra.mrb[22].mxu0 %v2779_v47  ;;  %2920 = vmatmul.mubr.f32.vlgmr.msra.gmra.mrb[22].mxu1 %v2779_v47 }
 0xb1b   :  { %4644 = vmatpush1.bf16.msra.mxu0 %v5976_v11  ;;  %4676 = vmatpush1.bf16.msra.mxu1 %v5979_v36 }
 0xb1c   :  { %4646 = vmatprep.subr.bf16.mxu0 %v5984_v6  ;;  %4678 = vmatprep.subr.bf16.mxu1 %v5986_v30 }
 0xb1d   :  { %3016 = vmatprep.mubr.f32.mxu0 %v5292_v1  ;;  %3087 = vmatprep.mubr.f32.mxu1 %v5292_v1 }
 0xb1f   :  { %4648 = vmatpush1.bf16.msra.mxu0 %v5988_v45  ;;  %4680 = vmatpush1.bf16.msra.mxu1 %v5991_v57 }
 0xb20   :  { %4650 = vmatprep.subr.bf16.mxu0 %v5996_v58  ;;  %4682 = vmatprep.subr.bf16.mxu1 %v5998_v41 }
 0xb23   :  { %4652 = vmatpush1.bf16.msra.mxu0 %v6000_v42  ;;  %4684 = vmatpush1.bf16.msra.mxu1 %v6003_v54 }
 0xb24   :  { %4654 = vmatprep.subr.bf16.mxu0 %v6008_v4  ;;  %4686 = vmatprep.subr.bf16.mxu1 %v6010_v17 }
 0xb27   :  { %4656 = vmatpush1.bf16.msra.mxu0 %v6012_v18  ;;  %4688 = vmatpush1.bf16.msra.mxu1 %v6015_v34 }
 0xb28   :  { %4658 = vmatprep.subr.bf16.mxu0 %v6020_v51  ;;  %4690 = vmatprep.subr.bf16.mxu1 %v6022_v48 }
 0xb2b   :  { %4660 = vmatpush1.bf16.msra.mxu0 %v6024_v62  ;;  %4692 = vmatpush1.bf16.msra.mxu1 %v6027_v43 }
 0xb2c   :  { %4662 = vmatprep.subr.bf16.mxu0 %v6031_v24  ;;  %4694 = vmatprep.subr.bf16.mxu1 %v6033_v28 }
 0xb2f   :  { %4664 = vmatpush1.bf16.msra.mxu0 %v6036_v44  ;;  %4696 = vmatpush1.bf16.msra.mxu1 %v6040_v29 }
 0xb30   :  { %4666 = vmatprep.subr.bf16.mxu0 %v6042_v32  ;;  %4698 = vmatprep.subr.bf16.mxu1 %v6044_v55 }
 0xb33   :  { %4668 = vmatpush1.bf16.msra.mxu0 %v6047_v9  ;;  %4700 = vmatpush1.bf16.msra.mxu1 %v6051_v16 }
 0xb34   :  { %4670 = vmatprep.subr.bf16.mxu0 %v6056_v39  ;;  %4702 = vmatprep.subr.bf16.mxu1 %v6058_v31 }
 0xb37   :  { %4672 = vmatpush1.bf16.msra.mxu0 %v6060_v49  ;;  %4704 = vmatpush1.bf16.msra.mxu1 %v6063_v63 }
 0xb38   :  { %4706 = vmatprep.subr.bf16.mxu0 %v5972_v26  ;;  %4738 = vmatprep.subr.bf16.mxu1 %v5974_v10 }
 0xbed   :  { %v2850_v60 = vpop.f32.mrb[22].mxu0  ;;  %v2921_v27 = vpop.f32.mrb[22].mxu1 }
 0xbee   :  { %v4959_v56 = vadd.f32 %v2850_v60, %v6118_v7  ;;  %v2852_v38 = vpop.f32.mrb[23].mxu0  ;;  %v2923_v12 = vpop.f32.mrb[23].mxu1  ;;  %v4975_v46 = vadd.f32 %v2921_v27, %v6127_v2 }
 0xbef   :  { %v4960_v61 = vadd.f32 %v2852_v38, %v6122_v25  ;;  %v4976_v53 = vadd.f32 %v2923_v12, %v6133_v59 }
 0xbf0   :  { %v2930_v37 = vmul.f32 0.5, %v4959_v56 }
 0xbf1   :  { %v2934_v40 = vmul.f32 0.5, %v4960_v61  ;;  %v2939_v14 = vmul.f32 0.5, %v4976_v53 }
 0xbf2   :  { %5167 = vtanh.f32 %v2930_v37 }
 0xbf3   :  { %5169 = vtanh.f32 %v2934_v40 }
 0xbf4   :  { %5171 = vtanh.f32 %v4975_v46 }
 0xbf5   :  { %5173 = vtanh.f32 %v2939_v14 }
 0xbfc   :  { %v5168_v19 = vpop.eup %5167 }
 0xbfd   :  { %v5170_v3 = vpop.eup %5169  ;;  %v2932_v5 = vmul.f32 0.5, %v5168_v19 }
 0xbfe   :  { %v2936_v21 = vmul.f32 0.5, %v5170_v3  ;;  %v5172_v20 = vpop.eup %5171 }
 0xbff   :  { %v2933_v22 = vadd.f32 0.5, %v2932_v5  ;;  %v5174_v13 = vpop.eup %5173 }
 0xc00   :  { %v2937_v33 = vadd.f32 0.5, %v2936_v21  ;;  %v2941_v8 = vmul.f32 0.5, %v5174_v13 }
 0xc01   :  { %v2944_v35 = vmul.f32 %v5172_v20, %v2933_v22 }
 0xc02   :  { %v2943_v50 = vmul.f32 %v2937_v33, %v6220_v52  ;;  %v2942_v0 = vadd.f32 0.5, %v2941_v8 }
 0xc04   :  { %v6262_v23 = vadd.f32 %v2944_v35, %v2943_v50 }
 0xc06   :  { %5175 = vtanh.f32 %v6262_v23 }
 0xc10   :  { %v5176_v15 = vpop.eup %5175 }
 0xc11   :  { %v2947_v47 = vmul.f32 %v5176_v15, %v2942_v0 }
 0xc13   :  { %3017 = vmatmul.mubr.f32.vlgmr.msra.gmra.mrb[24].mxu0 %v2947_v47  ;;  %3088 = vmatmul.mubr.f32.vlgmr.msra.gmra.mrb[24].mxu1 %v2947_v47 }
 0xc14   :  { %4708 = vmatpush1.bf16.msra.mxu0 %v5976_v11  ;;  %4740 = vmatpush1.bf16.msra.mxu1 %v5979_v36 }
 0xc15   :  { %4710 = vmatprep.subr.bf16.mxu0 %v5984_v6  ;;  %4742 = vmatprep.subr.bf16.mxu1 %v5986_v30 }
 0xc16   :  { %3184 = vmatprep.mubr.f32.mxu0 %v5292_v1  ;;  %3255 = vmatprep.mubr.f32.mxu1 %v5292_v1 }
 0xc18   :  { %4712 = vmatpush1.bf16.msra.mxu0 %v5988_v45  ;;  %4744 = vmatpush1.bf16.msra.mxu1 %v5991_v57 }
 0xc19   :  { %4714 = vmatprep.subr.bf16.mxu0 %v5996_v58  ;;  %4746 = vmatprep.subr.bf16.mxu1 %v5998_v41 }
 0xc1c   :  { %4716 = vmatpush1.bf16.msra.mxu0 %v6000_v42  ;;  %4748 = vmatpush1.bf16.msra.mxu1 %v6003_v54 }
 0xc1d   :  { %4718 = vmatprep.subr.bf16.mxu0 %v6008_v4  ;;  %4750 = vmatprep.subr.bf16.mxu1 %v6010_v17 }
 0xc20   :  { %4720 = vmatpush1.bf16.msra.mxu0 %v6012_v18  ;;  %4752 = vmatpush1.bf16.msra.mxu1 %v6015_v34 }
 0xc21   :  { %4722 = vmatprep.subr.bf16.mxu0 %v6020_v51  ;;  %4754 = vmatprep.subr.bf16.mxu1 %v6022_v48 }
 0xc24   :  { %4724 = vmatpush1.bf16.msra.mxu0 %v6024_v62  ;;  %4756 = vmatpush1.bf16.msra.mxu1 %v6027_v43 }
 0xc25   :  { %4726 = vmatprep.subr.bf16.mxu0 %v6031_v24  ;;  %4758 = vmatprep.subr.bf16.mxu1 %v6033_v28 }
 0xc28   :  { %4728 = vmatpush1.bf16.msra.mxu0 %v6036_v44  ;;  %4760 = vmatpush1.bf16.msra.mxu1 %v6040_v29 }
 0xc29   :  { %4730 = vmatprep.subr.bf16.mxu0 %v6042_v32  ;;  %4762 = vmatprep.subr.bf16.mxu1 %v6044_v55 }
 0xc2c   :  { %4732 = vmatpush1.bf16.msra.mxu0 %v6047_v9  ;;  %4764 = vmatpush1.bf16.msra.mxu1 %v6051_v16 }
 0xc2d   :  { %4734 = vmatprep.subr.bf16.mxu0 %v6056_v39  ;;  %4766 = vmatprep.subr.bf16.mxu1 %v6058_v31 }
 0xc30   :  { %4736 = vmatpush1.bf16.msra.mxu0 %v6060_v49  ;;  %4768 = vmatpush1.bf16.msra.mxu1 %v6063_v63 }
 0xc31   :  { %4770 = vmatprep.subr.bf16.mxu0 %v5972_v26  ;;  %4802 = vmatprep.subr.bf16.mxu1 %v5974_v10 }
 0xce6   :  { %v3018_v52 = vpop.f32.mrb[24].mxu0  ;;  %v3089_v60 = vpop.f32.mrb[24].mxu1 }
 0xce7   :  { %v4961_v27 = vadd.f32 %v3018_v52, %v6118_v7  ;;  %v3020_v56 = vpop.f32.mrb[25].mxu0  ;;  %v3091_v38 = vpop.f32.mrb[25].mxu1  ;;  %v4977_v40 = vadd.f32 %v3089_v60, %v6127_v2 }
 0xce8   :  { %v4962_v12 = vadd.f32 %v3020_v56, %v6122_v25  ;;  %v4978_v46 = vadd.f32 %v3091_v38, %v6133_v59 }
 0xce9   :  { %v3098_v61 = vmul.f32 0.5, %v4961_v27 }
 0xcea   :  { %v3102_v37 = vmul.f32 0.5, %v4962_v12  ;;  %v3107_v53 = vmul.f32 0.5, %v4978_v46 }
 0xceb   :  { %5177 = vtanh.f32 %v3098_v61 }
 0xcec   :  { %5179 = vtanh.f32 %v3102_v37 }
 0xced   :  { %5181 = vtanh.f32 %v4977_v40 }
 0xcee   :  { %5183 = vtanh.f32 %v3107_v53 }
 0xcf5   :  { %v5178_v14 = vpop.eup %5177 }
 0xcf6   :  { %v5180_v19 = vpop.eup %5179  ;;  %v3100_v3 = vmul.f32 0.5, %v5178_v14 }
 0xcf7   :  { %v3104_v5 = vmul.f32 0.5, %v5180_v19  ;;  %v5182_v22 = vpop.eup %5181 }
 0xcf8   :  { %v3101_v21 = vadd.f32 0.5, %v3100_v3  ;;  %v5184_v13 = vpop.eup %5183 }
 0xcf9   :  { %v3105_v20 = vadd.f32 0.5, %v3104_v5  ;;  %v3109_v8 = vmul.f32 0.5, %v5184_v13 }
 0xcfa   :  { %v3112_v33 = vmul.f32 %v5182_v22, %v3101_v21 }
 0xcfb   :  { %v3111_v35 = vmul.f32 %v3105_v20, %v6262_v23  ;;  %v3110_v0 = vadd.f32 0.5, %v3109_v8 }
 0xcfd   :  { %v6304_v50 = vadd.f32 %v3112_v33, %v3111_v35 }
 0xcff   :  { %5185 = vtanh.f32 %v6304_v50 }
 0xd09   :  { %v5186_v15 = vpop.eup %5185 }
 0xd0a   :  { %v3115_v47 = vmul.f32 %v5186_v15, %v3110_v0  ;;  %v3623_v15 = vld [vmem:[%s6453_s7 + $0x18] sm:$0xff] }
 0xd0c   :  { %3185 = vmatmul.mubr.f32.vlgmr.msra.gmra.mrb[26].mxu0 %v3115_v47  ;;  %3256 = vmatmul.mubr.f32.vlgmr.msra.gmra.mrb[26].mxu1 %v3115_v47 }
 0xd0d   :  { %4772 = vmatpush1.bf16.msra.mxu0 %v5976_v11  ;;  %4804 = vmatpush1.bf16.msra.mxu1 %v5979_v36 }
 0xd0e   :  { %4774 = vmatprep.subr.bf16.mxu0 %v5984_v6  ;;  %4806 = vmatprep.subr.bf16.mxu1 %v5986_v30 }
 0xd0f   :  { %3352 = vmatprep.mubr.f32.mxu0 %v5292_v1  ;;  %3423 = vmatprep.mubr.f32.mxu1 %v5292_v1 }
 0xd11   :  { %4776 = vmatpush1.bf16.msra.mxu0 %v5988_v45  ;;  %4808 = vmatpush1.bf16.msra.mxu1 %v5991_v57 }
 0xd12   :  { %4778 = vmatprep.subr.bf16.mxu0 %v5996_v58  ;;  %4810 = vmatprep.subr.bf16.mxu1 %v5998_v41 }
 0xd15   :  { %4780 = vmatpush1.bf16.msra.mxu0 %v6000_v42  ;;  %4812 = vmatpush1.bf16.msra.mxu1 %v6003_v54 }
 0xd16   :  { %4782 = vmatprep.subr.bf16.mxu0 %v6008_v4  ;;  %4814 = vmatprep.subr.bf16.mxu1 %v6010_v17 }
 0xd19   :  { %4784 = vmatpush1.bf16.msra.mxu0 %v6012_v18  ;;  %4816 = vmatpush1.bf16.msra.mxu1 %v6015_v34 }
 0xd1a   :  { %4786 = vmatprep.subr.bf16.mxu0 %v6020_v51  ;;  %4818 = vmatprep.subr.bf16.mxu1 %v6022_v48 }
 0xd1d   :  { %4788 = vmatpush1.bf16.msra.mxu0 %v6024_v62  ;;  %4820 = vmatpush1.bf16.msra.mxu1 %v6027_v43 }
 0xd1e   :  { %4790 = vmatprep.subr.bf16.mxu0 %v6031_v24  ;;  %4822 = vmatprep.subr.bf16.mxu1 %v6033_v28 }
 0xd21   :  { %4792 = vmatpush1.bf16.msra.mxu0 %v6036_v44  ;;  %4824 = vmatpush1.bf16.msra.mxu1 %v6040_v29 }
 0xd22   :  { %4794 = vmatprep.subr.bf16.mxu0 %v6042_v32  ;;  %4826 = vmatprep.subr.bf16.mxu1 %v6044_v55 }
 0xd25   :  { %4796 = vmatpush1.bf16.msra.mxu0 %v6047_v9  ;;  %4828 = vmatpush1.bf16.msra.mxu1 %v6051_v16 }
 0xd26   :  { %4798 = vmatprep.subr.bf16.mxu0 %v6056_v39  ;;  %4830 = vmatprep.subr.bf16.mxu1 %v6058_v31 }
 0xd29   :  { %4800 = vmatpush1.bf16.msra.mxu0 %v6060_v49  ;;  %4832 = vmatpush1.bf16.msra.mxu1 %v6063_v63 }
 0xd2a   :  { %4834 = vmatprep.subr.bf16.mxu0 %v5972_v26  ;;  %4866 = vmatprep.subr.bf16.mxu1 %v5974_v10 }
 0xddf   :  { %v3186_v23 = vpop.f32.mrb[26].mxu0  ;;  %v3257_v52 = vpop.f32.mrb[26].mxu1 }
 0xde0   :  { %v4963_v60 = vadd.f32 %v3186_v23, %v6118_v7  ;;  %v3188_v27 = vpop.f32.mrb[27].mxu0  ;;  %v3259_v56 = vpop.f32.mrb[27].mxu1  ;;  %v4979_v37 = vadd.f32 %v3257_v52, %v6127_v2  ;;  %v3624_v23 = vld [vmem:[%s6453_s7 + $0x20] sm:$0xff]  ;;  %v3625_v52 = vld [vmem:[%s6453_s7 + $0x28] sm:$0xff] }
 0xde1   :  { %v4964_v38 = vadd.f32 %v3188_v27, %v6122_v25  ;;  %v4980_v40 = vadd.f32 %v3259_v56, %v6133_v59  ;;  %v3626_v27 = vld [vmem:[%s6453_s7 + $0x30] sm:$0xff]  ;;  %v3627_v56 = vld [vmem:[%s6453_s7 + $0x38] sm:$0xff] }
 0xde2   :  { %v3266_v12 = vmul.f32 0.5, %v4963_v60  ;;  %v4904_v60 = vpack.c.bf16 %v3625_v52, %v3624_v23 }
 0xde3   :  { %v3270_v61 = vmul.f32 0.5, %v4964_v38  ;;  %v3275_v26 = vmul.f32 0.5, %v4980_v40  ;;  %v4907_v38 = vpack.c.bf16 %v3627_v56, %v3626_v27  ;;  %v3630_v40 = vld [vmem:[%s6453_s7 + $0x50] sm:$0xff] }
 0xde4   :  { %5187 = vtanh.f32 %v3266_v12  ;;  %v3628_v12 = vld [vmem:[%s6453_s7 + $0x40] sm:$0xff] }
 0xde5   :  { %5189 = vtanh.f32 %v3270_v61  ;;  %v3629_v61 = vld [vmem:[%s6453_s7 + $0x48] sm:$0xff] }
 0xde6   :  { %5191 = vtanh.f32 %v4979_v37  ;;  %v4910_v37 = vpack.c.bf16 %v3629_v61, %v3628_v12 }
 0xde7   :  { %5193 = vtanh.f32 %v3275_v26  ;;  %v3631_v26 = vld [vmem:[%s6453_s7 + $0x58] sm:$0xff] }
 0xdee   :  { %v5188_v46 = vpop.eup %5187 }
 0xdef   :  { %v5190_v10 = vpop.eup %5189  ;;  %v3268_v53 = vmul.f32 0.5, %v5188_v46  ;;  %v4913_v46 = vpack.c.bf16 %v3631_v26, %v3630_v40 }
 0xdf0   :  { %v3272_v14 = vmul.f32 0.5, %v5190_v10  ;;  %v5192_v3 = vpop.eup %5191  ;;  %v3632_v10 = vld [vmem:[%s6453_s7 + $0x60] sm:$0xff] }
 0xdf1   :  { %v3269_v19 = vadd.f32 0.5, %v3268_v53  ;;  %v5194_v33 = vpop.eup %5193  ;;  %v3633_v53 = vld [vmem:[%s6453_s7 + $0x68] sm:$0xff] }
 0xdf2   :  { %v3273_v5 = vadd.f32 0.5, %v3272_v14  ;;  %v3277_v35 = vmul.f32 0.5, %v5194_v33  ;;  %v4916_v14 = vpack.c.bf16 %v3633_v53, %v3632_v10 }
 0xdf3   :  { %v3280_v21 = vmul.f32 %v5192_v3, %v3269_v19  ;;  %v3634_v19 = vld [vmem:[%s6453_s7 + $0x70] sm:$0xff]  ;;  %v3635_v3 = vld [vmem:[%s6453_s7 + $0x78] sm:$0xff] }
 0xdf4   :  { %v3279_v22 = vmul.f32 %v3273_v5, %v6304_v50  ;;  %v3278_v13 = vadd.f32 0.5, %v3277_v35  ;;  %v3622_v50 = vld [vmem:[%s6453_s7 + $0x10] sm:$0xff]  ;;  %v4919_v5 = vpack.c.bf16 %v3635_v3, %v3634_v19 }
 0xdf5   :  { %v4901_v47 = vpack.c.bf16 %v3623_v15, %v3622_v50 }
 0xdf6   :  { %v6346_v20 = vadd.f32 %v3280_v21, %v3279_v22 }
 0xdf8   :  { %5195 = vtanh.f32 %v6346_v20 }
 0xe02   :  { %v5196_v8 = vpop.eup %5195 }
 0xe03   :  { %v3283_v0 = vmul.f32 %v5196_v8, %v3278_v13 }
 0xe05   :  { %3353 = vmatmul.mubr.f32.vlgmr.msra.gmra.mrb[28].mxu0 %v3283_v0  ;;  %3424 = vmatmul.mubr.f32.vlgmr.msra.gmra.mrb[28].mxu1 %v3283_v0 }
 0xe06   :  { %4836 = vmatpush1.bf16.msra.mxu0 %v5976_v11  ;;  %4868 = vmatpush1.bf16.msra.mxu1 %v5979_v36 }
 0xe07   :  { %4838 = vmatprep.subr.bf16.mxu0 %v5984_v6  ;;  %4870 = vmatprep.subr.bf16.mxu1 %v5986_v30 }
 0xe08   :  { %3520 = vmatprep.mubr.f32.mxu0 %v5292_v1  ;;  %3591 = vmatprep.mubr.f32.mxu1 %v5292_v1 }
 0xe0a   :  { %4840 = vmatpush1.bf16.msra.mxu0 %v5988_v45  ;;  %4872 = vmatpush1.bf16.msra.mxu1 %v5991_v57 }
 0xe0b   :  { %4842 = vmatprep.subr.bf16.mxu0 %v5996_v58  ;;  %4874 = vmatprep.subr.bf16.mxu1 %v5998_v41 }
 0xe0e   :  { %4844 = vmatpush1.bf16.msra.mxu0 %v6000_v42  ;;  %4876 = vmatpush1.bf16.msra.mxu1 %v6003_v54 }
 0xe0f   :  { %4846 = vmatprep.subr.bf16.mxu0 %v6008_v4  ;;  %4878 = vmatprep.subr.bf16.mxu1 %v6010_v17 }
 0xe12   :  { %4848 = vmatpush1.bf16.msra.mxu0 %v6012_v18  ;;  %4880 = vmatpush1.bf16.msra.mxu1 %v6015_v34 }
 0xe13   :  { %4850 = vmatprep.subr.bf16.mxu0 %v6020_v51  ;;  %4882 = vmatprep.subr.bf16.mxu1 %v6022_v48 }
 0xe16   :  { %4852 = vmatpush1.bf16.msra.mxu0 %v6024_v62  ;;  %4884 = vmatpush1.bf16.msra.mxu1 %v6027_v43 }
 0xe17   :  { %4854 = vmatprep.subr.bf16.mxu0 %v6031_v24  ;;  %4886 = vmatprep.subr.bf16.mxu1 %v6033_v28 }
 0xe1a   :  { %4856 = vmatpush1.bf16.msra.mxu0 %v6036_v44  ;;  %4888 = vmatpush1.bf16.msra.mxu1 %v6040_v29 }
 0xe1b   :  { %4858 = vmatprep.subr.bf16.mxu0 %v6042_v32  ;;  %4890 = vmatprep.subr.bf16.mxu1 %v6044_v55 }
 0xe1e   :  { %4860 = vmatpush1.bf16.msra.mxu0 %v6047_v9  ;;  %4892 = vmatpush1.bf16.msra.mxu1 %v6051_v16 }
 0xe1f   :  { %4862 = vmatprep.subr.bf16.mxu0 %v6056_v39  ;;  %4894 = vmatprep.subr.bf16.mxu1 %v6058_v31  ;;  %v3620_v39 = vld [vmem:[%s6453_s7] sm:$0xff]  ;;  %v3621_v31 = vld [vmem:[%s6453_s7 + $0x8] sm:$0xff] }
 0xe22   :  { %4864 = vmatpush1.bf16.msra.mxu0 %v6060_v49  ;;  %4896 = vmatpush1.bf16.msra.mxu1 %v6063_v63  ;;  %v4898_v49 = vpack.c.bf16 %v3621_v31, %v3620_v39  ;;  %v5293_v63 = vmov 0.0|0.0  }
 0xe23   :  { %4897 = vmatprep.subr.bf16.mxu0 %v5293_v63 }
 0xed8   :  { %v3354_v11 = vpop.f32.mrb[28].mxu0  ;;  %v3425_v36 = vpop.f32.mrb[28].mxu1 }
 0xed9   :  { %v4965_v6 = vadd.f32 %v3354_v11, %v6118_v7  ;;  %v3356_v30 = vpop.f32.mrb[29].mxu0  ;;  %v3427_v45 = vpop.f32.mrb[29].mxu1  ;;  %v4981_v42 = vadd.f32 %v3425_v36, %v6127_v2 }
 0xeda   :  { %v4966_v57 = vadd.f32 %v3356_v30, %v6122_v25  ;;  %v4982_v54 = vadd.f32 %v3427_v45, %v6133_v59 }
 0xedb   :  { %v3434_v58 = vmul.f32 0.5, %v4965_v6 }
 0xedc   :  { %v3438_v41 = vmul.f32 0.5, %v4966_v57  ;;  %v3443_v4 = vmul.f32 0.5, %v4982_v54 }
 0xedd   :  { %5197 = vtanh.f32 %v3434_v58 }
 0xede   :  { %5199 = vtanh.f32 %v3438_v41 }
 0xedf   :  { %5201 = vtanh.f32 %v4981_v42 }
 0xee0   :  { %5203 = vtanh.f32 %v3443_v4 }
 0xee7   :  { %v5198_v17 = vpop.eup %5197 }
 0xee8   :  { %v5200_v18 = vpop.eup %5199  ;;  %v3436_v34 = vmul.f32 0.5, %v5198_v17 }
 0xee9   :  { %v3440_v51 = vmul.f32 0.5, %v5200_v18  ;;  %v5202_v62 = vpop.eup %5201 }
 0xeea   :  { %v3437_v48 = vadd.f32 0.5, %v3436_v34  ;;  %v5204_v29 = vpop.eup %5203 }
 0xeeb   :  { %v3441_v43 = vadd.f32 0.5, %v3440_v51  ;;  %v3445_v32 = vmul.f32 0.5, %v5204_v29 }
 0xeec   :  { %v3448_v24 = vmul.f32 %v5202_v62, %v3437_v48 }
 0xeed   :  { %v3447_v28 = vmul.f32 %v3441_v43, %v6346_v20  ;;  %v3446_v55 = vadd.f32 0.5, %v3445_v32 }
 0xeef   :  { %v6386_v44 = vadd.f32 %v3448_v24, %v3447_v28 }
 0xef1   :  { %5205 = vtanh.f32 %v6386_v44 }
 0xefb   :  { %v5206_v9 = vpop.eup %5205 }
 0xefc   :  { %v3451_v16 = vmul.f32 %v5206_v9, %v3446_v55 }
 0xefe   :  { %3521 = vmatmul.mubr.f32.vlgmr.msra.gmra.mrb[30].mxu0 %v3451_v16  ;;  %3592 = vmatmul.mubr.f32.vlgmr.msra.gmra.mrb[30].mxu1 %v3451_v16 }
 0xeff   :  { %4899 = vmatpush3.bf16.msra.mxu0 %v4898_v49  ;;  %3798 = vmatprep.mubr.msk.f32.mxu0 %vm5294_vm2, %v5292_v1 }
 0xf00   :  { %4900 = vmatprep.subr.bf16.mxu0 %v5293_v63 }
 0xf03   :  { %4902 = vmatpush3.bf16.msra.mxu0 %v4901_v47 }
 0xf04   :  { %4903 = vmatprep.subr.bf16.mxu0 %v5293_v63 }
 0xf07   :  { %4905 = vmatpush3.bf16.msra.mxu0 %v4904_v60 }
 0xf08   :  { %4906 = vmatprep.subr.bf16.mxu0 %v5293_v63 }
 0xf0b   :  { %4908 = vmatpush3.bf16.msra.mxu0 %v4907_v38 }
 0xf0c   :  { %4909 = vmatprep.subr.bf16.mxu0 %v5293_v63 }
 0xf0f   :  { %4911 = vmatpush3.bf16.msra.mxu0 %v4910_v37 }
 0xf10   :  { %4912 = vmatprep.subr.bf16.mxu0 %v5293_v63 }
 0xf13   :  { %4914 = vmatpush3.bf16.msra.mxu0 %v4913_v46 }
 0xf14   :  { %4915 = vmatprep.subr.bf16.mxu0 %v5293_v63 }
 0xf17   :  { %4917 = vmatpush3.bf16.msra.mxu0 %v4916_v14 }
 0xf18   :  { %4918 = vmatprep.subr.bf16.mxu0 %v5293_v63 }
 0xf1b   :  { %4920 = vmatpush3.bf16.msra.mxu0 %v4919_v5 }
 0xfd1   :  { %v3522_v21 = vpop.f32.mrb[30].mxu0  ;;  %v3593_v22 = vpop.f32.mrb[30].mxu1 }
 0xfd2   :  { %v4967_v20 = vadd.f32 %v3522_v21, %v6118_v7  ;;  %v3524_v33 = vpop.f32.mrb[31].mxu0  ;;  %v3595_v35 = vpop.f32.mrb[31].mxu1  ;;  %v4983_v11 = vadd.f32 %v3593_v22, %v6127_v2 }
 0xfd3   :  { %v4968_v13 = vadd.f32 %v3524_v33, %v6122_v25  ;;  %v4984_v36 = vadd.f32 %v3595_v35, %v6133_v59  ;;  %v3748_v59 = vld [vmem:[#allocation4] ss:$0 sm:$0xff] }
 0xfd4   :  { %v3602_v8 = vmul.f32 0.5, %v4967_v20 }
 0xfd5   :  { %v3606_v0 = vmul.f32 0.5, %v4968_v13  ;;  %v3611_v6 = vmul.f32 0.5, %v4984_v36 }
 0xfd6   :  { %5207 = vtanh.f32 %v3602_v8 }
 0xfd7   :  { %5209 = vtanh.f32 %v3606_v0 }
 0xfd8   :  { %5211 = vtanh.f32 %v4983_v11 }
 0xfd9   :  { %5213 = vtanh.f32 %v3611_v6 }
 0xfe0   :  { %v5208_v30 = vpop.eup %5207 }
 0xfe1   :  { %v5210_v1 = vpop.eup %5209  ;;  %v3604_v45 = vmul.f32 0.5, %v5208_v30 }
 0xfe2   :  { %v3608_v57 = vmul.f32 0.5, %v5210_v1  ;;  %v5212_v58 = vpop.eup %5211 }
 0xfe3   :  { %v3605_v7 = vadd.f32 0.5, %v3604_v45  ;;  %v5214_v4 = vpop.eup %5213 }
 0xfe4   :  { %v3609_v41 = vadd.f32 0.5, %v3608_v57  ;;  %v3613_v2 = vmul.f32 0.5, %v5214_v4 }
 0xfe5   :  { %v3616_v42 = vmul.f32 %v5212_v58, %v3605_v7 }
 0xfe6   :  { %v3615_v25 = vmul.f32 %v3609_v41, %v6386_v44  ;;  %v3614_v17 = vadd.f32 0.5, %v3613_v2 }
 0xfe8   :  { %v3617_v54 = vadd.f32 %v3616_v42, %v3615_v25 }
 0xfea   :  { %5215 = vtanh.f32 %v3617_v54 }
 0xff4   :  { %v5216_v18 = vpop.eup %5215 }
 0xff5   :  { %v3619_v34 = vmul.f32 %v5216_v18, %v3614_v17 }
 0xff7   :  { %3799 = vmatmul.mubr.f32.vlgmr.msra.gmra.mrb[32].mxu0 %v3619_v34 }
0x10ca   :  { %v3709_v51 = vpop.f32.mrb[32].mxu0 }
0x10cb   :  { %v3710_v48 = vadd.f32 %v3748_v59, %v3709_v51  ;;  %v3800_v62 = vpop.f32.mrb[33].mxu0 }
0x10cd   :  { %3714 = vst.msk [vmem:[%s6455_s9] sm:$0xff] %vm3713_vm3, %v3710_v48 }
0x10ce   :  { %3719 = vsyncpa [#allocation6], 1 }
0x10cf   :  { %3720 = vsyncpa [#allocation8], 1 }

</bundles_post_ra>
